<compile_context>
chip_gen: v6e
topology: v6e:2x2x1
jax: 0.10.0
libtpu: 0.0.40
codegen_flags: <defaults>
</compile_context>

<pallas_src>
import functools

import jax
import jax.numpy as jnp
from jax import lax
from jax.experimental import pallas as pl
from jax.experimental.pallas import tpu as pltpu


def _hard_sigmoid(x):
    # F.hardsigmoid
    return jnp.clip(x / 6.0 + 0.5, 0.0, 1.0)


def _round_up(x, m):
    return ((x + m - 1) // m) * m


# ----------------------------- fused encoder kernel -----------------------------

def _make_encoder_kernel(T, Npad, Dpad, Ht, Hg, nh0, fo0, nh1, fo1,
                         f_in0, f_in1, r_whh, r_wihg, r_whhg, r_bg, r_w1, r_b0):
    TN = T * Npad

    def kernel(x_ref, w_ref, gat_ref, pavg_ref, st_ref, out_ref, traj_sc, cat0_sc):
        f32 = jnp.float32

        # --- static, sublane-aligned slices of the packed slabs (loaded once, stay resident) ---
        wih_blk = w_ref[0:Dpad, :]            # rows 0..D-1 = W_ih^T, row Dpad-1 = (b_ih+b_hh)
        whh_t = w_ref[r_whh:r_whh + Ht, :]    # (Ht, 4Ht)
        wihg_t = w_ref[r_wihg:r_wihg + fo1, :]
        whhg_t = w_ref[r_whhg:r_whhg + Hg, :]
        bg_eff = w_ref[r_bg:r_bg + 1, :]      # graph-LSTM bias with GAT layer-1 bias folded in

        p_avg = pavg_ref[...]                 # (TN, TN) block-diag group-averaging matrix
        # additive softmax mask derived once (no separate mask_big input, no per-head selects)
        neg_mask = jnp.where(p_avg > 0.0, jnp.float32(0.0), jnp.float32(-1e30))

        h0t = st_ref[0:Npad, 0:Ht]
        c0t = st_ref[Npad:2 * Npad, 0:Ht]
        h0g = st_ref[2 * Npad:3 * Npad, 0:Hg]
        c0g = st_ref[3 * Npad:4 * Npad, 0:Hg]

        def lstm_steps(xproj, whh, h0, c0, H, store_ref):
            # Serial recurrence; T is small & static -> fully unrolled at trace time.
            # Input projection is pre-hoisted, so each step is only h @ W_hh^T + gating.
            h, c = h0, c0
            for t in range(T):
                gates = xproj[t * Npad:(t + 1) * Npad, :] + jnp.dot(
                    h, whh, preferred_element_type=f32)
                i_g = _hard_sigmoid(gates[:, 0 * H:1 * H])
                f_g = _hard_sigmoid(gates[:, 1 * H:2 * H])
                g_g = jnp.clip(gates[:, 2 * H:3 * H], -1.0, 1.0)   # F.hardtanh
                o_g = _hard_sigmoid(gates[:, 3 * H:4 * H])
                c = f_g * c + i_g * g_g
                h = o_g * jnp.clip(c, -1.0, 1.0)
                if store_ref is not None:
                    store_ref[t * Npad:(t + 1) * Npad, :] = h       # aligned (Npad=8) store
            return h

        def instance_norm(xf):
            # InstanceNorm1d(affine=False): per (timestep, group, feature) stats over the
            # group's nodes; p_avg is block-diagonal so two matmuls give mean and variance.
            mu = jnp.dot(p_avg, xf, preferred_element_type=f32)
            d = xf - mu
            var = jnp.dot(p_avg, d * d, preferred_element_type=f32)
            return d * lax.rsqrt(var + 1e-5)

        def softmax_agg(src_col, dst_row, hp_head):
            # masked softmax with deferred normalization: normalize the small aggregate.
            a = src_col + dst_row                              # (TN, TN): a[i,j]=src[i]+dst[j]
            a = jnp.where(a >= 0.0, a, 0.2 * a)                # LeakyReLU(0.2)
            a = a + neg_mask                                   # group/time mask (additive)
            a = a - jnp.max(a, axis=-1, keepdims=True)
            e = jnp.exp(a)
            s = jnp.sum(e, axis=-1, keepdims=True)
            num = jnp.dot(e, hp_head, preferred_element_type=f32)   # (TN, f_out)
            inv = pl.reciprocal(s, approx=True)
            inv = inv * (2.0 - s * inv)                        # one Newton step -> ~f32 exact
            return num * inv

        # ---- 1) trajectory LSTM ----
        # bias folded via the ones column of x_aug; one (TN, Dpad) x (Dpad, 4Ht) matmul
        xproj_t = jnp.dot(x_ref[...], wih_blk, preferred_element_type=f32)
        traj_last = lstm_steps(xproj_t, whh_t, h0t, c0t, Ht, traj_sc)

        # ---- 2) GAT layer 0 (nh0 heads, head-major concat + ELU) ----
        xn0 = instance_norm(traj_sc[...])
        hp0 = jnp.dot(xn0, gat_ref[0:f_in0, :], preferred_element_type=f32)
        hf0 = nh0 * fo0
        src0 = hp0[:, hf0:hf0 + nh0]                           # hoisted per-head columns
        dst0t = hp0[:, hf0 + nh0:hf0 + 2 * nh0].T              # single (TN, nh0) transpose
        for hd in range(nh0):
            cat0_sc[:, hd * fo0:(hd + 1) * fo0] = softmax_agg(
                src0[:, hd:hd + 1], dst0t[hd:hd + 1, :],
                hp0[:, hd * fo0:(hd + 1) * fo0])
        cat0 = cat0_sc[...] + gat_ref[r_b0:r_b0 + 1, 0:hf0]    # gat0 bias (tiled over heads)
        g0a = jnp.where(cat0 > 0.0, cat0, jnp.exp(jnp.minimum(cat0, 0.0)) - 1.0)   # ELU

        # ---- 3) GAT layer 1 (head 0; its bias folded into bg_eff) ----
        xn1 = instance_norm(g0a)
        hp1 = jnp.dot(xn1, gat_ref[r_w1:r_w1 + f_in1, :], preferred_element_type=f32)
        hf1 = nh1 * fo1
        gin = softmax_agg(hp1[:, hf1:hf1 + 1],
                          hp1[:, hf1 + nh1:hf1 + nh1 + 1].T,
                          hp1[:, 0:fo1])                       # (TN, fo1)

        # ---- 4) graph LSTM ----
        xproj_g = jnp.dot(gin, wihg_t, preferred_element_type=f32) + bg_eff
        graph_last = lstm_steps(xproj_g, whhg_t, h0g, c0g, Hg, None)

        # ---- 5) output: concat of last hidden states (padded node rows sliced off outside) ----
        out_ref[:, 0:Ht] = traj_last
        out_ref[:, Ht:Ht + Hg] = graph_last

    return kernel


# ----------------------------- wrapper -----------------------------

def _fuse_gat_weights(w, a_src, a_dst):
    """w: (nh, f_in, f_out); a_src/a_dst: (nh, f_out, 1) -> (f_in, nh*f_out + 2*nh)."""
    nh, f_in, f_out = w.shape
    w_cat = jnp.transpose(w, (1, 0, 2)).reshape(f_in, nh * f_out)   # head-major columns
    src_cols = jnp.einsum("hio,ho->ih", w, a_src[..., 0])           # (f_in, nh)
    dst_cols = jnp.einsum("hio,ho->ih", w, a_dst[..., 0])           # (f_in, nh)
    return jnp.concatenate([w_cat, src_cols, dst_cols], axis=1)


def encoder_forward(params, obs_traj_rel, h0_traj, c0_traj, h0_graph, c0_graph,
                    *, seq_start_end):
    """obs_traj_rel: (T, N, D); seq_start_end: static tuple of (start, end) pairs.

    Like the PyTorch module, groups are assumed to partition 0..N in order.
    """
    T, N, D = obs_traj_rel.shape
    Ht = h0_traj.shape[1]
    Hg = h0_graph.shape[1]

    pt, pg = params["traj_lstm"], params["graph_lstm"]
    g0, g1 = params["gat0"], params["gat1"]
    nh0, f_in0, fo0 = g0["w"].shape
    nh1, f_in1, fo1 = g1["w"].shape

    Npad = _round_up(max(N, 1), 8)          # sublane-aligned node dimension
    Dpad = _round_up(D + 1, 8)              # +1 ones column folds the input bias
    LW = _round_up(max(4 * Ht, 4 * Hg), 128)
    LWg = _round_up(max(nh0 * fo0 + 2 * nh0, nh1 * fo1 + 2 * nh1), 128)
    Hcol = max(Ht, Hg)

    # ---- augmented, padded input (time-major flat) ----
    x_aug = jnp.zeros((T, Npad, Dpad), jnp.float32)
    x_aug = x_aug.at[:, :N, :D].set(obs_traj_rel.astype(jnp.float32))
    x_aug = x_aug.at[:, :, Dpad - 1].set(1.0)
    x_aug = x_aug.reshape(T * Npad, Dpad)

    # ---- packed LSTM weight slab (all block starts 8-aligned) ----
    r_whh = Dpad
    r_wihg = r_whh + _round_up(Ht, 8)
    r_whhg = r_wihg + _round_up(fo1, 8)
    r_bg = r_whhg + _round_up(Hg, 8)
    w_rows = _round_up(r_bg + 1, 8)

    bg_eff = (g1["bias"][None, :] @ pg["w_ih"].T
              + (pg["b_ih"] + pg["b_hh"])[None, :])             # fold GAT-1 bias into graph bias

    w_slab = jnp.zeros((w_rows, LW), jnp.float32)
    w_slab = w_slab.at[:D, :4 * Ht].set(pt["w_ih"].T)
    w_slab = w_slab.at[Dpad - 1, :4 * Ht].set(pt["b_ih"] + pt["b_hh"])
    w_slab = w_slab.at[r_whh:r_whh + Ht, :4 * Ht].set(pt["w_hh"].T)
    w_slab = w_slab.at[r_wihg:r_wihg + fo1, :4 * Hg].set(pg["w_ih"].T)
    w_slab = w_slab.at[r_whhg:r_whhg + Hg, :4 * Hg].set(pg["w_hh"].T)
    w_slab = w_slab.at[r_bg, :4 * Hg].set(bg_eff[0])

    # ---- packed GAT weight slab ----
    w0f = _fuse_gat_weights(g0["w"], g0["a_src"], g0["a_dst"])   # (f_in0, nh0*fo0+2nh0)
    w1f = _fuse_gat_weights(g1["w"], g1["a_src"], g1["a_dst"])   # (f_in1, nh1*fo1+2nh1)
    b0_tiled = jnp.tile(g0["bias"], (nh0,))                      # (nh0*fo0,)
    r_w1 = _round_up(f_in0, 8)
    r_b0 = r_w1 + _round_up(f_in1, 8)
    g_rows = _round_up(r_b0 + 1, 8)
    gat_slab = jnp.zeros((g_rows, LWg), jnp.float32)
    gat_slab = gat_slab.at[:f_in0, :w0f.shape[1]].set(w0f)
    gat_slab = gat_slab.at[r_w1:r_w1 + f_in1, :w1f.shape[1]].set(w1f)
    gat_slab = gat_slab.at[r_b0, :nh0 * fo0].set(b0_tiled)

    # ---- packed initial-state slab ----
    st_slab = jnp.zeros((4 * Npad, Hcol), jnp.float32)
    st_slab = st_slab.at[0:N, :Ht].set(h0_traj)
    st_slab = st_slab.at[Npad:Npad + N, :Ht].set(c0_traj)
    st_slab = st_slab.at[2 * Npad:2 * Npad + N, :Hg].set(h0_graph)
    st_slab = st_slab.at[3 * Npad:3 * Npad + N, :Hg].set(c0_graph)

    # ---- group-averaging matrix (block-diag per group per timestep); padded nodes get
    #      self-loops only so every row is finite and they never mix with real nodes. ----
    m = jnp.zeros((Npad, Npad), jnp.float32)
    for (s, e) in seq_start_end:
        gvec = jnp.zeros((Npad,), jnp.float32).at[s:e].set(1.0)
        m = m + jnp.outer(gvec, gvec)
    pad_diag = jnp.concatenate(
        [jnp.zeros((N,), jnp.float32), jnp.ones((Npad - N,), jnp.float32)])
    m = m + jnp.diag(pad_diag)
    mask_big = jnp.kron(jnp.eye(T, dtype=jnp.float32), m)        # (T*Npad, T*Npad)
    p_avg = mask_big / jnp.sum(mask_big, axis=1, keepdims=True)

    kernel = _make_encoder_kernel(T, Npad, Dpad, Ht, Hg, nh0, fo0, nh1, fo1,
                                  f_in0, f_in1, r_whh, r_wihg, r_whhg, r_bg, r_w1, r_b0)
    out = pl.pallas_call(
        kernel,
        out_shape=jax.ShapeDtypeStruct((Npad, Ht + Hg), jnp.float32),
        in_specs=[pl.BlockSpec(memory_space=pltpu.MemorySpace.VMEM)] * 5,
        out_specs=pl.BlockSpec(memory_space=pltpu.MemorySpace.VMEM),
        scratch_shapes=[pltpu.VMEM((T * Npad, Ht), jnp.float32),         # traj hidden states
                        pltpu.VMEM((T * Npad, nh0 * fo0), jnp.float32)],  # GAT head concat
    )(x_aug, w_slab, gat_slab, p_avg, st_slab)
    return out[:N]


# ----------------------------- pure-JAX reference (for verification) -----------------------------

def _lstm_ref(x_seq, w_ih, w_hh, b_ih, b_hh, h0, c0):
    h, c = h0, c0
    hs = []
    for t in range(x_seq.shape[0]):
        gates = x_seq[t] @ w_ih.T + b_ih + h @ w_hh.T + b_hh
        i, f, g, o = jnp.split(gates, 4, axis=1)
        i, f, o = _hard_sigmoid(i), _hard_sigmoid(f), _hard_sigmoid(o)
        g = jnp.clip(g, -1.0, 1.0)
        c = f * c + i * g
        h = o * jnp.clip(c, -1.0, 1.0)
        hs.append(h)
    return jnp.stack(hs)


def _gat_layer_ref(x, w, a_src, a_dst, bias, last):
    mean = x.mean(axis=1, keepdims=True)
    var = ((x - mean) ** 2).mean(axis=1, keepdims=True)
    xn = (x - mean) / jnp.sqrt(var + 1e-5)
    hp = jnp.einsum("tnf,hfo->thno", xn, w)
    src = jnp.einsum("thno,ho->thn", hp, a_src[..., 0])[..., :, None]
    dst = jnp.einsum("thno,ho->thn", hp, a_dst[..., 0])[..., None, :]
    attn = src + dst
    attn = jnp.where(attn >= 0.0, attn, 0.2 * attn)
    attn = jax.nn.softmax(attn, axis=-1)
    out = jnp.einsum("thij,thjo->thio", attn, hp) + bias
    if last:
        return out[:, 0]
    T, H, n, f = out.shape
    cat = jnp.transpose(out, (0, 2, 1, 3)).reshape(T, n, H * f)
    return jnp.where(cat > 0.0, cat, jnp.exp(cat) - 1.0)


def _encoder_ref(params, x, seq_start_end, h0t, c0t, h0g, c0g):
    pt = params["traj_lstm"]
    traj_hs = _lstm_ref(x, pt["w_ih"], pt["w_hh"], pt["b_ih"], pt["b_hh"], h0t, c0t)
    groups = []
    for (s, e) in seq_start_end:
        xg = traj_hs[:, s:e, :]
        g0, g1 = params["gat0"], params["gat1"]
        h1 = _gat_layer_ref(xg, g0["w"], g0["a_src"], g0["a_dst"], g0["bias"], last=False)
        h2 = _gat_layer_ref(h1, g1["w"], g1["a_src"], g1["a_dst"], g1["bias"], last=True)
        groups.append(h2)
    gin = jnp.concatenate(groups, axis=1)
    pg = params["graph_lstm"]
    graph_hs = _lstm_ref(gin, pg["w_ih"], pg["w_hh"], pg["b_ih"], pg["b_hh"], h0g, c0g)
    return jnp.concatenate([traj_hs[-1], graph_hs[-1]], axis=1)


# ----------------------------- parameter init -----------------------------

def _xavier_uniform(key, shape, gain=1.414):
    if len(shape) == 3:
        fan_in, fan_out = shape[1] * shape[2], shape[0] * shape[2]
    else:
        fan_in, fan_out = shape[1], shape[0]
    bound = gain * (6.0 / (fan_in + fan_out)) ** 0.5
    return jax.random.uniform(key, shape, jnp.float32, -bound, bound)


def init_params(key, n_coordinates, add_confidence, traj_hidden, n_units, n_heads,
                graph_out_dims, graph_hidden):
    ks = list(jax.random.split(key, 16))
    p = {}

    def lstm_params(k, in_dim, hid):
        k1, k2, k3, k4 = jax.random.split(k, 4)
        return {
            "w_ih": 0.1 * jax.random.normal(k1, (4 * hid, in_dim), jnp.float32),
            "w_hh": 0.1 * jax.random.normal(k2, (4 * hid, hid), jnp.float32),
            "b_ih": 0.1 * jax.random.normal(k3, (4 * hid,), jnp.float32),
            "b_hh": 0.1 * jax.random.normal(k4, (4 * hid,), jnp.float32),
        }

    p["traj_lstm"] = lstm_params(ks[0], n_coordinates + int(add_confidence), traj_hidden)
    p["graph_lstm"] = lstm_params(ks[1], graph_out_dims, graph_hidden)

    f_in0, f_out0, h0 = n_units[0], n_units[1], n_heads[0]
    p["gat0"] = {
        "w": _xavier_uniform(ks[2], (h0, f_in0, f_out0)),
        "a_src": _xavier_uniform(ks[3], (h0, f_out0, 1)),
        "a_dst": _xavier_uniform(ks[4], (h0, f_out0, 1)),
        "bias": jnp.zeros((f_out0,), jnp.float32),
    }
    f_in1, f_out1, h1 = n_units[1] * n_heads[0], n_units[2], n_heads[1]
    p["gat1"] = {
        "w": _xavier_uniform(ks[5], (h1, f_in1, f_out1)),
        "a_src": _xavier_uniform(ks[6], (h1, f_out1, 1)),
        "a_dst": _xavier_uniform(ks[7], (h1, f_out1, 1)),
        "bias": jnp.zeros((f_out1,), jnp.float32),
    }
    return p


# ----------------------------- main -----------------------------

if __name__ == "__main__":
    obs_len = 8
    n_coordinates = 2
    add_confidence = True
    traj_lstm_hidden_size = 32
    graph_network_out_dims = 32
    graph_lstm_hidden_size = 32
    n_units = [traj_lstm_hidden_size, 16, graph_network_out_dims]
    n_heads = [4, 1]
    num_peds = 6
    seq_start_end = ((0, 3), (3, 6))  # static python ints (graph groups)

    key = jax.random.PRNGKey(0)
    kp, kx, kh1, kc1, kh2, kc2 = jax.random.split(key, 6)

    params = init_params(kp, n_coordinates, add_confidence, traj_lstm_hidden_size,
                         n_units, n_heads, graph_network_out_dims, graph_lstm_hidden_size)

    obs_traj_rel = jax.random.normal(
        kx, (obs_len, num_peds, n_coordinates + int(add_confidence)), jnp.float32)

    # Encoder.init_hidden_* uses torch.randn; passed explicitly here.
    h0_traj = jax.random.normal(kh1, (num_peds, traj_lstm_hidden_size), jnp.float32)
    c0_traj = jax.random.normal(kc1, (num_peds, traj_lstm_hidden_size), jnp.float32)
    h0_graph = jax.random.normal(kh2, (num_peds, graph_lstm_hidden_size), jnp.float32)
    c0_graph = jax.random.normal(kc2, (num_peds, graph_lstm_hidden_size), jnp.float32)

    fwd = jax.jit(functools.partial(encoder_forward, seq_start_end=seq_start_end))
    out = jax.block_until_ready(
        fwd(params, obs_traj_rel, h0_traj, c0_traj, h0_graph, c0_graph))

    ref = _encoder_ref(params, obs_traj_rel, seq_start_end,
                       h0_traj, c0_traj, h0_graph, c0_graph)

    assert out.shape == (num_peds, traj_lstm_hidden_size + graph_lstm_hidden_size), out.shape
    assert bool(jnp.all(jnp.isfinite(out)))
    assert bool(jnp.allclose(out, ref, atol=1e-3, rtol=1e-3)), (
        "mismatch vs pure-JAX reference")

    print("KERNEL_OK")
</pallas_src>

<mosaic_0001>
module attributes {stable_mosaic.version = 11 : i64} {
  func.func @kernel(%arg0: memref<64x8xf32, #tpu.memory_space<vmem>>, %arg1: memref<112x128xf32, #tpu.memory_space<vmem>>, %arg2: memref<104x128xf32, #tpu.memory_space<vmem>>, %arg3: memref<64x64xf32, #tpu.memory_space<vmem>>, %arg4: memref<32x32xf32, #tpu.memory_space<vmem>>, %arg5: memref<8x64xf32, #tpu.memory_space<vmem>>, %arg6: memref<64x32xf32, #tpu.memory_space<vmem>>, %arg7: memref<64x64xf32, #tpu.memory_space<vmem>>) attributes {dimension_semantics = [], scalar_prefetch = 0 : i64, scratch_operands = 2 : i64, tpu.core_type = #tpu.core_type<tc>} {
    %c0 = arith.constant 0 : index
    %c0_0 = arith.constant 0 : index
    %0 = vector.load %arg1[%c0, %c0_0] : memref<112x128xf32, #tpu.memory_space<vmem>>, vector<8x128xf32>
    %c8 = arith.constant 8 : index
    %c0_1 = arith.constant 0 : index
    %1 = vector.load %arg1[%c8, %c0_1] : memref<112x128xf32, #tpu.memory_space<vmem>>, vector<32x128xf32>
    %c40 = arith.constant 40 : index
    %c0_2 = arith.constant 0 : index
    %2 = vector.load %arg1[%c40, %c0_2] : memref<112x128xf32, #tpu.memory_space<vmem>>, vector<32x128xf32>
    %c72 = arith.constant 72 : index
    %c0_3 = arith.constant 0 : index
    %3 = vector.load %arg1[%c72, %c0_3] : memref<112x128xf32, #tpu.memory_space<vmem>>, vector<32x128xf32>
    %c104 = arith.constant 104 : index
    %c0_4 = arith.constant 0 : index
    %4 = vector.load %arg1[%c104, %c0_4] : memref<112x128xf32, #tpu.memory_space<vmem>>, vector<1x128xf32>
    %c0_5 = arith.constant 0 : index
    %c0_6 = arith.constant 0 : index
    %5 = vector.load %arg3[%c0_5, %c0_6] : memref<64x64xf32, #tpu.memory_space<vmem>>, vector<64x64xf32>
    %cst = arith.constant 0.000000e+00 : f32
    %6 = vector.broadcast %cst : f32 to vector<64x64xf32>
    %7 = arith.cmpf ogt, %5, %6 : vector<64x64xf32>
    %cst_7 = arith.constant 0.000000e+00 : f32
    %cst_8 = arith.constant -1.000000e+30 : f32
    %8 = vector.broadcast %cst_7 : f32 to vector<64x64xf32>
    %9 = vector.broadcast %cst_8 : f32 to vector<64x64xf32>
    %10 = arith.select %7, %8, %9 : vector<64x64xi1>, vector<64x64xf32>
    %c0_9 = arith.constant 0 : index
    %c0_10 = arith.constant 0 : index
    %11 = vector.load %arg4[%c0_9, %c0_10] : memref<32x32xf32, #tpu.memory_space<vmem>>, vector<8x32xf32>
    %c8_11 = arith.constant 8 : index
    %c0_12 = arith.constant 0 : index
    %12 = vector.load %arg4[%c8_11, %c0_12] : memref<32x32xf32, #tpu.memory_space<vmem>>, vector<8x32xf32>
    %c16 = arith.constant 16 : index
    %c0_13 = arith.constant 0 : index
    %13 = vector.load %arg4[%c16, %c0_13] : memref<32x32xf32, #tpu.memory_space<vmem>>, vector<8x32xf32>
    %c24 = arith.constant 24 : index
    %c0_14 = arith.constant 0 : index
    %14 = vector.load %arg4[%c24, %c0_14] : memref<32x32xf32, #tpu.memory_space<vmem>>, vector<8x32xf32>
    %c0_15 = arith.constant 0 : index
    %c0_16 = arith.constant 0 : index
    %15 = vector.load %arg0[%c0_15, %c0_16] : memref<64x8xf32, #tpu.memory_space<vmem>>, vector<64x8xf32>
    %cst_17 = arith.constant dense<0.000000e+00> : vector<64x128xf32>
    %16 = tpu.matmul %15, %0, %cst_17 {dimension_numbers = #tpu.dot_dimension_numbers<[1], [0], [0], [1], [0, 0, 1, 1], [], []>} : vector<64x8xf32>, vector<8x128xf32>, vector<64x128xf32> -> vector<64x128xf32>
    %17 = vector.extract_strided_slice %16 {offsets = [0, 0], sizes = [8, 128], strides = [1, 1]} : vector<64x128xf32> to vector<8x128xf32>
    %cst_18 = arith.constant dense<0.000000e+00> : vector<8x128xf32>
    %18 = tpu.matmul %11, %1, %cst_18 {dimension_numbers = #tpu.dot_dimension_numbers<[1], [0], [0], [1], [0, 0, 1, 1], [], []>} : vector<8x32xf32>, vector<32x128xf32>, vector<8x128xf32> -> vector<8x128xf32>
    %19 = arith.addf %17, %18 : vector<8x128xf32>
    %20 = vector.extract_strided_slice %19 {offsets = [0, 0], sizes = [8, 32], strides = [1, 1]} : vector<8x128xf32> to vector<8x32xf32>
    %cst_19 = arith.constant 6.000000e+00 : f32
    %21 = vector.broadcast %cst_19 : f32 to vector<8x32xf32>
    %22 = arith.divf %20, %21 : vector<8x32xf32>
    %cst_20 = arith.constant 5.000000e-01 : f32
    %23 = vector.broadcast %cst_20 : f32 to vector<8x32xf32>
    %24 = arith.addf %22, %23 : vector<8x32xf32>
    %cst_21 = arith.constant 0.000000e+00 : f32
    %cst_22 = arith.constant 1.000000e+00 : f32
    %25 = vector.broadcast %cst_21 : f32 to vector<8x32xf32>
    %26 = arith.maximumf %25, %24 : vector<8x32xf32>
    %27 = vector.broadcast %cst_22 : f32 to vector<8x32xf32>
    %28 = arith.minimumf %27, %26 : vector<8x32xf32>
    %29 = vector.extract_strided_slice %19 {offsets = [0, 32], sizes = [8, 32], strides = [1, 1]} : vector<8x128xf32> to vector<8x32xf32>
    %cst_23 = arith.constant 6.000000e+00 : f32
    %30 = vector.broadcast %cst_23 : f32 to vector<8x32xf32>
    %31 = arith.divf %29, %30 : vector<8x32xf32>
    %cst_24 = arith.constant 5.000000e-01 : f32
    %32 = vector.broadcast %cst_24 : f32 to vector<8x32xf32>
    %33 = arith.addf %31, %32 : vector<8x32xf32>
    %cst_25 = arith.constant 0.000000e+00 : f32
    %cst_26 = arith.constant 1.000000e+00 : f32
    %34 = vector.broadcast %cst_25 : f32 to vector<8x32xf32>
    %35 = arith.maximumf %34, %33 : vector<8x32xf32>
    %36 = vector.broadcast %cst_26 : f32 to vector<8x32xf32>
    %37 = arith.minimumf %36, %35 : vector<8x32xf32>
    %38 = vector.extract_strided_slice %19 {offsets = [0, 64], sizes = [8, 32], strides = [1, 1]} : vector<8x128xf32> to vector<8x32xf32>
    %cst_27 = arith.constant -1.000000e+00 : f32
    %cst_28 = arith.constant 1.000000e+00 : f32
    %39 = vector.broadcast %cst_27 : f32 to vector<8x32xf32>
    %40 = arith.maximumf %39, %38 : vector<8x32xf32>
    %41 = vector.broadcast %cst_28 : f32 to vector<8x32xf32>
    %42 = arith.minimumf %41, %40 : vector<8x32xf32>
    %43 = vector.extract_strided_slice %19 {offsets = [0, 96], sizes = [8, 32], strides = [1, 1]} : vector<8x128xf32> to vector<8x32xf32>
    %cst_29 = arith.constant 6.000000e+00 : f32
    %44 = vector.broadcast %cst_29 : f32 to vector<8x32xf32>
    %45 = arith.divf %43, %44 : vector<8x32xf32>
    %cst_30 = arith.constant 5.000000e-01 : f32
    %46 = vector.broadcast %cst_30 : f32 to vector<8x32xf32>
    %47 = arith.addf %45, %46 : vector<8x32xf32>
    %cst_31 = arith.constant 0.000000e+00 : f32
    %cst_32 = arith.constant 1.000000e+00 : f32
    %48 = vector.broadcast %cst_31 : f32 to vector<8x32xf32>
    %49 = arith.maximumf %48, %47 : vector<8x32xf32>
    %50 = vector.broadcast %cst_32 : f32 to vector<8x32xf32>
    %51 = arith.minimumf %50, %49 : vector<8x32xf32>
    %52 = arith.mulf %37, %12 : vector<8x32xf32>
    %53 = arith.mulf %28, %42 : vector<8x32xf32>
    %54 = arith.addf %52, %53 : vector<8x32xf32>
    %cst_33 = arith.constant -1.000000e+00 : f32
    %cst_34 = arith.constant 1.000000e+00 : f32
    %55 = vector.broadcast %cst_33 : f32 to vector<8x32xf32>
    %56 = arith.maximumf %55, %54 : vector<8x32xf32>
    %57 = vector.broadcast %cst_34 : f32 to vector<8x32xf32>
    %58 = arith.minimumf %57, %56 : vector<8x32xf32>
    %59 = arith.mulf %51, %58 : vector<8x32xf32>
    %c0_35 = arith.constant 0 : index
    %c0_36 = arith.constant 0 : index
    %60 = vector.load %arg6[%c0_35, %c0_36] : memref<64x32xf32, #tpu.memory_space<vmem>>, vector<8x32xf32>
    tpu.vector_store %arg6[%c0_35, %c0_36], %59 {strides = array<i32>} : memref<64x32xf32, #tpu.memory_space<vmem>>, vector<8x32xf32>,
    %61 = vector.extract_strided_slice %16 {offsets = [8, 0], sizes = [8, 128], strides = [1, 1]} : vector<64x128xf32> to vector<8x128xf32>
    %cst_37 = arith.constant dense<0.000000e+00> : vector<8x128xf32>
    %62 = tpu.matmul %59, %1, %cst_37 {dimension_numbers = #tpu.dot_dimension_numbers<[1], [0], [0], [1], [0, 0, 1, 1], [], []>} : vector<8x32xf32>, vector<32x128xf32>, vector<8x128xf32> -> vector<8x128xf32>
    %63 = arith.addf %61, %62 : vector<8x128xf32>
    %64 = vector.extract_strided_slice %63 {offsets = [0, 0], sizes = [8, 32], strides = [1, 1]} : vector<8x128xf32> to vector<8x32xf32>
    %cst_38 = arith.constant 6.000000e+00 : f32
    %65 = vector.broadcast %cst_38 : f32 to vector<8x32xf32>
    %66 = arith.divf %64, %65 : vector<8x32xf32>
    %cst_39 = arith.constant 5.000000e-01 : f32
    %67 = vector.broadcast %cst_39 : f32 to vector<8x32xf32>
    %68 = arith.addf %66, %67 : vector<8x32xf32>
    %cst_40 = arith.constant 0.000000e+00 : f32
    %cst_41 = arith.constant 1.000000e+00 : f32
    %69 = vector.broadcast %cst_40 : f32 to vector<8x32xf32>
    %70 = arith.maximumf %69, %68 : vector<8x32xf32>
    %71 = vector.broadcast %cst_41 : f32 to vector<8x32xf32>
    %72 = arith.minimumf %71, %70 : vector<8x32xf32>
    %73 = vector.extract_strided_slice %63 {offsets = [0, 32], sizes = [8, 32], strides = [1, 1]} : vector<8x128xf32> to vector<8x32xf32>
    %cst_42 = arith.constant 6.000000e+00 : f32
    %74 = vector.broadcast %cst_42 : f32 to vector<8x32xf32>
    %75 = arith.divf %73, %74 : vector<8x32xf32>
    %cst_43 = arith.constant 5.000000e-01 : f32
    %76 = vector.broadcast %cst_43 : f32 to vector<8x32xf32>
    %77 = arith.addf %75, %76 : vector<8x32xf32>
    %cst_44 = arith.constant 0.000000e+00 : f32
    %cst_45 = arith.constant 1.000000e+00 : f32
    %78 = vector.broadcast %cst_44 : f32 to vector<8x32xf32>
    %79 = arith.maximumf %78, %77 : vector<8x32xf32>
    %80 = vector.broadcast %cst_45 : f32 to vector<8x32xf32>
    %81 = arith.minimumf %80, %79 : vector<8x32xf32>
    %82 = vector.extract_strided_slice %63 {offsets = [0, 64], sizes = [8, 32], strides = [1, 1]} : vector<8x128xf32> to vector<8x32xf32>
    %cst_46 = arith.constant -1.000000e+00 : f32
    %cst_47 = arith.constant 1.000000e+00 : f32
    %83 = vector.broadcast %cst_46 : f32 to vector<8x32xf32>
    %84 = arith.maximumf %83, %82 : vector<8x32xf32>
    %85 = vector.broadcast %cst_47 : f32 to vector<8x32xf32>
    %86 = arith.minimumf %85, %84 : vector<8x32xf32>
    %87 = vector.extract_strided_slice %63 {offsets = [0, 96], sizes = [8, 32], strides = [1, 1]} : vector<8x128xf32> to vector<8x32xf32>
    %cst_48 = arith.constant 6.000000e+00 : f32
    %88 = vector.broadcast %cst_48 : f32 to vector<8x32xf32>
    %89 = arith.divf %87, %88 : vector<8x32xf32>
    %cst_49 = arith.constant 5.000000e-01 : f32
    %90 = vector.broadcast %cst_49 : f32 to vector<8x32xf32>
    %91 = arith.addf %89, %90 : vector<8x32xf32>
    %cst_50 = arith.constant 0.000000e+00 : f32
    %cst_51 = arith.constant 1.000000e+00 : f32
    %92 = vector.broadcast %cst_50 : f32 to vector<8x32xf32>
    %93 = arith.maximumf %92, %91 : vector<8x32xf32>
    %94 = vector.broadcast %cst_51 : f32 to vector<8x32xf32>
    %95 = arith.minimumf %94, %93 : vector<8x32xf32>
    %96 = arith.mulf %81, %54 : vector<8x32xf32>
    %97 = arith.mulf %72, %86 : vector<8x32xf32>
    %98 = arith.addf %96, %97 : vector<8x32xf32>
    %cst_52 = arith.constant -1.000000e+00 : f32
    %cst_53 = arith.constant 1.000000e+00 : f32
    %99 = vector.broadcast %cst_52 : f32 to vector<8x32xf32>
    %100 = arith.maximumf %99, %98 : vector<8x32xf32>
    %101 = vector.broadcast %cst_53 : f32 to vector<8x32xf32>
    %102 = arith.minimumf %101, %100 : vector<8x32xf32>
    %103 = arith.mulf %95, %102 : vector<8x32xf32>
    %c8_54 = arith.constant 8 : index
    %c0_55 = arith.constant 0 : index
    %104 = vector.load %arg6[%c8_54, %c0_55] : memref<64x32xf32, #tpu.memory_space<vmem>>, vector<8x32xf32>
    tpu.vector_store %arg6[%c8_54, %c0_55], %103 {strides = array<i32>} : memref<64x32xf32, #tpu.memory_space<vmem>>, vector<8x32xf32>,
    %105 = vector.extract_strided_slice %16 {offsets = [16, 0], sizes = [8, 128], strides = [1, 1]} : vector<64x128xf32> to vector<8x128xf32>
    %cst_56 = arith.constant dense<0.000000e+00> : vector<8x128xf32>
    %106 = tpu.matmul %103, %1, %cst_56 {dimension_numbers = #tpu.dot_dimension_numbers<[1], [0], [0], [1], [0, 0, 1, 1], [], []>} : vector<8x32xf32>, vector<32x128xf32>, vector<8x128xf32> -> vector<8x128xf32>
    %107 = arith.addf %105, %106 : vector<8x128xf32>
    %108 = vector.extract_strided_slice %107 {offsets = [0, 0], sizes = [8, 32], strides = [1, 1]} : vector<8x128xf32> to vector<8x32xf32>
    %cst_57 = arith.constant 6.000000e+00 : f32
    %109 = vector.broadcast %cst_57 : f32 to vector<8x32xf32>
    %110 = arith.divf %108, %109 : vector<8x32xf32>
    %cst_58 = arith.constant 5.000000e-01 : f32
    %111 = vector.broadcast %cst_58 : f32 to vector<8x32xf32>
    %112 = arith.addf %110, %111 : vector<8x32xf32>
    %cst_59 = arith.constant 0.000000e+00 : f32
    %cst_60 = arith.constant 1.000000e+00 : f32
    %113 = vector.broadcast %cst_59 : f32 to vector<8x32xf32>
    %114 = arith.maximumf %113, %112 : vector<8x32xf32>
    %115 = vector.broadcast %cst_60 : f32 to vector<8x32xf32>
    %116 = arith.minimumf %115, %114 : vector<8x32xf32>
    %117 = vector.extract_strided_slice %107 {offsets = [0, 32], sizes = [8, 32], strides = [1, 1]} : vector<8x128xf32> to vector<8x32xf32>
    %cst_61 = arith.constant 6.000000e+00 : f32
    %118 = vector.broadcast %cst_61 : f32 to vector<8x32xf32>
    %119 = arith.divf %117, %118 : vector<8x32xf32>
    %cst_62 = arith.constant 5.000000e-01 : f32
    %120 = vector.broadcast %cst_62 : f32 to vector<8x32xf32>
    %121 = arith.addf %119, %120 : vector<8x32xf32>
    %cst_63 = arith.constant 0.000000e+00 : f32
    %cst_64 = arith.constant 1.000000e+00 : f32
    %122 = vector.broadcast %cst_63 : f32 to vector<8x32xf32>
    %123 = arith.maximumf %122, %121 : vector<8x32xf32>
    %124 = vector.broadcast %cst_64 : f32 to vector<8x32xf32>
    %125 = arith.minimumf %124, %123 : vector<8x32xf32>
    %126 = vector.extract_strided_slice %107 {offsets = [0, 64], sizes = [8, 32], strides = [1, 1]} : vector<8x128xf32> to vector<8x32xf32>
    %cst_65 = arith.constant -1.000000e+00 : f32
    %cst_66 = arith.constant 1.000000e+00 : f32
    %127 = vector.broadcast %cst_65 : f32 to vector<8x32xf32>
    %128 = arith.maximumf %127, %126 : vector<8x32xf32>
    %129 = vector.broadcast %cst_66 : f32 to vector<8x32xf32>
    %130 = arith.minimumf %129, %128 : vector<8x32xf32>
    %131 = vector.extract_strided_slice %107 {offsets = [0, 96], sizes = [8, 32], strides = [1, 1]} : vector<8x128xf32> to vector<8x32xf32>
    %cst_67 = arith.constant 6.000000e+00 : f32
    %132 = vector.broadcast %cst_67 : f32 to vector<8x32xf32>
    %133 = arith.divf %131, %132 : vector<8x32xf32>
    %cst_68 = arith.constant 5.000000e-01 : f32
    %134 = vector.broadcast %cst_68 : f32 to vector<8x32xf32>
    %135 = arith.addf %133, %134 : vector<8x32xf32>
    %cst_69 = arith.constant 0.000000e+00 : f32
    %cst_70 = arith.constant 1.000000e+00 : f32
    %136 = vector.broadcast %cst_69 : f32 to vector<8x32xf32>
    %137 = arith.maximumf %136, %135 : vector<8x32xf32>
    %138 = vector.broadcast %cst_70 : f32 to vector<8x32xf32>
    %139 = arith.minimumf %138, %137 : vector<8x32xf32>
    %140 = arith.mulf %125, %98 : vector<8x32xf32>
    %141 = arith.mulf %116, %130 : vector<8x32xf32>
    %142 = arith.addf %140, %141 : vector<8x32xf32>
    %cst_71 = arith.constant -1.000000e+00 : f32
    %cst_72 = arith.constant 1.000000e+00 : f32
    %143 = vector.broadcast %cst_71 : f32 to vector<8x32xf32>
    %144 = arith.maximumf %143, %142 : vector<8x32xf32>
    %145 = vector.broadcast %cst_72 : f32 to vector<8x32xf32>
    %146 = arith.minimumf %145, %144 : vector<8x32xf32>
    %147 = arith.mulf %139, %146 : vector<8x32xf32>
    %c16_73 = arith.constant 16 : index
    %c0_74 = arith.constant 0 : index
    %148 = vector.load %arg6[%c16_73, %c0_74] : memref<64x32xf32, #tpu.memory_space<vmem>>, vector<8x32xf32>
    tpu.vector_store %arg6[%c16_73, %c0_74], %147 {strides = array<i32>} : memref<64x32xf32, #tpu.memory_space<vmem>>, vector<8x32xf32>,
    %149 = vector.extract_strided_slice %16 {offsets = [24, 0], sizes = [8, 128], strides = [1, 1]} : vector<64x128xf32> to vector<8x128xf32>
    %cst_75 = arith.constant dense<0.000000e+00> : vector<8x128xf32>
    %150 = tpu.matmul %147, %1, %cst_75 {dimension_numbers = #tpu.dot_dimension_numbers<[1], [0], [0], [1], [0, 0, 1, 1], [], []>} : vector<8x32xf32>, vector<32x128xf32>, vector<8x128xf32> -> vector<8x128xf32>
    %151 = arith.addf %149, %150 : vector<8x128xf32>
    %152 = vector.extract_strided_slice %151 {offsets = [0, 0], sizes = [8, 32], strides = [1, 1]} : vector<8x128xf32> to vector<8x32xf32>
    %cst_76 = arith.constant 6.000000e+00 : f32
    %153 = vector.broadcast %cst_76 : f32 to vector<8x32xf32>
    %154 = arith.divf %152, %153 : vector<8x32xf32>
    %cst_77 = arith.constant 5.000000e-01 : f32
    %155 = vector.broadcast %cst_77 : f32 to vector<8x32xf32>
    %156 = arith.addf %154, %155 : vector<8x32xf32>
    %cst_78 = arith.constant 0.000000e+00 : f32
    %cst_79 = arith.constant 1.000000e+00 : f32
    %157 = vector.broadcast %cst_78 : f32 to vector<8x32xf32>
    %158 = arith.maximumf %157, %156 : vector<8x32xf32>
    %159 = vector.broadcast %cst_79 : f32 to vector<8x32xf32>
    %160 = arith.minimumf %159, %158 : vector<8x32xf32>
    %161 = vector.extract_strided_slice %151 {offsets = [0, 32], sizes = [8, 32], strides = [1, 1]} : vector<8x128xf32> to vector<8x32xf32>
    %cst_80 = arith.constant 6.000000e+00 : f32
    %162 = vector.broadcast %cst_80 : f32 to vector<8x32xf32>
    %163 = arith.divf %161, %162 : vector<8x32xf32>
    %cst_81 = arith.constant 5.000000e-01 : f32
    %164 = vector.broadcast %cst_81 : f32 to vector<8x32xf32>
    %165 = arith.addf %163, %164 : vector<8x32xf32>
    %cst_82 = arith.constant 0.000000e+00 : f32
    %cst_83 = arith.constant 1.000000e+00 : f32
    %166 = vector.broadcast %cst_82 : f32 to vector<8x32xf32>
    %167 = arith.maximumf %166, %165 : vector<8x32xf32>
    %168 = vector.broadcast %cst_83 : f32 to vector<8x32xf32>
    %169 = arith.minimumf %168, %167 : vector<8x32xf32>
    %170 = vector.extract_strided_slice %151 {offsets = [0, 64], sizes = [8, 32], strides = [1, 1]} : vector<8x128xf32> to vector<8x32xf32>
    %cst_84 = arith.constant -1.000000e+00 : f32
    %cst_85 = arith.constant 1.000000e+00 : f32
    %171 = vector.broadcast %cst_84 : f32 to vector<8x32xf32>
    %172 = arith.maximumf %171, %170 : vector<8x32xf32>
    %173 = vector.broadcast %cst_85 : f32 to vector<8x32xf32>
    %174 = arith.minimumf %173, %172 : vector<8x32xf32>
    %175 = vector.extract_strided_slice %151 {offsets = [0, 96], sizes = [8, 32], strides = [1, 1]} : vector<8x128xf32> to vector<8x32xf32>
    %cst_86 = arith.constant 6.000000e+00 : f32
    %176 = vector.broadcast %cst_86 : f32 to vector<8x32xf32>
    %177 = arith.divf %175, %176 : vector<8x32xf32>
    %cst_87 = arith.constant 5.000000e-01 : f32
    %178 = vector.broadcast %cst_87 : f32 to vector<8x32xf32>
    %179 = arith.addf %177, %178 : vector<8x32xf32>
    %cst_88 = arith.constant 0.000000e+00 : f32
    %cst_89 = arith.constant 1.000000e+00 : f32
    %180 = vector.broadcast %cst_88 : f32 to vector<8x32xf32>
    %181 = arith.maximumf %180, %179 : vector<8x32xf32>
    %182 = vector.broadcast %cst_89 : f32 to vector<8x32xf32>
    %183 = arith.minimumf %182, %181 : vector<8x32xf32>
    %184 = arith.mulf %169, %142 : vector<8x32xf32>
    %185 = arith.mulf %160, %174 : vector<8x32xf32>
    %186 = arith.addf %184, %185 : vector<8x32xf32>
    %cst_90 = arith.constant -1.000000e+00 : f32
    %cst_91 = arith.constant 1.000000e+00 : f32
    %187 = vector.broadcast %cst_90 : f32 to vector<8x32xf32>
    %188 = arith.maximumf %187, %186 : vector<8x32xf32>
    %189 = vector.broadcast %cst_91 : f32 to vector<8x32xf32>
    %190 = arith.minimumf %189, %188 : vector<8x32xf32>
    %191 = arith.mulf %183, %190 : vector<8x32xf32>
    %c24_92 = arith.constant 24 : index
    %c0_93 = arith.constant 0 : index
    %192 = vector.load %arg6[%c24_92, %c0_93] : memref<64x32xf32, #tpu.memory_space<vmem>>, vector<8x32xf32>
    tpu.vector_store %arg6[%c24_92, %c0_93], %191 {strides = array<i32>} : memref<64x32xf32, #tpu.memory_space<vmem>>, vector<8x32xf32>,
    %193 = vector.extract_strided_slice %16 {offsets = [32, 0], sizes = [8, 128], strides = [1, 1]} : vector<64x128xf32> to vector<8x128xf32>
    %cst_94 = arith.constant dense<0.000000e+00> : vector<8x128xf32>
    %194 = tpu.matmul %191, %1, %cst_94 {dimension_numbers = #tpu.dot_dimension_numbers<[1], [0], [0], [1], [0, 0, 1, 1], [], []>} : vector<8x32xf32>, vector<32x128xf32>, vector<8x128xf32> -> vector<8x128xf32>
    %195 = arith.addf %193, %194 : vector<8x128xf32>
    %196 = vector.extract_strided_slice %195 {offsets = [0, 0], sizes = [8, 32], strides = [1, 1]} : vector<8x128xf32> to vector<8x32xf32>
    %cst_95 = arith.constant 6.000000e+00 : f32
    %197 = vector.broadcast %cst_95 : f32 to vector<8x32xf32>
    %198 = arith.divf %196, %197 : vector<8x32xf32>
    %cst_96 = arith.constant 5.000000e-01 : f32
    %199 = vector.broadcast %cst_96 : f32 to vector<8x32xf32>
    %200 = arith.addf %198, %199 : vector<8x32xf32>
    %cst_97 = arith.constant 0.000000e+00 : f32
    %cst_98 = arith.constant 1.000000e+00 : f32
    %201 = vector.broadcast %cst_97 : f32 to vector<8x32xf32>
    %202 = arith.maximumf %201, %200 : vector<8x32xf32>
    %203 = vector.broadcast %cst_98 : f32 to vector<8x32xf32>
    %204 = arith.minimumf %203, %202 : vector<8x32xf32>
    %205 = vector.extract_strided_slice %195 {offsets = [0, 32], sizes = [8, 32], strides = [1, 1]} : vector<8x128xf32> to vector<8x32xf32>
    %cst_99 = arith.constant 6.000000e+00 : f32
    %206 = vector.broadcast %cst_99 : f32 to vector<8x32xf32>
    %207 = arith.divf %205, %206 : vector<8x32xf32>
    %cst_100 = arith.constant 5.000000e-01 : f32
    %208 = vector.broadcast %cst_100 : f32 to vector<8x32xf32>
    %209 = arith.addf %207, %208 : vector<8x32xf32>
    %cst_101 = arith.constant 0.000000e+00 : f32
    %cst_102 = arith.constant 1.000000e+00 : f32
    %210 = vector.broadcast %cst_101 : f32 to vector<8x32xf32>
    %211 = arith.maximumf %210, %209 : vector<8x32xf32>
    %212 = vector.broadcast %cst_102 : f32 to vector<8x32xf32>
    %213 = arith.minimumf %212, %211 : vector<8x32xf32>
    %214 = vector.extract_strided_slice %195 {offsets = [0, 64], sizes = [8, 32], strides = [1, 1]} : vector<8x128xf32> to vector<8x32xf32>
    %cst_103 = arith.constant -1.000000e+00 : f32
    %cst_104 = arith.constant 1.000000e+00 : f32
    %215 = vector.broadcast %cst_103 : f32 to vector<8x32xf32>
    %216 = arith.maximumf %215, %214 : vector<8x32xf32>
    %217 = vector.broadcast %cst_104 : f32 to vector<8x32xf32>
    %218 = arith.minimumf %217, %216 : vector<8x32xf32>
    %219 = vector.extract_strided_slice %195 {offsets = [0, 96], sizes = [8, 32], strides = [1, 1]} : vector<8x128xf32> to vector<8x32xf32>
    %cst_105 = arith.constant 6.000000e+00 : f32
    %220 = vector.broadcast %cst_105 : f32 to vector<8x32xf32>
    %221 = arith.divf %219, %220 : vector<8x32xf32>
    %cst_106 = arith.constant 5.000000e-01 : f32
    %222 = vector.broadcast %cst_106 : f32 to vector<8x32xf32>
    %223 = arith.addf %221, %222 : vector<8x32xf32>
    %cst_107 = arith.constant 0.000000e+00 : f32
    %cst_108 = arith.constant 1.000000e+00 : f32
    %224 = vector.broadcast %cst_107 : f32 to vector<8x32xf32>
    %225 = arith.maximumf %224, %223 : vector<8x32xf32>
    %226 = vector.broadcast %cst_108 : f32 to vector<8x32xf32>
    %227 = arith.minimumf %226, %225 : vector<8x32xf32>
    %228 = arith.mulf %213, %186 : vector<8x32xf32>
    %229 = arith.mulf %204, %218 : vector<8x32xf32>
    %230 = arith.addf %228, %229 : vector<8x32xf32>
    %cst_109 = arith.constant -1.000000e+00 : f32
    %cst_110 = arith.constant 1.000000e+00 : f32
    %231 = vector.broadcast %cst_109 : f32 to vector<8x32xf32>
    %232 = arith.maximumf %231, %230 : vector<8x32xf32>
    %233 = vector.broadcast %cst_110 : f32 to vector<8x32xf32>
    %234 = arith.minimumf %233, %232 : vector<8x32xf32>
    %235 = arith.mulf %227, %234 : vector<8x32xf32>
    %c32 = arith.constant 32 : index
    %c0_111 = arith.constant 0 : index
    %236 = vector.load %arg6[%c32, %c0_111] : memref<64x32xf32, #tpu.memory_space<vmem>>, vector<8x32xf32>
    tpu.vector_store %arg6[%c32, %c0_111], %235 {strides = array<i32>} : memref<64x32xf32, #tpu.memory_space<vmem>>, vector<8x32xf32>,
    %237 = vector.extract_strided_slice %16 {offsets = [40, 0], sizes = [8, 128], strides = [1, 1]} : vector<64x128xf32> to vector<8x128xf32>
    %cst_112 = arith.constant dense<0.000000e+00> : vector<8x128xf32>
    %238 = tpu.matmul %235, %1, %cst_112 {dimension_numbers = #tpu.dot_dimension_numbers<[1], [0], [0], [1], [0, 0, 1, 1], [], []>} : vector<8x32xf32>, vector<32x128xf32>, vector<8x128xf32> -> vector<8x128xf32>
    %239 = arith.addf %237, %238 : vector<8x128xf32>
    %240 = vector.extract_strided_slice %239 {offsets = [0, 0], sizes = [8, 32], strides = [1, 1]} : vector<8x128xf32> to vector<8x32xf32>
    %cst_113 = arith.constant 6.000000e+00 : f32
    %241 = vector.broadcast %cst_113 : f32 to vector<8x32xf32>
    %242 = arith.divf %240, %241 : vector<8x32xf32>
    %cst_114 = arith.constant 5.000000e-01 : f32
    %243 = vector.broadcast %cst_114 : f32 to vector<8x32xf32>
    %244 = arith.addf %242, %243 : vector<8x32xf32>
    %cst_115 = arith.constant 0.000000e+00 : f32
    %cst_116 = arith.constant 1.000000e+00 : f32
    %245 = vector.broadcast %cst_115 : f32 to vector<8x32xf32>
    %246 = arith.maximumf %245, %244 : vector<8x32xf32>
    %247 = vector.broadcast %cst_116 : f32 to vector<8x32xf32>
    %248 = arith.minimumf %247, %246 : vector<8x32xf32>
    %249 = vector.extract_strided_slice %239 {offsets = [0, 32], sizes = [8, 32], strides = [1, 1]} : vector<8x128xf32> to vector<8x32xf32>
    %cst_117 = arith.constant 6.000000e+00 : f32
    %250 = vector.broadcast %cst_117 : f32 to vector<8x32xf32>
    %251 = arith.divf %249, %250 : vector<8x32xf32>
    %cst_118 = arith.constant 5.000000e-01 : f32
    %252 = vector.broadcast %cst_118 : f32 to vector<8x32xf32>
    %253 = arith.addf %251, %252 : vector<8x32xf32>
    %cst_119 = arith.constant 0.000000e+00 : f32
    %cst_120 = arith.constant 1.000000e+00 : f32
    %254 = vector.broadcast %cst_119 : f32 to vector<8x32xf32>
    %255 = arith.maximumf %254, %253 : vector<8x32xf32>
    %256 = vector.broadcast %cst_120 : f32 to vector<8x32xf32>
    %257 = arith.minimumf %256, %255 : vector<8x32xf32>
    %258 = vector.extract_strided_slice %239 {offsets = [0, 64], sizes = [8, 32], strides = [1, 1]} : vector<8x128xf32> to vector<8x32xf32>
    %cst_121 = arith.constant -1.000000e+00 : f32
    %cst_122 = arith.constant 1.000000e+00 : f32
    %259 = vector.broadcast %cst_121 : f32 to vector<8x32xf32>
    %260 = arith.maximumf %259, %258 : vector<8x32xf32>
    %261 = vector.broadcast %cst_122 : f32 to vector<8x32xf32>
    %262 = arith.minimumf %261, %260 : vector<8x32xf32>
    %263 = vector.extract_strided_slice %239 {offsets = [0, 96], sizes = [8, 32], strides = [1, 1]} : vector<8x128xf32> to vector<8x32xf32>
    %cst_123 = arith.constant 6.000000e+00 : f32
    %264 = vector.broadcast %cst_123 : f32 to vector<8x32xf32>
    %265 = arith.divf %263, %264 : vector<8x32xf32>
    %cst_124 = arith.constant 5.000000e-01 : f32
    %266 = vector.broadcast %cst_124 : f32 to vector<8x32xf32>
    %267 = arith.addf %265, %266 : vector<8x32xf32>
    %cst_125 = arith.constant 0.000000e+00 : f32
    %cst_126 = arith.constant 1.000000e+00 : f32
    %268 = vector.broadcast %cst_125 : f32 to vector<8x32xf32>
    %269 = arith.maximumf %268, %267 : vector<8x32xf32>
    %270 = vector.broadcast %cst_126 : f32 to vector<8x32xf32>
    %271 = arith.minimumf %270, %269 : vector<8x32xf32>
    %272 = arith.mulf %257, %230 : vector<8x32xf32>
    %273 = arith.mulf %248, %262 : vector<8x32xf32>
    %274 = arith.addf %272, %273 : vector<8x32xf32>
    %cst_127 = arith.constant -1.000000e+00 : f32
    %cst_128 = arith.constant 1.000000e+00 : f32
    %275 = vector.broadcast %cst_127 : f32 to vector<8x32xf32>
    %276 = arith.maximumf %275, %274 : vector<8x32xf32>
    %277 = vector.broadcast %cst_128 : f32 to vector<8x32xf32>
    %278 = arith.minimumf %277, %276 : vector<8x32xf32>
    %279 = arith.mulf %271, %278 : vector<8x32xf32>
    %c40_129 = arith.constant 40 : index
    %c0_130 = arith.constant 0 : index
    %280 = vector.load %arg6[%c40_129, %c0_130] : memref<64x32xf32, #tpu.memory_space<vmem>>, vector<8x32xf32>
    tpu.vector_store %arg6[%c40_129, %c0_130], %279 {strides = array<i32>} : memref<64x32xf32, #tpu.memory_space<vmem>>, vector<8x32xf32>,
    %281 = vector.extract_strided_slice %16 {offsets = [48, 0], sizes = [8, 128], strides = [1, 1]} : vector<64x128xf32> to vector<8x128xf32>
    %cst_131 = arith.constant dense<0.000000e+00> : vector<8x128xf32>
    %282 = tpu.matmul %279, %1, %cst_131 {dimension_numbers = #tpu.dot_dimension_numbers<[1], [0], [0], [1], [0, 0, 1, 1], [], []>} : vector<8x32xf32>, vector<32x128xf32>, vector<8x128xf32> -> vector<8x128xf32>
    %283 = arith.addf %281, %282 : vector<8x128xf32>
    %284 = vector.extract_strided_slice %283 {offsets = [0, 0], sizes = [8, 32], strides = [1, 1]} : vector<8x128xf32> to vector<8x32xf32>
    %cst_132 = arith.constant 6.000000e+00 : f32
    %285 = vector.broadcast %cst_132 : f32 to vector<8x32xf32>
    %286 = arith.divf %284, %285 : vector<8x32xf32>
    %cst_133 = arith.constant 5.000000e-01 : f32
    %287 = vector.broadcast %cst_133 : f32 to vector<8x32xf32>
    %288 = arith.addf %286, %287 : vector<8x32xf32>
    %cst_134 = arith.constant 0.000000e+00 : f32
    %cst_135 = arith.constant 1.000000e+00 : f32
    %289 = vector.broadcast %cst_134 : f32 to vector<8x32xf32>
    %290 = arith.maximumf %289, %288 : vector<8x32xf32>
    %291 = vector.broadcast %cst_135 : f32 to vector<8x32xf32>
    %292 = arith.minimumf %291, %290 : vector<8x32xf32>
    %293 = vector.extract_strided_slice %283 {offsets = [0, 32], sizes = [8, 32], strides = [1, 1]} : vector<8x128xf32> to vector<8x32xf32>
    %cst_136 = arith.constant 6.000000e+00 : f32
    %294 = vector.broadcast %cst_136 : f32 to vector<8x32xf32>
    %295 = arith.divf %293, %294 : vector<8x32xf32>
    %cst_137 = arith.constant 5.000000e-01 : f32
    %296 = vector.broadcast %cst_137 : f32 to vector<8x32xf32>
    %297 = arith.addf %295, %296 : vector<8x32xf32>
    %cst_138 = arith.constant 0.000000e+00 : f32
    %cst_139 = arith.constant 1.000000e+00 : f32
    %298 = vector.broadcast %cst_138 : f32 to vector<8x32xf32>
    %299 = arith.maximumf %298, %297 : vector<8x32xf32>
    %300 = vector.broadcast %cst_139 : f32 to vector<8x32xf32>
    %301 = arith.minimumf %300, %299 : vector<8x32xf32>
    %302 = vector.extract_strided_slice %283 {offsets = [0, 64], sizes = [8, 32], strides = [1, 1]} : vector<8x128xf32> to vector<8x32xf32>
    %cst_140 = arith.constant -1.000000e+00 : f32
    %cst_141 = arith.constant 1.000000e+00 : f32
    %303 = vector.broadcast %cst_140 : f32 to vector<8x32xf32>
    %304 = arith.maximumf %303, %302 : vector<8x32xf32>
    %305 = vector.broadcast %cst_141 : f32 to vector<8x32xf32>
    %306 = arith.minimumf %305, %304 : vector<8x32xf32>
    %307 = vector.extract_strided_slice %283 {offsets = [0, 96], sizes = [8, 32], strides = [1, 1]} : vector<8x128xf32> to vector<8x32xf32>
    %cst_142 = arith.constant 6.000000e+00 : f32
    %308 = vector.broadcast %cst_142 : f32 to vector<8x32xf32>
    %309 = arith.divf %307, %308 : vector<8x32xf32>
    %cst_143 = arith.constant 5.000000e-01 : f32
    %310 = vector.broadcast %cst_143 : f32 to vector<8x32xf32>
    %311 = arith.addf %309, %310 : vector<8x32xf32>
    %cst_144 = arith.constant 0.000000e+00 : f32
    %cst_145 = arith.constant 1.000000e+00 : f32
    %312 = vector.broadcast %cst_144 : f32 to vector<8x32xf32>
    %313 = arith.maximumf %312, %311 : vector<8x32xf32>
    %314 = vector.broadcast %cst_145 : f32 to vector<8x32xf32>
    %315 = arith.minimumf %314, %313 : vector<8x32xf32>
    %316 = arith.mulf %301, %274 : vector<8x32xf32>
    %317 = arith.mulf %292, %306 : vector<8x32xf32>
    %318 = arith.addf %316, %317 : vector<8x32xf32>
    %cst_146 = arith.constant -1.000000e+00 : f32
    %cst_147 = arith.constant 1.000000e+00 : f32
    %319 = vector.broadcast %cst_146 : f32 to vector<8x32xf32>
    %320 = arith.maximumf %319, %318 : vector<8x32xf32>
    %321 = vector.broadcast %cst_147 : f32 to vector<8x32xf32>
    %322 = arith.minimumf %321, %320 : vector<8x32xf32>
    %323 = arith.mulf %315, %322 : vector<8x32xf32>
    %c48 = arith.constant 48 : index
    %c0_148 = arith.constant 0 : index
    %324 = vector.load %arg6[%c48, %c0_148] : memref<64x32xf32, #tpu.memory_space<vmem>>, vector<8x32xf32>
    tpu.vector_store %arg6[%c48, %c0_148], %323 {strides = array<i32>} : memref<64x32xf32, #tpu.memory_space<vmem>>, vector<8x32xf32>,
    %325 = vector.extract_strided_slice %16 {offsets = [56, 0], sizes = [8, 128], strides = [1, 1]} : vector<64x128xf32> to vector<8x128xf32>
    %cst_149 = arith.constant dense<0.000000e+00> : vector<8x128xf32>
    %326 = tpu.matmul %323, %1, %cst_149 {dimension_numbers = #tpu.dot_dimension_numbers<[1], [0], [0], [1], [0, 0, 1, 1], [], []>} : vector<8x32xf32>, vector<32x128xf32>, vector<8x128xf32> -> vector<8x128xf32>
    %327 = arith.addf %325, %326 : vector<8x128xf32>
    %328 = vector.extract_strided_slice %327 {offsets = [0, 0], sizes = [8, 32], strides = [1, 1]} : vector<8x128xf32> to vector<8x32xf32>
    %cst_150 = arith.constant 6.000000e+00 : f32
    %329 = vector.broadcast %cst_150 : f32 to vector<8x32xf32>
    %330 = arith.divf %328, %329 : vector<8x32xf32>
    %cst_151 = arith.constant 5.000000e-01 : f32
    %331 = vector.broadcast %cst_151 : f32 to vector<8x32xf32>
    %332 = arith.addf %330, %331 : vector<8x32xf32>
    %cst_152 = arith.constant 0.000000e+00 : f32
    %cst_153 = arith.constant 1.000000e+00 : f32
    %333 = vector.broadcast %cst_152 : f32 to vector<8x32xf32>
    %334 = arith.maximumf %333, %332 : vector<8x32xf32>
    %335 = vector.broadcast %cst_153 : f32 to vector<8x32xf32>
    %336 = arith.minimumf %335, %334 : vector<8x32xf32>
    %337 = vector.extract_strided_slice %327 {offsets = [0, 32], sizes = [8, 32], strides = [1, 1]} : vector<8x128xf32> to vector<8x32xf32>
    %cst_154 = arith.constant 6.000000e+00 : f32
    %338 = vector.broadcast %cst_154 : f32 to vector<8x32xf32>
    %339 = arith.divf %337, %338 : vector<8x32xf32>
    %cst_155 = arith.constant 5.000000e-01 : f32
    %340 = vector.broadcast %cst_155 : f32 to vector<8x32xf32>
    %341 = arith.addf %339, %340 : vector<8x32xf32>
    %cst_156 = arith.constant 0.000000e+00 : f32
    %cst_157 = arith.constant 1.000000e+00 : f32
    %342 = vector.broadcast %cst_156 : f32 to vector<8x32xf32>
    %343 = arith.maximumf %342, %341 : vector<8x32xf32>
    %344 = vector.broadcast %cst_157 : f32 to vector<8x32xf32>
    %345 = arith.minimumf %344, %343 : vector<8x32xf32>
    %346 = vector.extract_strided_slice %327 {offsets = [0, 64], sizes = [8, 32], strides = [1, 1]} : vector<8x128xf32> to vector<8x32xf32>
    %cst_158 = arith.constant -1.000000e+00 : f32
    %cst_159 = arith.constant 1.000000e+00 : f32
    %347 = vector.broadcast %cst_158 : f32 to vector<8x32xf32>
    %348 = arith.maximumf %347, %346 : vector<8x32xf32>
    %349 = vector.broadcast %cst_159 : f32 to vector<8x32xf32>
    %350 = arith.minimumf %349, %348 : vector<8x32xf32>
    %351 = vector.extract_strided_slice %327 {offsets = [0, 96], sizes = [8, 32], strides = [1, 1]} : vector<8x128xf32> to vector<8x32xf32>
    %cst_160 = arith.constant 6.000000e+00 : f32
    %352 = vector.broadcast %cst_160 : f32 to vector<8x32xf32>
    %353 = arith.divf %351, %352 : vector<8x32xf32>
    %cst_161 = arith.constant 5.000000e-01 : f32
    %354 = vector.broadcast %cst_161 : f32 to vector<8x32xf32>
    %355 = arith.addf %353, %354 : vector<8x32xf32>
    %cst_162 = arith.constant 0.000000e+00 : f32
    %cst_163 = arith.constant 1.000000e+00 : f32
    %356 = vector.broadcast %cst_162 : f32 to vector<8x32xf32>
    %357 = arith.maximumf %356, %355 : vector<8x32xf32>
    %358 = vector.broadcast %cst_163 : f32 to vector<8x32xf32>
    %359 = arith.minimumf %358, %357 : vector<8x32xf32>
    %360 = arith.mulf %345, %318 : vector<8x32xf32>
    %361 = arith.mulf %336, %350 : vector<8x32xf32>
    %362 = arith.addf %360, %361 : vector<8x32xf32>
    %cst_164 = arith.constant -1.000000e+00 : f32
    %cst_165 = arith.constant 1.000000e+00 : f32
    %363 = vector.broadcast %cst_164 : f32 to vector<8x32xf32>
    %364 = arith.maximumf %363, %362 : vector<8x32xf32>
    %365 = vector.broadcast %cst_165 : f32 to vector<8x32xf32>
    %366 = arith.minimumf %365, %364 : vector<8x32xf32>
    %367 = arith.mulf %359, %366 : vector<8x32xf32>
    %c56 = arith.constant 56 : index
    %c0_166 = arith.constant 0 : index
    %368 = vector.load %arg6[%c56, %c0_166] : memref<64x32xf32, #tpu.memory_space<vmem>>, vector<8x32xf32>
    tpu.vector_store %arg6[%c56, %c0_166], %367 {strides = array<i32>} : memref<64x32xf32, #tpu.memory_space<vmem>>, vector<8x32xf32>,
    %c0_167 = arith.constant 0 : index
    %c0_168 = arith.constant 0 : index
    %369 = vector.load %arg6[%c0_167, %c0_168] : memref<64x32xf32, #tpu.memory_space<vmem>>, vector<64x32xf32>
    %cst_169 = arith.constant dense<0.000000e+00> : vector<64x32xf32>
    %370 = tpu.matmul %5, %369, %cst_169 {dimension_numbers = #tpu.dot_dimension_numbers<[1], [0], [0], [1], [0, 0, 1, 1], [], []>} : vector<64x64xf32>, vector<64x32xf32>, vector<64x32xf32> -> vector<64x32xf32>
    %371 = arith.subf %369, %370 : vector<64x32xf32>
    %372 = arith.mulf %371, %371 : vector<64x32xf32>
    %cst_170 = arith.constant dense<0.000000e+00> : vector<64x32xf32>
    %373 = tpu.matmul %5, %372, %cst_170 {dimension_numbers = #tpu.dot_dimension_numbers<[1], [0], [0], [1], [0, 0, 1, 1], [], []>} : vector<64x64xf32>, vector<64x32xf32>, vector<64x32xf32> -> vector<64x32xf32>
    %cst_171 = arith.constant 9.99999974E-6 : f32
    %374 = vector.broadcast %cst_171 : f32 to vector<64x32xf32>
    %375 = arith.addf %373, %374 : vector<64x32xf32>
    %376 = math.rsqrt %375 : vector<64x32xf32>
    %377 = arith.mulf %371, %376 : vector<64x32xf32>
    %c0_172 = arith.constant 0 : index
    %c0_173 = arith.constant 0 : index
    %378 = vector.load %arg2[%c0_172, %c0_173] : memref<104x128xf32, #tpu.memory_space<vmem>>, vector<32x128xf32>
    %cst_174 = arith.constant dense<0.000000e+00> : vector<64x128xf32>
    %379 = tpu.matmul %377, %378, %cst_174 {dimension_numbers = #tpu.dot_dimension_numbers<[1], [0], [0], [1], [0, 0, 1, 1], [], []>} : vector<64x32xf32>, vector<32x128xf32>, vector<64x128xf32> -> vector<64x128xf32>
    %380 = vector.extract_strided_slice %379 {offsets = [0, 64], sizes = [64, 4], strides = [1, 1]} : vector<64x128xf32> to vector<64x4xf32>
    %381 = vector.extract_strided_slice %379 {offsets = [0, 68], sizes = [64, 4], strides = [1, 1]} : vector<64x128xf32> to vector<64x4xf32>
    %382 = tpu.transpose %381, [1, 0] : vector<64x4xf32> -> vector<4x64xf32>
    %383 = vector.extract_strided_slice %380 {offsets = [0, 0], sizes = [64, 1], strides = [1, 1]} : vector<64x4xf32> to vector<64x1xf32>
    %384 = vector.extract_strided_slice %382 {offsets = [0, 0], sizes = [1, 64], strides = [1, 1]} : vector<4x64xf32> to vector<1x64xf32>
    %385 = vector.extract_strided_slice %379 {offsets = [0, 0], sizes = [64, 16], strides = [1, 1]} : vector<64x128xf32> to vector<64x16xf32>
    %386 = vector.broadcast %383 : vector<64x1xf32> to vector<64x64xf32>
    %387 = vector.broadcast %384 : vector<1x64xf32> to vector<64x64xf32>
    %388 = arith.addf %386, %387 : vector<64x64xf32>
    %cst_175 = arith.constant 0.000000e+00 : f32
    %389 = vector.broadcast %cst_175 : f32 to vector<64x64xf32>
    %390 = arith.cmpf oge, %388, %389 : vector<64x64xf32>
    %cst_176 = arith.constant 2.000000e-01 : f32
    %391 = vector.broadcast %cst_176 : f32 to vector<64x64xf32>
    %392 = arith.mulf %391, %388 : vector<64x64xf32>
    %393 = arith.select %390, %388, %392 : vector<64x64xi1>, vector<64x64xf32>
    %394 = arith.addf %393, %10 : vector<64x64xf32>
    %cst_177 = arith.constant dense<0xFF800000> : vector<64xf32>
    %395 = vector.multi_reduction <maximumf>, %394, %cst_177 [1] : vector<64x64xf32> to vector<64xf32>
    %396 = vector.shape_cast %395 : vector<64xf32> to vector<64x1xf32>
    %397 = vector.broadcast %396 : vector<64x1xf32> to vector<64x64xf32>
    %398 = arith.subf %394, %397 : vector<64x64xf32>
    %399 = math.exp %398 : vector<64x64xf32>
    %cst_178 = arith.constant dense<0.000000e+00> : vector<64xf32>
    %400 = vector.multi_reduction <add>, %399, %cst_178 [1] : vector<64x64xf32> to vector<64xf32>
    %401 = vector.shape_cast %400 : vector<64xf32> to vector<64x1xf32>
    %cst_179 = arith.constant dense<0.000000e+00> : vector<64x16xf32>
    %402 = tpu.matmul %399, %385, %cst_179 {dimension_numbers = #tpu.dot_dimension_numbers<[1], [0], [0], [1], [0, 0, 1, 1], [], []>} : vector<64x64xf32>, vector<64x16xf32>, vector<64x16xf32> -> vector<64x16xf32>
    %403 = tpu.reciprocal %401 {approx = true} : vector<64x1xf32> -> vector<64x1xf32>
    %404 = arith.mulf %401, %403 : vector<64x1xf32>
    %cst_180 = arith.constant 2.000000e+00 : f32
    %405 = vector.broadcast %cst_180 : f32 to vector<64x1xf32>
    %406 = arith.subf %405, %404 : vector<64x1xf32>
    %407 = arith.mulf %403, %406 : vector<64x1xf32>
    %408 = vector.broadcast %407 : vector<64x1xf32> to vector<64x16xf32>
    %409 = arith.mulf %402, %408 : vector<64x16xf32>
    %c0_181 = arith.constant 0 : index
    %c0_182 = arith.constant 0 : index
    %410 = vector.load %arg7[%c0_181, %c0_182] : memref<64x64xf32, #tpu.memory_space<vmem>>, vector<64x16xf32>
    tpu.vector_store %arg7[%c0_181, %c0_182], %409 {strides = array<i32>} : memref<64x64xf32, #tpu.memory_space<vmem>>, vector<64x16xf32>,
    %411 = vector.extract_strided_slice %380 {offsets = [0, 1], sizes = [64, 1], strides = [1, 1]} : vector<64x4xf32> to vector<64x1xf32>
    %412 = vector.extract_strided_slice %382 {offsets = [1, 0], sizes = [1, 64], strides = [1, 1]} : vector<4x64xf32> to vector<1x64xf32>
    %413 = vector.extract_strided_slice %379 {offsets = [0, 16], sizes = [64, 16], strides = [1, 1]} : vector<64x128xf32> to vector<64x16xf32>
    %414 = vector.broadcast %411 : vector<64x1xf32> to vector<64x64xf32>
    %415 = vector.broadcast %412 : vector<1x64xf32> to vector<64x64xf32>
    %416 = arith.addf %414, %415 : vector<64x64xf32>
    %cst_183 = arith.constant 0.000000e+00 : f32
    %417 = vector.broadcast %cst_183 : f32 to vector<64x64xf32>
    %418 = arith.cmpf oge, %416, %417 : vector<64x64xf32>
    %cst_184 = arith.constant 2.000000e-01 : f32
    %419 = vector.broadcast %cst_184 : f32 to vector<64x64xf32>
    %420 = arith.mulf %419, %416 : vector<64x64xf32>
    %421 = arith.select %418, %416, %420 : vector<64x64xi1>, vector<64x64xf32>
    %422 = arith.addf %421, %10 : vector<64x64xf32>
    %cst_185 = arith.constant dense<0xFF800000> : vector<64xf32>
    %423 = vector.multi_reduction <maximumf>, %422, %cst_185 [1] : vector<64x64xf32> to vector<64xf32>
    %424 = vector.shape_cast %423 : vector<64xf32> to vector<64x1xf32>
    %425 = vector.broadcast %424 : vector<64x1xf32> to vector<64x64xf32>
    %426 = arith.subf %422, %425 : vector<64x64xf32>
    %427 = math.exp %426 : vector<64x64xf32>
    %cst_186 = arith.constant dense<0.000000e+00> : vector<64xf32>
    %428 = vector.multi_reduction <add>, %427, %cst_186 [1] : vector<64x64xf32> to vector<64xf32>
    %429 = vector.shape_cast %428 : vector<64xf32> to vector<64x1xf32>
    %cst_187 = arith.constant dense<0.000000e+00> : vector<64x16xf32>
    %430 = tpu.matmul %427, %413, %cst_187 {dimension_numbers = #tpu.dot_dimension_numbers<[1], [0], [0], [1], [0, 0, 1, 1], [], []>} : vector<64x64xf32>, vector<64x16xf32>, vector<64x16xf32> -> vector<64x16xf32>
    %431 = tpu.reciprocal %429 {approx = true} : vector<64x1xf32> -> vector<64x1xf32>
    %432 = arith.mulf %429, %431 : vector<64x1xf32>
    %cst_188 = arith.constant 2.000000e+00 : f32
    %433 = vector.broadcast %cst_188 : f32 to vector<64x1xf32>
    %434 = arith.subf %433, %432 : vector<64x1xf32>
    %435 = arith.mulf %431, %434 : vector<64x1xf32>
    %436 = vector.broadcast %435 : vector<64x1xf32> to vector<64x16xf32>
    %437 = arith.mulf %430, %436 : vector<64x16xf32>
    %c0_189 = arith.constant 0 : index
    %c16_190 = arith.constant 16 : index
    %438 = vector.load %arg7[%c0_189, %c16_190] : memref<64x64xf32, #tpu.memory_space<vmem>>, vector<64x16xf32>
    tpu.vector_store %arg7[%c0_189, %c16_190], %437 {strides = array<i32>} : memref<64x64xf32, #tpu.memory_space<vmem>>, vector<64x16xf32>,
    %439 = vector.extract_strided_slice %380 {offsets = [0, 2], sizes = [64, 1], strides = [1, 1]} : vector<64x4xf32> to vector<64x1xf32>
    %440 = vector.extract_strided_slice %382 {offsets = [2, 0], sizes = [1, 64], strides = [1, 1]} : vector<4x64xf32> to vector<1x64xf32>
    %441 = vector.extract_strided_slice %379 {offsets = [0, 32], sizes = [64, 16], strides = [1, 1]} : vector<64x128xf32> to vector<64x16xf32>
    %442 = vector.broadcast %439 : vector<64x1xf32> to vector<64x64xf32>
    %443 = vector.broadcast %440 : vector<1x64xf32> to vector<64x64xf32>
    %444 = arith.addf %442, %443 : vector<64x64xf32>
    %cst_191 = arith.constant 0.000000e+00 : f32
    %445 = vector.broadcast %cst_191 : f32 to vector<64x64xf32>
    %446 = arith.cmpf oge, %444, %445 : vector<64x64xf32>
    %cst_192 = arith.constant 2.000000e-01 : f32
    %447 = vector.broadcast %cst_192 : f32 to vector<64x64xf32>
    %448 = arith.mulf %447, %444 : vector<64x64xf32>
    %449 = arith.select %446, %444, %448 : vector<64x64xi1>, vector<64x64xf32>
    %450 = arith.addf %449, %10 : vector<64x64xf32>
    %cst_193 = arith.constant dense<0xFF800000> : vector<64xf32>
    %451 = vector.multi_reduction <maximumf>, %450, %cst_193 [1] : vector<64x64xf32> to vector<64xf32>
    %452 = vector.shape_cast %451 : vector<64xf32> to vector<64x1xf32>
    %453 = vector.broadcast %452 : vector<64x1xf32> to vector<64x64xf32>
    %454 = arith.subf %450, %453 : vector<64x64xf32>
    %455 = math.exp %454 : vector<64x64xf32>
    %cst_194 = arith.constant dense<0.000000e+00> : vector<64xf32>
    %456 = vector.multi_reduction <add>, %455, %cst_194 [1] : vector<64x64xf32> to vector<64xf32>
    %457 = vector.shape_cast %456 : vector<64xf32> to vector<64x1xf32>
    %cst_195 = arith.constant dense<0.000000e+00> : vector<64x16xf32>
    %458 = tpu.matmul %455, %441, %cst_195 {dimension_numbers = #tpu.dot_dimension_numbers<[1], [0], [0], [1], [0, 0, 1, 1], [], []>} : vector<64x64xf32>, vector<64x16xf32>, vector<64x16xf32> -> vector<64x16xf32>
    %459 = tpu.reciprocal %457 {approx = true} : vector<64x1xf32> -> vector<64x1xf32>
    %460 = arith.mulf %457, %459 : vector<64x1xf32>
    %cst_196 = arith.constant 2.000000e+00 : f32
    %461 = vector.broadcast %cst_196 : f32 to vector<64x1xf32>
    %462 = arith.subf %461, %460 : vector<64x1xf32>
    %463 = arith.mulf %459, %462 : vector<64x1xf32>
    %464 = vector.broadcast %463 : vector<64x1xf32> to vector<64x16xf32>
    %465 = arith.mulf %458, %464 : vector<64x16xf32>
    %c0_197 = arith.constant 0 : index
    %c32_198 = arith.constant 32 : index
    %466 = vector.load %arg7[%c0_197, %c32_198] : memref<64x64xf32, #tpu.memory_space<vmem>>, vector<64x16xf32>
    tpu.vector_store %arg7[%c0_197, %c32_198], %465 {strides = array<i32>} : memref<64x64xf32, #tpu.memory_space<vmem>>, vector<64x16xf32>,
    %467 = vector.extract_strided_slice %380 {offsets = [0, 3], sizes = [64, 1], strides = [1, 1]} : vector<64x4xf32> to vector<64x1xf32>
    %468 = vector.extract_strided_slice %382 {offsets = [3, 0], sizes = [1, 64], strides = [1, 1]} : vector<4x64xf32> to vector<1x64xf32>
    %469 = vector.extract_strided_slice %379 {offsets = [0, 48], sizes = [64, 16], strides = [1, 1]} : vector<64x128xf32> to vector<64x16xf32>
    %470 = vector.broadcast %467 : vector<64x1xf32> to vector<64x64xf32>
    %471 = vector.broadcast %468 : vector<1x64xf32> to vector<64x64xf32>
    %472 = arith.addf %470, %471 : vector<64x64xf32>
    %cst_199 = arith.constant 0.000000e+00 : f32
    %473 = vector.broadcast %cst_199 : f32 to vector<64x64xf32>
    %474 = arith.cmpf oge, %472, %473 : vector<64x64xf32>
    %cst_200 = arith.constant 2.000000e-01 : f32
    %475 = vector.broadcast %cst_200 : f32 to vector<64x64xf32>
    %476 = arith.mulf %475, %472 : vector<64x64xf32>
    %477 = arith.select %474, %472, %476 : vector<64x64xi1>, vector<64x64xf32>
    %478 = arith.addf %477, %10 : vector<64x64xf32>
    %cst_201 = arith.constant dense<0xFF800000> : vector<64xf32>
    %479 = vector.multi_reduction <maximumf>, %478, %cst_201 [1] : vector<64x64xf32> to vector<64xf32>
    %480 = vector.shape_cast %479 : vector<64xf32> to vector<64x1xf32>
    %481 = vector.broadcast %480 : vector<64x1xf32> to vector<64x64xf32>
    %482 = arith.subf %478, %481 : vector<64x64xf32>
    %483 = math.exp %482 : vector<64x64xf32>
    %cst_202 = arith.constant dense<0.000000e+00> : vector<64xf32>
    %484 = vector.multi_reduction <add>, %483, %cst_202 [1] : vector<64x64xf32> to vector<64xf32>
    %485 = vector.shape_cast %484 : vector<64xf32> to vector<64x1xf32>
    %cst_203 = arith.constant dense<0.000000e+00> : vector<64x16xf32>
    %486 = tpu.matmul %483, %469, %cst_203 {dimension_numbers = #tpu.dot_dimension_numbers<[1], [0], [0], [1], [0, 0, 1, 1], [], []>} : vector<64x64xf32>, vector<64x16xf32>, vector<64x16xf32> -> vector<64x16xf32>
    %487 = tpu.reciprocal %485 {approx = true} : vector<64x1xf32> -> vector<64x1xf32>
    %488 = arith.mulf %485, %487 : vector<64x1xf32>
    %cst_204 = arith.constant 2.000000e+00 : f32
    %489 = vector.broadcast %cst_204 : f32 to vector<64x1xf32>
    %490 = arith.subf %489, %488 : vector<64x1xf32>
    %491 = arith.mulf %487, %490 : vector<64x1xf32>
    %492 = vector.broadcast %491 : vector<64x1xf32> to vector<64x16xf32>
    %493 = arith.mulf %486, %492 : vector<64x16xf32>
    %c0_205 = arith.constant 0 : index
    %c48_206 = arith.constant 48 : index
    %494 = vector.load %arg7[%c0_205, %c48_206] : memref<64x64xf32, #tpu.memory_space<vmem>>, vector<64x16xf32>
    tpu.vector_store %arg7[%c0_205, %c48_206], %493 {strides = array<i32>} : memref<64x64xf32, #tpu.memory_space<vmem>>, vector<64x16xf32>,
    %c0_207 = arith.constant 0 : index
    %c0_208 = arith.constant 0 : index
    %495 = vector.load %arg7[%c0_207, %c0_208] : memref<64x64xf32, #tpu.memory_space<vmem>>, vector<64x64xf32>
    %c96 = arith.constant 96 : index
    %c0_209 = arith.constant 0 : index
    %496 = vector.load %arg2[%c96, %c0_209] : memref<104x128xf32, #tpu.memory_space<vmem>>, vector<1x64xf32>
    %497 = vector.broadcast %496 : vector<1x64xf32> to vector<64x64xf32>
    %498 = arith.addf %495, %497 : vector<64x64xf32>
    %cst_210 = arith.constant 0.000000e+00 : f32
    %499 = vector.broadcast %cst_210 : f32 to vector<64x64xf32>
    %500 = arith.cmpf ogt, %498, %499 : vector<64x64xf32>
    %cst_211 = arith.constant 0.000000e+00 : f32
    %501 = vector.broadcast %cst_211 : f32 to vector<64x64xf32>
    %502 = arith.minimumf %498, %501 : vector<64x64xf32>
    %503 = math.exp %502 : vector<64x64xf32>
    %cst_212 = arith.constant 1.000000e+00 : f32
    %504 = vector.broadcast %cst_212 : f32 to vector<64x64xf32>
    %505 = arith.subf %503, %504 : vector<64x64xf32>
    %506 = arith.select %500, %498, %505 : vector<64x64xi1>, vector<64x64xf32>
    %cst_213 = arith.constant dense<0.000000e+00> : vector<64x64xf32>
    %507 = tpu.matmul %5, %506, %cst_213 {dimension_numbers = #tpu.dot_dimension_numbers<[1], [0], [0], [1], [0, 0, 1, 1], [], []>} : vector<64x64xf32>, vector<64x64xf32>, vector<64x64xf32> -> vector<64x64xf32>
    %508 = arith.subf %506, %507 : vector<64x64xf32>
    %509 = arith.mulf %508, %508 : vector<64x64xf32>
    %cst_214 = arith.constant dense<0.000000e+00> : vector<64x64xf32>
    %510 = tpu.matmul %5, %509, %cst_214 {dimension_numbers = #tpu.dot_dimension_numbers<[1], [0], [0], [1], [0, 0, 1, 1], [], []>} : vector<64x64xf32>, vector<64x64xf32>, vector<64x64xf32> -> vector<64x64xf32>
    %cst_215 = arith.constant 9.99999974E-6 : f32
    %511 = vector.broadcast %cst_215 : f32 to vector<64x64xf32>
    %512 = arith.addf %510, %511 : vector<64x64xf32>
    %513 = math.rsqrt %512 : vector<64x64xf32>
    %514 = arith.mulf %508, %513 : vector<64x64xf32>
    %c32_216 = arith.constant 32 : index
    %c0_217 = arith.constant 0 : index
    %515 = vector.load %arg2[%c32_216, %c0_217] : memref<104x128xf32, #tpu.memory_space<vmem>>, vector<64x128xf32>
    %cst_218 = arith.constant dense<0.000000e+00> : vector<64x128xf32>
    %516 = tpu.matmul %514, %515, %cst_218 {dimension_numbers = #tpu.dot_dimension_numbers<[1], [0], [0], [1], [0, 0, 1, 1], [], []>} : vector<64x64xf32>, vector<64x128xf32>, vector<64x128xf32> -> vector<64x128xf32>
    %517 = vector.extract_strided_slice %516 {offsets = [0, 32], sizes = [64, 1], strides = [1, 1]} : vector<64x128xf32> to vector<64x1xf32>
    %518 = vector.extract_strided_slice %516 {offsets = [0, 33], sizes = [64, 1], strides = [1, 1]} : vector<64x128xf32> to vector<64x1xf32>
    %519 = tpu.transpose %518, [1, 0] : vector<64x1xf32> -> vector<1x64xf32>
    %520 = vector.extract_strided_slice %516 {offsets = [0, 0], sizes = [64, 32], strides = [1, 1]} : vector<64x128xf32> to vector<64x32xf32>
    %521 = vector.broadcast %517 : vector<64x1xf32> to vector<64x64xf32>
    %522 = vector.broadcast %519 : vector<1x64xf32> to vector<64x64xf32>
    %523 = arith.addf %521, %522 : vector<64x64xf32>
    %cst_219 = arith.constant 0.000000e+00 : f32
    %524 = vector.broadcast %cst_219 : f32 to vector<64x64xf32>
    %525 = arith.cmpf oge, %523, %524 : vector<64x64xf32>
    %cst_220 = arith.constant 2.000000e-01 : f32
    %526 = vector.broadcast %cst_220 : f32 to vector<64x64xf32>
    %527 = arith.mulf %526, %523 : vector<64x64xf32>
    %528 = arith.select %525, %523, %527 : vector<64x64xi1>, vector<64x64xf32>
    %529 = arith.addf %528, %10 : vector<64x64xf32>
    %cst_221 = arith.constant dense<0xFF800000> : vector<64xf32>
    %530 = vector.multi_reduction <maximumf>, %529, %cst_221 [1] : vector<64x64xf32> to vector<64xf32>
    %531 = vector.shape_cast %530 : vector<64xf32> to vector<64x1xf32>
    %532 = vector.broadcast %531 : vector<64x1xf32> to vector<64x64xf32>
    %533 = arith.subf %529, %532 : vector<64x64xf32>
    %534 = math.exp %533 : vector<64x64xf32>
    %cst_222 = arith.constant dense<0.000000e+00> : vector<64xf32>
    %535 = vector.multi_reduction <add>, %534, %cst_222 [1] : vector<64x64xf32> to vector<64xf32>
    %536 = vector.shape_cast %535 : vector<64xf32> to vector<64x1xf32>
    %cst_223 = arith.constant dense<0.000000e+00> : vector<64x32xf32>
    %537 = tpu.matmul %534, %520, %cst_223 {dimension_numbers = #tpu.dot_dimension_numbers<[1], [0], [0], [1], [0, 0, 1, 1], [], []>} : vector<64x64xf32>, vector<64x32xf32>, vector<64x32xf32> -> vector<64x32xf32>
    %538 = tpu.reciprocal %536 {approx = true} : vector<64x1xf32> -> vector<64x1xf32>
    %539 = arith.mulf %536, %538 : vector<64x1xf32>
    %cst_224 = arith.constant 2.000000e+00 : f32
    %540 = vector.broadcast %cst_224 : f32 to vector<64x1xf32>
    %541 = arith.subf %540, %539 : vector<64x1xf32>
    %542 = arith.mulf %538, %541 : vector<64x1xf32>
    %543 = vector.broadcast %542 : vector<64x1xf32> to vector<64x32xf32>
    %544 = arith.mulf %537, %543 : vector<64x32xf32>
    %cst_225 = arith.constant dense<0.000000e+00> : vector<64x128xf32>
    %545 = tpu.matmul %544, %2, %cst_225 {dimension_numbers = #tpu.dot_dimension_numbers<[1], [0], [0], [1], [0, 0, 1, 1], [], []>} : vector<64x32xf32>, vector<32x128xf32>, vector<64x128xf32> -> vector<64x128xf32>
    %546 = vector.broadcast %4 : vector<1x128xf32> to vector<64x128xf32>
    %547 = arith.addf %545, %546 : vector<64x128xf32>
    %548 = vector.extract_strided_slice %547 {offsets = [0, 0], sizes = [8, 128], strides = [1, 1]} : vector<64x128xf32> to vector<8x128xf32>
    %cst_226 = arith.constant dense<0.000000e+00> : vector<8x128xf32>
    %549 = tpu.matmul %13, %3, %cst_226 {dimension_numbers = #tpu.dot_dimension_numbers<[1], [0], [0], [1], [0, 0, 1, 1], [], []>} : vector<8x32xf32>, vector<32x128xf32>, vector<8x128xf32> -> vector<8x128xf32>
    %550 = arith.addf %548, %549 : vector<8x128xf32>
    %551 = vector.extract_strided_slice %550 {offsets = [0, 0], sizes = [8, 32], strides = [1, 1]} : vector<8x128xf32> to vector<8x32xf32>
    %cst_227 = arith.constant 6.000000e+00 : f32
    %552 = vector.broadcast %cst_227 : f32 to vector<8x32xf32>
    %553 = arith.divf %551, %552 : vector<8x32xf32>
    %cst_228 = arith.constant 5.000000e-01 : f32
    %554 = vector.broadcast %cst_228 : f32 to vector<8x32xf32>
    %555 = arith.addf %553, %554 : vector<8x32xf32>
    %cst_229 = arith.constant 0.000000e+00 : f32
    %cst_230 = arith.constant 1.000000e+00 : f32
    %556 = vector.broadcast %cst_229 : f32 to vector<8x32xf32>
    %557 = arith.maximumf %556, %555 : vector<8x32xf32>
    %558 = vector.broadcast %cst_230 : f32 to vector<8x32xf32>
    %559 = arith.minimumf %558, %557 : vector<8x32xf32>
    %560 = vector.extract_strided_slice %550 {offsets = [0, 32], sizes = [8, 32], strides = [1, 1]} : vector<8x128xf32> to vector<8x32xf32>
    %cst_231 = arith.constant 6.000000e+00 : f32
    %561 = vector.broadcast %cst_231 : f32 to vector<8x32xf32>
    %562 = arith.divf %560, %561 : vector<8x32xf32>
    %cst_232 = arith.constant 5.000000e-01 : f32
    %563 = vector.broadcast %cst_232 : f32 to vector<8x32xf32>
    %564 = arith.addf %562, %563 : vector<8x32xf32>
    %cst_233 = arith.constant 0.000000e+00 : f32
    %cst_234 = arith.constant 1.000000e+00 : f32
    %565 = vector.broadcast %cst_233 : f32 to vector<8x32xf32>
    %566 = arith.maximumf %565, %564 : vector<8x32xf32>
    %567 = vector.broadcast %cst_234 : f32 to vector<8x32xf32>
    %568 = arith.minimumf %567, %566 : vector<8x32xf32>
    %569 = vector.extract_strided_slice %550 {offsets = [0, 64], sizes = [8, 32], strides = [1, 1]} : vector<8x128xf32> to vector<8x32xf32>
    %cst_235 = arith.constant -1.000000e+00 : f32
    %cst_236 = arith.constant 1.000000e+00 : f32
    %570 = vector.broadcast %cst_235 : f32 to vector<8x32xf32>
    %571 = arith.maximumf %570, %569 : vector<8x32xf32>
    %572 = vector.broadcast %cst_236 : f32 to vector<8x32xf32>
    %573 = arith.minimumf %572, %571 : vector<8x32xf32>
    %574 = vector.extract_strided_slice %550 {offsets = [0, 96], sizes = [8, 32], strides = [1, 1]} : vector<8x128xf32> to vector<8x32xf32>
    %cst_237 = arith.constant 6.000000e+00 : f32
    %575 = vector.broadcast %cst_237 : f32 to vector<8x32xf32>
    %576 = arith.divf %574, %575 : vector<8x32xf32>
    %cst_238 = arith.constant 5.000000e-01 : f32
    %577 = vector.broadcast %cst_238 : f32 to vector<8x32xf32>
    %578 = arith.addf %576, %577 : vector<8x32xf32>
    %cst_239 = arith.constant 0.000000e+00 : f32
    %cst_240 = arith.constant 1.000000e+00 : f32
    %579 = vector.broadcast %cst_239 : f32 to vector<8x32xf32>
    %580 = arith.maximumf %579, %578 : vector<8x32xf32>
    %581 = vector.broadcast %cst_240 : f32 to vector<8x32xf32>
    %582 = arith.minimumf %581, %580 : vector<8x32xf32>
    %583 = arith.mulf %568, %14 : vector<8x32xf32>
    %584 = arith.mulf %559, %573 : vector<8x32xf32>
    %585 = arith.addf %583, %584 : vector<8x32xf32>
    %cst_241 = arith.constant -1.000000e+00 : f32
    %cst_242 = arith.constant 1.000000e+00 : f32
    %586 = vector.broadcast %cst_241 : f32 to vector<8x32xf32>
    %587 = arith.maximumf %586, %585 : vector<8x32xf32>
    %588 = vector.broadcast %cst_242 : f32 to vector<8x32xf32>
    %589 = arith.minimumf %588, %587 : vector<8x32xf32>
    %590 = arith.mulf %582, %589 : vector<8x32xf32>
    %591 = vector.extract_strided_slice %547 {offsets = [8, 0], sizes = [8, 128], strides = [1, 1]} : vector<64x128xf32> to vector<8x128xf32>
    %cst_243 = arith.constant dense<0.000000e+00> : vector<8x128xf32>
    %592 = tpu.matmul %590, %3, %cst_243 {dimension_numbers = #tpu.dot_dimension_numbers<[1], [0], [0], [1], [0, 0, 1, 1], [], []>} : vector<8x32xf32>, vector<32x128xf32>, vector<8x128xf32> -> vector<8x128xf32>
    %593 = arith.addf %591, %592 : vector<8x128xf32>
    %594 = vector.extract_strided_slice %593 {offsets = [0, 0], sizes = [8, 32], strides = [1, 1]} : vector<8x128xf32> to vector<8x32xf32>
    %cst_244 = arith.constant 6.000000e+00 : f32
    %595 = vector.broadcast %cst_244 : f32 to vector<8x32xf32>
    %596 = arith.divf %594, %595 : vector<8x32xf32>
    %cst_245 = arith.constant 5.000000e-01 : f32
    %597 = vector.broadcast %cst_245 : f32 to vector<8x32xf32>
    %598 = arith.addf %596, %597 : vector<8x32xf32>
    %cst_246 = arith.constant 0.000000e+00 : f32
    %cst_247 = arith.constant 1.000000e+00 : f32
    %599 = vector.broadcast %cst_246 : f32 to vector<8x32xf32>
    %600 = arith.maximumf %599, %598 : vector<8x32xf32>
    %601 = vector.broadcast %cst_247 : f32 to vector<8x32xf32>
    %602 = arith.minimumf %601, %600 : vector<8x32xf32>
    %603 = vector.extract_strided_slice %593 {offsets = [0, 32], sizes = [8, 32], strides = [1, 1]} : vector<8x128xf32> to vector<8x32xf32>
    %cst_248 = arith.constant 6.000000e+00 : f32
    %604 = vector.broadcast %cst_248 : f32 to vector<8x32xf32>
    %605 = arith.divf %603, %604 : vector<8x32xf32>
    %cst_249 = arith.constant 5.000000e-01 : f32
    %606 = vector.broadcast %cst_249 : f32 to vector<8x32xf32>
    %607 = arith.addf %605, %606 : vector<8x32xf32>
    %cst_250 = arith.constant 0.000000e+00 : f32
    %cst_251 = arith.constant 1.000000e+00 : f32
    %608 = vector.broadcast %cst_250 : f32 to vector<8x32xf32>
    %609 = arith.maximumf %608, %607 : vector<8x32xf32>
    %610 = vector.broadcast %cst_251 : f32 to vector<8x32xf32>
    %611 = arith.minimumf %610, %609 : vector<8x32xf32>
    %612 = vector.extract_strided_slice %593 {offsets = [0, 64], sizes = [8, 32], strides = [1, 1]} : vector<8x128xf32> to vector<8x32xf32>
    %cst_252 = arith.constant -1.000000e+00 : f32
    %cst_253 = arith.constant 1.000000e+00 : f32
    %613 = vector.broadcast %cst_252 : f32 to vector<8x32xf32>
    %614 = arith.maximumf %613, %612 : vector<8x32xf32>
    %615 = vector.broadcast %cst_253 : f32 to vector<8x32xf32>
    %616 = arith.minimumf %615, %614 : vector<8x32xf32>
    %617 = vector.extract_strided_slice %593 {offsets = [0, 96], sizes = [8, 32], strides = [1, 1]} : vector<8x128xf32> to vector<8x32xf32>
    %cst_254 = arith.constant 6.000000e+00 : f32
    %618 = vector.broadcast %cst_254 : f32 to vector<8x32xf32>
    %619 = arith.divf %617, %618 : vector<8x32xf32>
    %cst_255 = arith.constant 5.000000e-01 : f32
    %620 = vector.broadcast %cst_255 : f32 to vector<8x32xf32>
    %621 = arith.addf %619, %620 : vector<8x32xf32>
    %cst_256 = arith.constant 0.000000e+00 : f32
    %cst_257 = arith.constant 1.000000e+00 : f32
    %622 = vector.broadcast %cst_256 : f32 to vector<8x32xf32>
    %623 = arith.maximumf %622, %621 : vector<8x32xf32>
    %624 = vector.broadcast %cst_257 : f32 to vector<8x32xf32>
    %625 = arith.minimumf %624, %623 : vector<8x32xf32>
    %626 = arith.mulf %611, %585 : vector<8x32xf32>
    %627 = arith.mulf %602, %616 : vector<8x32xf32>
    %628 = arith.addf %626, %627 : vector<8x32xf32>
    %cst_258 = arith.constant -1.000000e+00 : f32
    %cst_259 = arith.constant 1.000000e+00 : f32
    %629 = vector.broadcast %cst_258 : f32 to vector<8x32xf32>
    %630 = arith.maximumf %629, %628 : vector<8x32xf32>
    %631 = vector.broadcast %cst_259 : f32 to vector<8x32xf32>
    %632 = arith.minimumf %631, %630 : vector<8x32xf32>
    %633 = arith.mulf %625, %632 : vector<8x32xf32>
    %634 = vector.extract_strided_slice %547 {offsets = [16, 0], sizes = [8, 128], strides = [1, 1]} : vector<64x128xf32> to vector<8x128xf32>
    %cst_260 = arith.constant dense<0.000000e+00> : vector<8x128xf32>
    %635 = tpu.matmul %633, %3, %cst_260 {dimension_numbers = #tpu.dot_dimension_numbers<[1], [0], [0], [1], [0, 0, 1, 1], [], []>} : vector<8x32xf32>, vector<32x128xf32>, vector<8x128xf32> -> vector<8x128xf32>
    %636 = arith.addf %634, %635 : vector<8x128xf32>
    %637 = vector.extract_strided_slice %636 {offsets = [0, 0], sizes = [8, 32], strides = [1, 1]} : vector<8x128xf32> to vector<8x32xf32>
    %cst_261 = arith.constant 6.000000e+00 : f32
    %638 = vector.broadcast %cst_261 : f32 to vector<8x32xf32>
    %639 = arith.divf %637, %638 : vector<8x32xf32>
    %cst_262 = arith.constant 5.000000e-01 : f32
    %640 = vector.broadcast %cst_262 : f32 to vector<8x32xf32>
    %641 = arith.addf %639, %640 : vector<8x32xf32>
    %cst_263 = arith.constant 0.000000e+00 : f32
    %cst_264 = arith.constant 1.000000e+00 : f32
    %642 = vector.broadcast %cst_263 : f32 to vector<8x32xf32>
    %643 = arith.maximumf %642, %641 : vector<8x32xf32>
    %644 = vector.broadcast %cst_264 : f32 to vector<8x32xf32>
    %645 = arith.minimumf %644, %643 : vector<8x32xf32>
    %646 = vector.extract_strided_slice %636 {offsets = [0, 32], sizes = [8, 32], strides = [1, 1]} : vector<8x128xf32> to vector<8x32xf32>
    %cst_265 = arith.constant 6.000000e+00 : f32
    %647 = vector.broadcast %cst_265 : f32 to vector<8x32xf32>
    %648 = arith.divf %646, %647 : vector<8x32xf32>
    %cst_266 = arith.constant 5.000000e-01 : f32
    %649 = vector.broadcast %cst_266 : f32 to vector<8x32xf32>
    %650 = arith.addf %648, %649 : vector<8x32xf32>
    %cst_267 = arith.constant 0.000000e+00 : f32
    %cst_268 = arith.constant 1.000000e+00 : f32
    %651 = vector.broadcast %cst_267 : f32 to vector<8x32xf32>
    %652 = arith.maximumf %651, %650 : vector<8x32xf32>
    %653 = vector.broadcast %cst_268 : f32 to vector<8x32xf32>
    %654 = arith.minimumf %653, %652 : vector<8x32xf32>
    %655 = vector.extract_strided_slice %636 {offsets = [0, 64], sizes = [8, 32], strides = [1, 1]} : vector<8x128xf32> to vector<8x32xf32>
    %cst_269 = arith.constant -1.000000e+00 : f32
    %cst_270 = arith.constant 1.000000e+00 : f32
    %656 = vector.broadcast %cst_269 : f32 to vector<8x32xf32>
    %657 = arith.maximumf %656, %655 : vector<8x32xf32>
    %658 = vector.broadcast %cst_270 : f32 to vector<8x32xf32>
    %659 = arith.minimumf %658, %657 : vector<8x32xf32>
    %660 = vector.extract_strided_slice %636 {offsets = [0, 96], sizes = [8, 32], strides = [1, 1]} : vector<8x128xf32> to vector<8x32xf32>
    %cst_271 = arith.constant 6.000000e+00 : f32
    %661 = vector.broadcast %cst_271 : f32 to vector<8x32xf32>
    %662 = arith.divf %660, %661 : vector<8x32xf32>
    %cst_272 = arith.constant 5.000000e-01 : f32
    %663 = vector.broadcast %cst_272 : f32 to vector<8x32xf32>
    %664 = arith.addf %662, %663 : vector<8x32xf32>
    %cst_273 = arith.constant 0.000000e+00 : f32
    %cst_274 = arith.constant 1.000000e+00 : f32
    %665 = vector.broadcast %cst_273 : f32 to vector<8x32xf32>
    %666 = arith.maximumf %665, %664 : vector<8x32xf32>
    %667 = vector.broadcast %cst_274 : f32 to vector<8x32xf32>
    %668 = arith.minimumf %667, %666 : vector<8x32xf32>
    %669 = arith.mulf %654, %628 : vector<8x32xf32>
    %670 = arith.mulf %645, %659 : vector<8x32xf32>
    %671 = arith.addf %669, %670 : vector<8x32xf32>
    %cst_275 = arith.constant -1.000000e+00 : f32
    %cst_276 = arith.constant 1.000000e+00 : f32
    %672 = vector.broadcast %cst_275 : f32 to vector<8x32xf32>
    %673 = arith.maximumf %672, %671 : vector<8x32xf32>
    %674 = vector.broadcast %cst_276 : f32 to vector<8x32xf32>
    %675 = arith.minimumf %674, %673 : vector<8x32xf32>
    %676 = arith.mulf %668, %675 : vector<8x32xf32>
    %677 = vector.extract_strided_slice %547 {offsets = [24, 0], sizes = [8, 128], strides = [1, 1]} : vector<64x128xf32> to vector<8x128xf32>
    %cst_277 = arith.constant dense<0.000000e+00> : vector<8x128xf32>
    %678 = tpu.matmul %676, %3, %cst_277 {dimension_numbers = #tpu.dot_dimension_numbers<[1], [0], [0], [1], [0, 0, 1, 1], [], []>} : vector<8x32xf32>, vector<32x128xf32>, vector<8x128xf32> -> vector<8x128xf32>
    %679 = arith.addf %677, %678 : vector<8x128xf32>
    %680 = vector.extract_strided_slice %679 {offsets = [0, 0], sizes = [8, 32], strides = [1, 1]} : vector<8x128xf32> to vector<8x32xf32>
    %cst_278 = arith.constant 6.000000e+00 : f32
    %681 = vector.broadcast %cst_278 : f32 to vector<8x32xf32>
    %682 = arith.divf %680, %681 : vector<8x32xf32>
    %cst_279 = arith.constant 5.000000e-01 : f32
    %683 = vector.broadcast %cst_279 : f32 to vector<8x32xf32>
    %684 = arith.addf %682, %683 : vector<8x32xf32>
    %cst_280 = arith.constant 0.000000e+00 : f32
    %cst_281 = arith.constant 1.000000e+00 : f32
    %685 = vector.broadcast %cst_280 : f32 to vector<8x32xf32>
    %686 = arith.maximumf %685, %684 : vector<8x32xf32>
    %687 = vector.broadcast %cst_281 : f32 to vector<8x32xf32>
    %688 = arith.minimumf %687, %686 : vector<8x32xf32>
    %689 = vector.extract_strided_slice %679 {offsets = [0, 32], sizes = [8, 32], strides = [1, 1]} : vector<8x128xf32> to vector<8x32xf32>
    %cst_282 = arith.constant 6.000000e+00 : f32
    %690 = vector.broadcast %cst_282 : f32 to vector<8x32xf32>
    %691 = arith.divf %689, %690 : vector<8x32xf32>
    %cst_283 = arith.constant 5.000000e-01 : f32
    %692 = vector.broadcast %cst_283 : f32 to vector<8x32xf32>
    %693 = arith.addf %691, %692 : vector<8x32xf32>
    %cst_284 = arith.constant 0.000000e+00 : f32
    %cst_285 = arith.constant 1.000000e+00 : f32
    %694 = vector.broadcast %cst_284 : f32 to vector<8x32xf32>
    %695 = arith.maximumf %694, %693 : vector<8x32xf32>
    %696 = vector.broadcast %cst_285 : f32 to vector<8x32xf32>
    %697 = arith.minimumf %696, %695 : vector<8x32xf32>
    %698 = vector.extract_strided_slice %679 {offsets = [0, 64], sizes = [8, 32], strides = [1, 1]} : vector<8x128xf32> to vector<8x32xf32>
    %cst_286 = arith.constant -1.000000e+00 : f32
    %cst_287 = arith.constant 1.000000e+00 : f32
    %699 = vector.broadcast %cst_286 : f32 to vector<8x32xf32>
    %700 = arith.maximumf %699, %698 : vector<8x32xf32>
    %701 = vector.broadcast %cst_287 : f32 to vector<8x32xf32>
    %702 = arith.minimumf %701, %700 : vector<8x32xf32>
    %703 = vector.extract_strided_slice %679 {offsets = [0, 96], sizes = [8, 32], strides = [1, 1]} : vector<8x128xf32> to vector<8x32xf32>
    %cst_288 = arith.constant 6.000000e+00 : f32
    %704 = vector.broadcast %cst_288 : f32 to vector<8x32xf32>
    %705 = arith.divf %703, %704 : vector<8x32xf32>
    %cst_289 = arith.constant 5.000000e-01 : f32
    %706 = vector.broadcast %cst_289 : f32 to vector<8x32xf32>
    %707 = arith.addf %705, %706 : vector<8x32xf32>
    %cst_290 = arith.constant 0.000000e+00 : f32
    %cst_291 = arith.constant 1.000000e+00 : f32
    %708 = vector.broadcast %cst_290 : f32 to vector<8x32xf32>
    %709 = arith.maximumf %708, %707 : vector<8x32xf32>
    %710 = vector.broadcast %cst_291 : f32 to vector<8x32xf32>
    %711 = arith.minimumf %710, %709 : vector<8x32xf32>
    %712 = arith.mulf %697, %671 : vector<8x32xf32>
    %713 = arith.mulf %688, %702 : vector<8x32xf32>
    %714 = arith.addf %712, %713 : vector<8x32xf32>
    %cst_292 = arith.constant -1.000000e+00 : f32
    %cst_293 = arith.constant 1.000000e+00 : f32
    %715 = vector.broadcast %cst_292 : f32 to vector<8x32xf32>
    %716 = arith.maximumf %715, %714 : vector<8x32xf32>
    %717 = vector.broadcast %cst_293 : f32 to vector<8x32xf32>
    %718 = arith.minimumf %717, %716 : vector<8x32xf32>
    %719 = arith.mulf %711, %718 : vector<8x32xf32>
    %720 = vector.extract_strided_slice %547 {offsets = [32, 0], sizes = [8, 128], strides = [1, 1]} : vector<64x128xf32> to vector<8x128xf32>
    %cst_294 = arith.constant dense<0.000000e+00> : vector<8x128xf32>
    %721 = tpu.matmul %719, %3, %cst_294 {dimension_numbers = #tpu.dot_dimension_numbers<[1], [0], [0], [1], [0, 0, 1, 1], [], []>} : vector<8x32xf32>, vector<32x128xf32>, vector<8x128xf32> -> vector<8x128xf32>
    %722 = arith.addf %720, %721 : vector<8x128xf32>
    %723 = vector.extract_strided_slice %722 {offsets = [0, 0], sizes = [8, 32], strides = [1, 1]} : vector<8x128xf32> to vector<8x32xf32>
    %cst_295 = arith.constant 6.000000e+00 : f32
    %724 = vector.broadcast %cst_295 : f32 to vector<8x32xf32>
    %725 = arith.divf %723, %724 : vector<8x32xf32>
    %cst_296 = arith.constant 5.000000e-01 : f32
    %726 = vector.broadcast %cst_296 : f32 to vector<8x32xf32>
    %727 = arith.addf %725, %726 : vector<8x32xf32>
    %cst_297 = arith.constant 0.000000e+00 : f32
    %cst_298 = arith.constant 1.000000e+00 : f32
    %728 = vector.broadcast %cst_297 : f32 to vector<8x32xf32>
    %729 = arith.maximumf %728, %727 : vector<8x32xf32>
    %730 = vector.broadcast %cst_298 : f32 to vector<8x32xf32>
    %731 = arith.minimumf %730, %729 : vector<8x32xf32>
    %732 = vector.extract_strided_slice %722 {offsets = [0, 32], sizes = [8, 32], strides = [1, 1]} : vector<8x128xf32> to vector<8x32xf32>
    %cst_299 = arith.constant 6.000000e+00 : f32
    %733 = vector.broadcast %cst_299 : f32 to vector<8x32xf32>
    %734 = arith.divf %732, %733 : vector<8x32xf32>
    %cst_300 = arith.constant 5.000000e-01 : f32
    %735 = vector.broadcast %cst_300 : f32 to vector<8x32xf32>
    %736 = arith.addf %734, %735 : vector<8x32xf32>
    %cst_301 = arith.constant 0.000000e+00 : f32
    %cst_302 = arith.constant 1.000000e+00 : f32
    %737 = vector.broadcast %cst_301 : f32 to vector<8x32xf32>
    %738 = arith.maximumf %737, %736 : vector<8x32xf32>
    %739 = vector.broadcast %cst_302 : f32 to vector<8x32xf32>
    %740 = arith.minimumf %739, %738 : vector<8x32xf32>
    %741 = vector.extract_strided_slice %722 {offsets = [0, 64], sizes = [8, 32], strides = [1, 1]} : vector<8x128xf32> to vector<8x32xf32>
    %cst_303 = arith.constant -1.000000e+00 : f32
    %cst_304 = arith.constant 1.000000e+00 : f32
    %742 = vector.broadcast %cst_303 : f32 to vector<8x32xf32>
    %743 = arith.maximumf %742, %741 : vector<8x32xf32>
    %744 = vector.broadcast %cst_304 : f32 to vector<8x32xf32>
    %745 = arith.minimumf %744, %743 : vector<8x32xf32>
    %746 = vector.extract_strided_slice %722 {offsets = [0, 96], sizes = [8, 32], strides = [1, 1]} : vector<8x128xf32> to vector<8x32xf32>
    %cst_305 = arith.constant 6.000000e+00 : f32
    %747 = vector.broadcast %cst_305 : f32 to vector<8x32xf32>
    %748 = arith.divf %746, %747 : vector<8x32xf32>
    %cst_306 = arith.constant 5.000000e-01 : f32
    %749 = vector.broadcast %cst_306 : f32 to vector<8x32xf32>
    %750 = arith.addf %748, %749 : vector<8x32xf32>
    %cst_307 = arith.constant 0.000000e+00 : f32
    %cst_308 = arith.constant 1.000000e+00 : f32
    %751 = vector.broadcast %cst_307 : f32 to vector<8x32xf32>
    %752 = arith.maximumf %751, %750 : vector<8x32xf32>
    %753 = vector.broadcast %cst_308 : f32 to vector<8x32xf32>
    %754 = arith.minimumf %753, %752 : vector<8x32xf32>
    %755 = arith.mulf %740, %714 : vector<8x32xf32>
    %756 = arith.mulf %731, %745 : vector<8x32xf32>
    %757 = arith.addf %755, %756 : vector<8x32xf32>
    %cst_309 = arith.constant -1.000000e+00 : f32
    %cst_310 = arith.constant 1.000000e+00 : f32
    %758 = vector.broadcast %cst_309 : f32 to vector<8x32xf32>
    %759 = arith.maximumf %758, %757 : vector<8x32xf32>
    %760 = vector.broadcast %cst_310 : f32 to vector<8x32xf32>
    %761 = arith.minimumf %760, %759 : vector<8x32xf32>
    %762 = arith.mulf %754, %761 : vector<8x32xf32>
    %763 = vector.extract_strided_slice %547 {offsets = [40, 0], sizes = [8, 128], strides = [1, 1]} : vector<64x128xf32> to vector<8x128xf32>
    %cst_311 = arith.constant dense<0.000000e+00> : vector<8x128xf32>
    %764 = tpu.matmul %762, %3, %cst_311 {dimension_numbers = #tpu.dot_dimension_numbers<[1], [0], [0], [1], [0, 0, 1, 1], [], []>} : vector<8x32xf32>, vector<32x128xf32>, vector<8x128xf32> -> vector<8x128xf32>
    %765 = arith.addf %763, %764 : vector<8x128xf32>
    %766 = vector.extract_strided_slice %765 {offsets = [0, 0], sizes = [8, 32], strides = [1, 1]} : vector<8x128xf32> to vector<8x32xf32>
    %cst_312 = arith.constant 6.000000e+00 : f32
    %767 = vector.broadcast %cst_312 : f32 to vector<8x32xf32>
    %768 = arith.divf %766, %767 : vector<8x32xf32>
    %cst_313 = arith.constant 5.000000e-01 : f32
    %769 = vector.broadcast %cst_313 : f32 to vector<8x32xf32>
    %770 = arith.addf %768, %769 : vector<8x32xf32>
    %cst_314 = arith.constant 0.000000e+00 : f32
    %cst_315 = arith.constant 1.000000e+00 : f32
    %771 = vector.broadcast %cst_314 : f32 to vector<8x32xf32>
    %772 = arith.maximumf %771, %770 : vector<8x32xf32>
    %773 = vector.broadcast %cst_315 : f32 to vector<8x32xf32>
    %774 = arith.minimumf %773, %772 : vector<8x32xf32>
    %775 = vector.extract_strided_slice %765 {offsets = [0, 32], sizes = [8, 32], strides = [1, 1]} : vector<8x128xf32> to vector<8x32xf32>
    %cst_316 = arith.constant 6.000000e+00 : f32
    %776 = vector.broadcast %cst_316 : f32 to vector<8x32xf32>
    %777 = arith.divf %775, %776 : vector<8x32xf32>
    %cst_317 = arith.constant 5.000000e-01 : f32
    %778 = vector.broadcast %cst_317 : f32 to vector<8x32xf32>
    %779 = arith.addf %777, %778 : vector<8x32xf32>
    %cst_318 = arith.constant 0.000000e+00 : f32
    %cst_319 = arith.constant 1.000000e+00 : f32
    %780 = vector.broadcast %cst_318 : f32 to vector<8x32xf32>
    %781 = arith.maximumf %780, %779 : vector<8x32xf32>
    %782 = vector.broadcast %cst_319 : f32 to vector<8x32xf32>
    %783 = arith.minimumf %782, %781 : vector<8x32xf32>
    %784 = vector.extract_strided_slice %765 {offsets = [0, 64], sizes = [8, 32], strides = [1, 1]} : vector<8x128xf32> to vector<8x32xf32>
    %cst_320 = arith.constant -1.000000e+00 : f32
    %cst_321 = arith.constant 1.000000e+00 : f32
    %785 = vector.broadcast %cst_320 : f32 to vector<8x32xf32>
    %786 = arith.maximumf %785, %784 : vector<8x32xf32>
    %787 = vector.broadcast %cst_321 : f32 to vector<8x32xf32>
    %788 = arith.minimumf %787, %786 : vector<8x32xf32>
    %789 = vector.extract_strided_slice %765 {offsets = [0, 96], sizes = [8, 32], strides = [1, 1]} : vector<8x128xf32> to vector<8x32xf32>
    %cst_322 = arith.constant 6.000000e+00 : f32
    %790 = vector.broadcast %cst_322 : f32 to vector<8x32xf32>
    %791 = arith.divf %789, %790 : vector<8x32xf32>
    %cst_323 = arith.constant 5.000000e-01 : f32
    %792 = vector.broadcast %cst_323 : f32 to vector<8x32xf32>
    %793 = arith.addf %791, %792 : vector<8x32xf32>
    %cst_324 = arith.constant 0.000000e+00 : f32
    %cst_325 = arith.constant 1.000000e+00 : f32
    %794 = vector.broadcast %cst_324 : f32 to vector<8x32xf32>
    %795 = arith.maximumf %794, %793 : vector<8x32xf32>
    %796 = vector.broadcast %cst_325 : f32 to vector<8x32xf32>
    %797 = arith.minimumf %796, %795 : vector<8x32xf32>
    %798 = arith.mulf %783, %757 : vector<8x32xf32>
    %799 = arith.mulf %774, %788 : vector<8x32xf32>
    %800 = arith.addf %798, %799 : vector<8x32xf32>
    %cst_326 = arith.constant -1.000000e+00 : f32
    %cst_327 = arith.constant 1.000000e+00 : f32
    %801 = vector.broadcast %cst_326 : f32 to vector<8x32xf32>
    %802 = arith.maximumf %801, %800 : vector<8x32xf32>
    %803 = vector.broadcast %cst_327 : f32 to vector<8x32xf32>
    %804 = arith.minimumf %803, %802 : vector<8x32xf32>
    %805 = arith.mulf %797, %804 : vector<8x32xf32>
    %806 = vector.extract_strided_slice %547 {offsets = [48, 0], sizes = [8, 128], strides = [1, 1]} : vector<64x128xf32> to vector<8x128xf32>
    %cst_328 = arith.constant dense<0.000000e+00> : vector<8x128xf32>
    %807 = tpu.matmul %805, %3, %cst_328 {dimension_numbers = #tpu.dot_dimension_numbers<[1], [0], [0], [1], [0, 0, 1, 1], [], []>} : vector<8x32xf32>, vector<32x128xf32>, vector<8x128xf32> -> vector<8x128xf32>
    %808 = arith.addf %806, %807 : vector<8x128xf32>
    %809 = vector.extract_strided_slice %808 {offsets = [0, 0], sizes = [8, 32], strides = [1, 1]} : vector<8x128xf32> to vector<8x32xf32>
    %cst_329 = arith.constant 6.000000e+00 : f32
    %810 = vector.broadcast %cst_329 : f32 to vector<8x32xf32>
    %811 = arith.divf %809, %810 : vector<8x32xf32>
    %cst_330 = arith.constant 5.000000e-01 : f32
    %812 = vector.broadcast %cst_330 : f32 to vector<8x32xf32>
    %813 = arith.addf %811, %812 : vector<8x32xf32>
    %cst_331 = arith.constant 0.000000e+00 : f32
    %cst_332 = arith.constant 1.000000e+00 : f32
    %814 = vector.broadcast %cst_331 : f32 to vector<8x32xf32>
    %815 = arith.maximumf %814, %813 : vector<8x32xf32>
    %816 = vector.broadcast %cst_332 : f32 to vector<8x32xf32>
    %817 = arith.minimumf %816, %815 : vector<8x32xf32>
    %818 = vector.extract_strided_slice %808 {offsets = [0, 32], sizes = [8, 32], strides = [1, 1]} : vector<8x128xf32> to vector<8x32xf32>
    %cst_333 = arith.constant 6.000000e+00 : f32
    %819 = vector.broadcast %cst_333 : f32 to vector<8x32xf32>
    %820 = arith.divf %818, %819 : vector<8x32xf32>
    %cst_334 = arith.constant 5.000000e-01 : f32
    %821 = vector.broadcast %cst_334 : f32 to vector<8x32xf32>
    %822 = arith.addf %820, %821 : vector<8x32xf32>
    %cst_335 = arith.constant 0.000000e+00 : f32
    %cst_336 = arith.constant 1.000000e+00 : f32
    %823 = vector.broadcast %cst_335 : f32 to vector<8x32xf32>
    %824 = arith.maximumf %823, %822 : vector<8x32xf32>
    %825 = vector.broadcast %cst_336 : f32 to vector<8x32xf32>
    %826 = arith.minimumf %825, %824 : vector<8x32xf32>
    %827 = vector.extract_strided_slice %808 {offsets = [0, 64], sizes = [8, 32], strides = [1, 1]} : vector<8x128xf32> to vector<8x32xf32>
    %cst_337 = arith.constant -1.000000e+00 : f32
    %cst_338 = arith.constant 1.000000e+00 : f32
    %828 = vector.broadcast %cst_337 : f32 to vector<8x32xf32>
    %829 = arith.maximumf %828, %827 : vector<8x32xf32>
    %830 = vector.broadcast %cst_338 : f32 to vector<8x32xf32>
    %831 = arith.minimumf %830, %829 : vector<8x32xf32>
    %832 = vector.extract_strided_slice %808 {offsets = [0, 96], sizes = [8, 32], strides = [1, 1]} : vector<8x128xf32> to vector<8x32xf32>
    %cst_339 = arith.constant 6.000000e+00 : f32
    %833 = vector.broadcast %cst_339 : f32 to vector<8x32xf32>
    %834 = arith.divf %832, %833 : vector<8x32xf32>
    %cst_340 = arith.constant 5.000000e-01 : f32
    %835 = vector.broadcast %cst_340 : f32 to vector<8x32xf32>
    %836 = arith.addf %834, %835 : vector<8x32xf32>
    %cst_341 = arith.constant 0.000000e+00 : f32
    %cst_342 = arith.constant 1.000000e+00 : f32
    %837 = vector.broadcast %cst_341 : f32 to vector<8x32xf32>
    %838 = arith.maximumf %837, %836 : vector<8x32xf32>
    %839 = vector.broadcast %cst_342 : f32 to vector<8x32xf32>
    %840 = arith.minimumf %839, %838 : vector<8x32xf32>
    %841 = arith.mulf %826, %800 : vector<8x32xf32>
    %842 = arith.mulf %817, %831 : vector<8x32xf32>
    %843 = arith.addf %841, %842 : vector<8x32xf32>
    %cst_343 = arith.constant -1.000000e+00 : f32
    %cst_344 = arith.constant 1.000000e+00 : f32
    %844 = vector.broadcast %cst_343 : f32 to vector<8x32xf32>
    %845 = arith.maximumf %844, %843 : vector<8x32xf32>
    %846 = vector.broadcast %cst_344 : f32 to vector<8x32xf32>
    %847 = arith.minimumf %846, %845 : vector<8x32xf32>
    %848 = arith.mulf %840, %847 : vector<8x32xf32>
    %849 = vector.extract_strided_slice %547 {offsets = [56, 0], sizes = [8, 128], strides = [1, 1]} : vector<64x128xf32> to vector<8x128xf32>
    %cst_345 = arith.constant dense<0.000000e+00> : vector<8x128xf32>
    %850 = tpu.matmul %848, %3, %cst_345 {dimension_numbers = #tpu.dot_dimension_numbers<[1], [0], [0], [1], [0, 0, 1, 1], [], []>} : vector<8x32xf32>, vector<32x128xf32>, vector<8x128xf32> -> vector<8x128xf32>
    %851 = arith.addf %849, %850 : vector<8x128xf32>
    %852 = vector.extract_strided_slice %851 {offsets = [0, 0], sizes = [8, 32], strides = [1, 1]} : vector<8x128xf32> to vector<8x32xf32>
    %cst_346 = arith.constant 6.000000e+00 : f32
    %853 = vector.broadcast %cst_346 : f32 to vector<8x32xf32>
    %854 = arith.divf %852, %853 : vector<8x32xf32>
    %cst_347 = arith.constant 5.000000e-01 : f32
    %855 = vector.broadcast %cst_347 : f32 to vector<8x32xf32>
    %856 = arith.addf %854, %855 : vector<8x32xf32>
    %cst_348 = arith.constant 0.000000e+00 : f32
    %cst_349 = arith.constant 1.000000e+00 : f32
    %857 = vector.broadcast %cst_348 : f32 to vector<8x32xf32>
    %858 = arith.maximumf %857, %856 : vector<8x32xf32>
    %859 = vector.broadcast %cst_349 : f32 to vector<8x32xf32>
    %860 = arith.minimumf %859, %858 : vector<8x32xf32>
    %861 = vector.extract_strided_slice %851 {offsets = [0, 32], sizes = [8, 32], strides = [1, 1]} : vector<8x128xf32> to vector<8x32xf32>
    %cst_350 = arith.constant 6.000000e+00 : f32
    %862 = vector.broadcast %cst_350 : f32 to vector<8x32xf32>
    %863 = arith.divf %861, %862 : vector<8x32xf32>
    %cst_351 = arith.constant 5.000000e-01 : f32
    %864 = vector.broadcast %cst_351 : f32 to vector<8x32xf32>
    %865 = arith.addf %863, %864 : vector<8x32xf32>
    %cst_352 = arith.constant 0.000000e+00 : f32
    %cst_353 = arith.constant 1.000000e+00 : f32
    %866 = vector.broadcast %cst_352 : f32 to vector<8x32xf32>
    %867 = arith.maximumf %866, %865 : vector<8x32xf32>
    %868 = vector.broadcast %cst_353 : f32 to vector<8x32xf32>
    %869 = arith.minimumf %868, %867 : vector<8x32xf32>
    %870 = vector.extract_strided_slice %851 {offsets = [0, 64], sizes = [8, 32], strides = [1, 1]} : vector<8x128xf32> to vector<8x32xf32>
    %cst_354 = arith.constant -1.000000e+00 : f32
    %cst_355 = arith.constant 1.000000e+00 : f32
    %871 = vector.broadcast %cst_354 : f32 to vector<8x32xf32>
    %872 = arith.maximumf %871, %870 : vector<8x32xf32>
    %873 = vector.broadcast %cst_355 : f32 to vector<8x32xf32>
    %874 = arith.minimumf %873, %872 : vector<8x32xf32>
    %875 = vector.extract_strided_slice %851 {offsets = [0, 96], sizes = [8, 32], strides = [1, 1]} : vector<8x128xf32> to vector<8x32xf32>
    %cst_356 = arith.constant 6.000000e+00 : f32
    %876 = vector.broadcast %cst_356 : f32 to vector<8x32xf32>
    %877 = arith.divf %875, %876 : vector<8x32xf32>
    %cst_357 = arith.constant 5.000000e-01 : f32
    %878 = vector.broadcast %cst_357 : f32 to vector<8x32xf32>
    %879 = arith.addf %877, %878 : vector<8x32xf32>
    %cst_358 = arith.constant 0.000000e+00 : f32
    %cst_359 = arith.constant 1.000000e+00 : f32
    %880 = vector.broadcast %cst_358 : f32 to vector<8x32xf32>
    %881 = arith.maximumf %880, %879 : vector<8x32xf32>
    %882 = vector.broadcast %cst_359 : f32 to vector<8x32xf32>
    %883 = arith.minimumf %882, %881 : vector<8x32xf32>
    %884 = arith.mulf %869, %843 : vector<8x32xf32>
    %885 = arith.mulf %860, %874 : vector<8x32xf32>
    %886 = arith.addf %884, %885 : vector<8x32xf32>
    %cst_360 = arith.constant -1.000000e+00 : f32
    %cst_361 = arith.constant 1.000000e+00 : f32
    %887 = vector.broadcast %cst_360 : f32 to vector<8x32xf32>
    %888 = arith.maximumf %887, %886 : vector<8x32xf32>
    %889 = vector.broadcast %cst_361 : f32 to vector<8x32xf32>
    %890 = arith.minimumf %889, %888 : vector<8x32xf32>
    %891 = arith.mulf %883, %890 : vector<8x32xf32>
    %c0_362 = arith.constant 0 : index
    %c0_363 = arith.constant 0 : index
    %892 = vector.load %arg5[%c0_362, %c0_363] : memref<8x64xf32, #tpu.memory_space<vmem>>, vector<8x32xf32>
    tpu.vector_store %arg5[%c0_362, %c0_363], %367 {strides = array<i32>} : memref<8x64xf32, #tpu.memory_space<vmem>>, vector<8x32xf32>,
    %c0_364 = arith.constant 0 : index
    %c32_365 = arith.constant 32 : index
    %893 = vector.load %arg5[%c0_364, %c32_365] : memref<8x64xf32, #tpu.memory_space<vmem>>, vector<8x32xf32>
    tpu.vector_store %arg5[%c0_364, %c32_365], %891 {strides = array<i32>} : memref<8x64xf32, #tpu.memory_space<vmem>>, vector<8x32xf32>,
    return
  }
}

</mosaic_0001>

<bundles_post_ra>
// kernel: tile.8
= control target key start
LH: loop header
LB: loop body
LE: loop exit
PB: predicated region body
PF: predicated region fallthrough
CT: control target
= control target key end

     0   :  { %s22_s0 = inlined_call_operand.vmem [shape: f32[16], index: 0, kind: input, shape index: {}]   ;;  %s23_s1 = inlined_call_operand.vmem [shape: f32[4,16], index: 1, kind: output, shape index: {}]  }
   0x1   :  { %v4_v0 = vld [vmem:[%s22_s0] ss:$0 sm:$0xff] }
   0x2   :  { %5 = vst [vmem:[%s23_s1] sm:$0xf] %v4_v0 }

// kernel: div.5
= control target key start
LH: loop header
LB: loop body
LE: loop exit
PB: predicated region body
PF: predicated region fallthrough
CT: control target
= control target key end

     0   :  { %s69_s10 = smov 56   ;;  %s70_s11 = smov 40   ;;  %vm3_vm0 = vcmask 64512   ;;  %vm9_vm1 = vcmask 523712   ;;  %vm15_vm2 = vcmask 458112   ;;  %vm21_vm3 = vcmask 392512   ;;  %s113_s0 = inlined_call_operand.vmem [shape: f32[8,8], index: 0, kind: input, shape index: {}]   ;;  %s114_s1 = inlined_call_operand.vmem [shape: f32[64], index: 1, kind: output, shape index: {}]  }
   0x1   :  { %v55_v0 = vld [vmem:[%s113_s0 + $0x7] sm:$0x1]   ;;  %v57_v1 = vld [vmem:[%s113_s0 + $0x5] sm:$0x1]   ;;  %v56_v2 = vld [vmem:[%s113_s0 + $0x6] sm:$0x1]  }
   0x2   :  { %7 = vrot.lane.b32.xlu0 %v55_v0, %s69_s10  ;;  %19 = vrot.lane.b32.xlu1 %v57_v1, %s70_s11  ;;  %v58_v3 = vld [vmem:[%s113_s0 + $0x4] sm:$0x1]   ;;  %v2_v4 = vld [vmem:[%s113_s0] sm:$0x1]   ;;  %s71_s18 = smov 48   ;;  %s72_s19 = smov 32  }
   0x3   :  { %4 = vst.msk [vmem:[#allocation0] sm:$0x1] %vm3_vm0, %v2_v4   ;;  %v59_v5 = vld [vmem:[%s113_s0 + $0x3] sm:$0x1]   ;;  %v60_v6 = vld [vmem:[%s113_s0 + $0x2] sm:$0x1]  }
   0x4   :  { %s73_s24 = smov 24   ;;  %s74_s25 = smov 16   ;;  %v61_v7 = vld [vmem:[%s113_s0 + $0x1] sm:$0x1]   ;;  %vm27_vm4 = vcmask 326912   ;;  %vm33_vm5 = vcmask 261312  }
   0x5   :  { %s75_s0 = smov 8   ;;  %vm39_vm6 = vcmask 195712   ;;  %vm45_vm7 = vcmask 130112  }
   0x6   :  { %13 = vrot.lane.b32.xlu0 %v56_v2, %s71_s18  ;;  %25 = vrot.lane.b32.xlu1 %v58_v3, %s72_s19 }
   0xa   :  { %31 = vrot.lane.b32.xlu0 %v59_v5, %s73_s24  ;;  %37 = vrot.lane.b32.xlu1 %v60_v6, %s74_s25 }
   0xe   :  { %43 = vrot.lane.b32.xlu0 %v61_v7, %s75_s0 }
  0x74   :  { %v8_v8 = vpop.permute.xlu0 %7   ;;  %v20_v9 = vpop.permute.xlu1 %19  }
  0x75   :  { %10 = vst.msk [vmem:[#allocation0] sm:$0x1] %vm9_vm1, %v8_v8  }
  0x78   :  { %v14_v10 = vpop.permute.xlu0 %13   ;;  %v26_v11 = vpop.permute.xlu1 %25  }
  0x79   :  { %16 = vst.msk [vmem:[#allocation0] sm:$0x1] %vm15_vm2, %v14_v10  }
  0x7a   :  { %22 = vst.msk [vmem:[#allocation0] sm:$0x1] %vm21_vm3, %v20_v9  }
  0x7b   :  { %28 = vst.msk [vmem:[#allocation0] sm:$0x1] %vm27_vm4, %v26_v11  }
  0x7c   :  { %v32_v12 = vpop.permute.xlu0 %31   ;;  %v38_v13 = vpop.permute.xlu1 %37  }
  0x7d   :  { %34 = vst.msk [vmem:[#allocation0] sm:$0x1] %vm33_vm5, %v32_v12  }
  0x7e   :  { %40 = vst.msk [vmem:[#allocation0] sm:$0x1] %vm39_vm6, %v38_v13  }
  0x80   :  { %v44_v14 = vpop.permute.xlu0 %43  }
  0x81   :  { %46 = vst.msk [vmem:[#allocation0] sm:$0x1] %vm45_vm7, %v44_v14  }
  0x88   :  { %v51_v15 = vld [vmem:[#allocation0] sm:$0x1] }
  0x89   :  { %54 = vst [vmem:[%s114_s1] sm:$0x1] %v51_v15 }

// kernel: encoder_forward.1
= control target key start
LH: loop header
LB: loop body
LE: loop exit
PB: predicated region body
PF: predicated region fallthrough
CT: control target
= control target key end

     0   :  { %vm71_vm0 = vcmask 64512   ;;  %v7788_v3 = vmov 0.0   ;;  %s7781_s0 = inlined_call_operand.vmem [shape: f32[64,8], index: 0, kind: input, shape index: {}]   ;;  %s7782_s1 = inlined_call_operand.vmem [shape: f32[112,128], index: 1, kind: input, shape index: {}]   ;;  %s7783_s2 = inlined_call_operand.vmem [shape: f32[104,128], index: 2, kind: input, shape index: {}]   ;;  %s7784_s3 = inlined_call_operand.vmem [shape: f32[64,64], index: 3, kind: input, shape index: {}]   ;;  %s7785_s4 = inlined_call_operand.vmem [shape: f32[32,32], index: 4, kind: input, shape index: {}]   ;;  %s7786_s5 = inlined_call_operand.hbm [shape: f32[8,64], index: 5, kind: output, shape index: {}]  }
   0x1   :  { %v6039_v0 = vld [vmem:[%s7782_s1 + $0x20] sm:$0xff]  ;;  %5202 = vmatprep.subr.mxu1 %v7788_v3  ;;  %v6051_v4 = vld [vmem:[%s7782_s1 + $0x18] sm:$0xff]  ;;  %v64_v5 = vld [vmem:[%s7781_s0 + $0x8] sm:$0xff] }
   0x2   :  { %v21_v1 = vld [vmem:[%s7782_s1] sm:$0xff]  ;;  %5203 = vmatpush3.msra.mxu1 %v6039_v0 }
   0x3   :  { %v63_v2 = vld [vmem:[%s7781_s0] sm:$0xff]  ;;  %5188 = vmatprep.subr.mxu0 %v21_v1 }
   0x4   :  { %5189 = vmatpush3.msra.mxu0 %v21_v1 }
   0x5   :  { %10 = vsyncpa [#allocation5], 0  ;;  %5204 = vmatprep.subr.mxu1 %v7788_v3  ;;  %5190 = vmatprep.mubr.msk.f32.mxu0 %vm71_vm0, %v63_v2  ;;  %v6062_v6 = vld [vmem:[%s7782_s1 + $0x10] sm:$0xff]  ;;  %v6070_v7 = vld [vmem:[%s7782_s1 + $0x8] sm:$0xff]  ;;  %vm5989_vm1 = vmmov 0   ;;  %vm201_vm2 = vcmask 261120  }
   0x6   :  { %5205 = vmatpush3.msra.mxu1 %v6051_v4  ;;  %5191 = vmatmul.mubr.msk.f32.vlgmr.msra.gmra.mxu0 %vm71_vm0, %v64_v5  ;;  %v59_v8 = vld [vmem:[%s7785_s4] sm:$0xff]  ;;  %s5990_s9 = smov 64   ;;  %v60_v15 = vld [vmem:[%s7785_s4 + $0x8] sm:$0xff]  ;;  %s5991_s12 = smov 32   ;;  %v65_v40 = vld [vmem:[%s7781_s0 + $0x10] sm:$0xff]  ;;  %vm1032_vm3 = vcmask 523264  }
   0x7   :  { %5206 = vmatprep.subr.mxu1 %v7788_v3  ;;  %5210 = vmatprep.mubr.msk.f32.mxu1 %vm5989_vm1, %v7788_v3  ;;  %v66_v41 = vld [vmem:[%s7781_s0 + $0x18] sm:$0xff]  ;;  %v67_v42 = vld [vmem:[%s7781_s0 + $0x20] sm:$0xff]  ;;  %v68_v43 = vld [vmem:[%s7781_s0 + $0x28] sm:$0xff]  ;;  %s5997_s25 = smov 80   ;;  %s5998_s26 = smov 112  }
   0x8   :  { %5207 = vmatpush3.msra.mxu1 %v6062_v6  ;;  %5224 = vmatprep.subr.mxu0 %v7788_v3  ;;  %v69_v44 = vld [vmem:[%s7781_s0 + $0x30] sm:$0xff]  ;;  %v70_v48 = vld [vmem:[%s7781_s0 + $0x38] sm:$0xff]  ;;  %s5994_s0 = smov 60   ;;  %s5999_s27 = smov 96  }
   0x9   :  { %5208 = vmatprep.subr.mxu1 %v7788_v3  ;;  %5225 = vmatpush3.msra.mxu0 %v6039_v0  ;;  %s6001_s30 = smov 16   ;;  %s6002_s6 = smov 48  }
   0xa   :  { %5209 = vmatpush3.msra.mxu1 %v6070_v7  ;;  %5226 = vmatprep.subr.mxu0 %v7788_v3 }
   0xb   :  { %5211 = vmatmul.mubr.msk.f32.vlgmr.msra.gmra.mxu1 %vm201_vm2, %v59_v8  ;;  %5213 = vmatprep.subr.mxu1 %v7788_v3 }
   0xc   :  { %5214 = vmatpush3.msra.mxu1 %v6039_v0  ;;  %5221 = vmatprep.mubr.msk.f32.mxu1 %vm5989_vm1, %v7788_v3 }
   0xd   :  { %5215 = vmatprep.subr.mxu1 %v7788_v3  ;;  %5227 = vmatpush3.msra.mxu0 %v6051_v4 }
   0xe   :  { %5216 = vmatpush3.msra.mxu1 %v6051_v4  ;;  %5228 = vmatprep.subr.mxu0 %v7788_v3 }
   0xf   :  { %5217 = vmatprep.subr.mxu1 %v7788_v3  ;;  %5229 = vmatpush3.msra.mxu0 %v6062_v6 }
  0x10   :  { %5218 = vmatpush3.msra.mxu1 %v6062_v6  ;;  %5230 = vmatprep.subr.mxu0 %v7788_v3 }
  0x11   :  { %5219 = vmatprep.subr.mxu1 %v7788_v3  ;;  %5231 = vmatpush3.msra.mxu0 %v6070_v7 }
  0x12   :  { %5220 = vmatpush3.msra.mxu1 %v6070_v7  ;;  %5246 = vmatprep.subr.mxu0 %v7788_v3 }
  0x13   :  { %5235 = vmatprep.subr.mxu1 %v7788_v3  ;;  %5193 = vmatprep.mubr.msk.f32.mxu0 %vm71_vm0, %v65_v40 }
  0x14   :  { %5194 = vmatmul.mubr.msk.f32.gmra.mxu0 %vm71_vm0, %v66_v41 }
  0x15   :  { %5196 = vmatprep.mubr.msk.f32.mxu0 %vm71_vm0, %v67_v42 }
  0x18   :  { %5197 = vmatmul.mubr.msk.f32.gmra.mxu0 %vm71_vm0, %v68_v43 }
  0x19   :  { %5199 = vmatprep.mubr.msk.f32.mxu0 %vm71_vm0, %v69_v44 }
  0x1c   :  { %5200 = vmatmul.mubr.msk.f32.gmra.mxu0 %vm71_vm0, %v70_v48 }
  0x1d   :  { %5232 = vmatprep.mubr.msk.f32.mxu0 %vm5989_vm1, %v7788_v3 }
  0xc6   :  { %v5192_v9 = vpop.f32.mrf.mxu0 }
  0xc8   :  { %v162_v10 = vpop.f32.mrf.mxu0 }
  0xcb   :  { %v271_v11 = vpop.f32.mrf.mxu1 }
  0xcc   :  { %v275_v12 = vadd.f32 %v271_v11, %v162_v10 }
  0xcd   :  { %v5212_v13 = vpop.f32.mrf.mxu1 }
  0xce   :  { %v4762_v14 = vclamps-f32 %v275_v12, 1.0  ;;  %v277_v16 = vmul.f32 0.16666667, %v275_v12 }
  0xd0   :  { %289 = vrot.lane.b32.xlu0 %v4762_v14, %s5990_s9  ;;  %v278_v17 = vadd.f32 0.5, %v277_v16 }
  0xd2   :  { %v279_v18 = vmax.f32 %v278_v17, 0.0 }
  0xd4   :  { %284 = vrot.lane.b32.xlu0 %v60_v15, %s5991_s12  ;;  %v280_v19 = vmin.f32 %v279_v18, 1.0  ;;  %v5195_v53 = vpop.f32.mrf.mxu0 }
  0xd6   :  { %v172_v54 = vpop.f32.mrf.mxu0 }
  0xd8   :  { %v6163_v55 = vpop.f32.mrf.mxu0 }
  0xda   :  { %v6165_v56 = vpop.f32.mrf.mxu0 }
  0xdc   :  { %v6167_v57 = vpop.f32.mrf.mxu0 }
  0xde   :  { %v6169_v58 = vpop.f32.mrf.mxu0 }
 0x142   :  { %v290_v20 = vpop.permute.xlu0 %289 }
 0x143   :  { %v292_v21 = vmul.f32 %v290_v20, %v280_v19 }
 0x145   :  { %294 = vrot.lane.b32.xlu1 %v292_v21, %s5991_s12 }
 0x146   :  { %v285_v22 = vpop.permute.xlu0 %284 }
 0x147   :  { %v287_v23 = vmul.f32 %v285_v22, %v280_v19 }
 0x1b7   :  { %v295_v24 = vpop.permute.xlu1 %294 }
 0x1b8   :  { %v297_v25 = vadd.f32 %v295_v24, %v287_v23 }
 0x1ba   :  { %v4763_v26 = vclamps-f32 %v297_v25, 1.0 }
 0x1bc   :  { %301 = vrot.lane.b32.xlu1 %v4763_v26, %s5990_s9 }
 0x22e   :  { %v302_v27 = vpop.permute.xlu1 %301 }
 0x22f   :  { %v304_v28 = vmul.f32 %v302_v27, %v280_v19 }
 0x231   :  { %306 = vrot.lane.b32.xlu0 %v304_v28, %s5991_s12 }
 0x2a3   :  { %v307_v29 = vpop.permute.xlu0 %306 }
 0x2a4   :  { %309 = vst.msk [vmem:[#allocation2] sm:$0xff] %vm201_vm2, %v307_v29  ;;  %5222 = vmatmul.mubr.msk.f32.vlgmr.msra.gmra.mxu1 %vm201_vm2, %v307_v29 }
 0x2a5   :  { %5236 = vmatpush3.msra.mxu1 %v6039_v0  ;;  %5243 = vmatprep.mubr.msk.f32.mxu1 %vm5989_vm1, %v7788_v3 }
 0x2a6   :  { %5237 = vmatprep.subr.mxu1 %v7788_v3 }
 0x2a7   :  { %5238 = vmatpush3.msra.mxu1 %v6051_v4 }
 0x2a8   :  { %5239 = vmatprep.subr.mxu1 %v7788_v3 }
 0x2a9   :  { %5240 = vmatpush3.msra.mxu1 %v6062_v6 }
 0x2aa   :  { %5241 = vmatprep.subr.mxu1 %v7788_v3 }
 0x2ab   :  { %5242 = vmatpush3.msra.mxu1 %v6070_v7 }
 0x2ac   :  { %5257 = vmatprep.subr.mxu1 %v7788_v3 }
 0x364   :  { %v378_v30 = vpop.f32.mrf.mxu1 }
 0x365   :  { %v382_v31 = vadd.f32 %v5192_v9, %v378_v30 }
 0x366   :  { %v5223_v32 = vpop.f32.mrf.mxu1 }
 0x367   :  { %v4765_v33 = vclamps-f32 %v382_v31, 1.0  ;;  %v383_v34 = vmul.f32 0.16666667, %v382_v31 }
 0x369   :  { %391 = vrot.lane.b32.xlu1 %v4765_v33, %s5990_s9  ;;  %v384_v35 = vadd.f32 0.5, %v383_v34 }
 0x36b   :  { %v385_v36 = vmax.f32 %v384_v35, 0.0 }
 0x36d   :  { %v386_v37 = vmin.f32 %v385_v36, 1.0 }
 0x36f   :  { %v389_v45 = vmul.f32 %v386_v37, %v297_v25 }
 0x3db   :  { %v392_v38 = vpop.permute.xlu1 %391 }
 0x3dc   :  { %v394_v39 = vmul.f32 %v392_v38, %v386_v37 }
 0x3de   :  { %396 = vrot.lane.b32.xlu0 %v394_v39, %s5991_s12 }
 0x450   :  { %v397_v46 = vpop.permute.xlu0 %396 }
 0x451   :  { %v399_v47 = vadd.f32 %v397_v46, %v389_v45 }
 0x453   :  { %v4766_v49 = vclamps-f32 %v399_v47, 1.0 }
 0x455   :  { %403 = vrot.lane.b32.xlu1 %v4766_v49, %s5990_s9 }
 0x4c7   :  { %v404_v50 = vpop.permute.xlu1 %403 }
 0x4c8   :  { %v406_v51 = vmul.f32 %v404_v50, %v386_v37 }
 0x4ca   :  { %408 = vrot.lane.b32.xlu0 %v406_v51, %s5991_s12 }
 0x53c   :  { %v409_v52 = vpop.permute.xlu0 %408 }
 0x53d   :  { %411 = vst.msk [vmem:[#allocation2 + $0x8] sm:$0xff] %vm201_vm2, %v409_v52  ;;  %5233 = vmatmul.mubr.msk.f32.vlgmr.msra.gmra.mxu0 %vm201_vm2, %v409_v52 }
 0x53e   :  { %5247 = vmatpush3.msra.mxu0 %v6039_v0  ;;  %5254 = vmatprep.mubr.msk.f32.mxu0 %vm5989_vm1, %v7788_v3 }
 0x53f   :  { %5248 = vmatprep.subr.mxu0 %v7788_v3 }
 0x540   :  { %5249 = vmatpush3.msra.mxu0 %v6051_v4 }
 0x541   :  { %5250 = vmatprep.subr.mxu0 %v7788_v3 }
 0x542   :  { %5251 = vmatpush3.msra.mxu0 %v6062_v6 }
 0x543   :  { %5252 = vmatprep.subr.mxu0 %v7788_v3 }
 0x544   :  { %5253 = vmatpush3.msra.mxu0 %v6070_v7 }
 0x545   :  { %5268 = vmatprep.subr.mxu0 %v7788_v3 }
 0x5fd   :  { %v480_v59 = vpop.f32.mrf.mxu0 }
 0x5fe   :  { %v484_v60 = vadd.f32 %v480_v59, %v172_v54 }
 0x5ff   :  { %v5234_v61 = vpop.f32.mrf.mxu0 }
 0x600   :  { %v4768_v62 = vclamps-f32 %v484_v60, 1.0  ;;  %v485_v63 = vmul.f32 0.16666667, %v484_v60 }
 0x602   :  { %493 = vrot.lane.b32.xlu1 %v4768_v62, %s5990_s9  ;;  %v486_v1 = vadd.f32 0.5, %v485_v63 }
 0x604   :  { %v487_v2 = vmax.f32 %v486_v1, 0.0 }
 0x606   :  { %v488_v5 = vmin.f32 %v487_v2, 1.0 }
 0x608   :  { %v491_v10 = vmul.f32 %v488_v5, %v399_v47 }
 0x674   :  { %v494_v8 = vpop.permute.xlu1 %493 }
 0x675   :  { %v496_v9 = vmul.f32 %v494_v8, %v488_v5 }
 0x677   :  { %498 = vrot.lane.b32.xlu0 %v496_v9, %s5991_s12 }
 0x6e9   :  { %v499_v11 = vpop.permute.xlu0 %498 }
 0x6ea   :  { %v501_v12 = vadd.f32 %v499_v11, %v491_v10 }
 0x6ec   :  { %v4769_v13 = vclamps-f32 %v501_v12, 1.0 }
 0x6ee   :  { %505 = vrot.lane.b32.xlu1 %v4769_v13, %s5990_s9 }
 0x760   :  { %v506_v14 = vpop.permute.xlu1 %505 }
 0x761   :  { %v508_v15 = vmul.f32 %v506_v14, %v488_v5 }
 0x763   :  { %510 = vrot.lane.b32.xlu0 %v508_v15, %s5991_s12 }
 0x7d5   :  { %v511_v16 = vpop.permute.xlu0 %510 }
 0x7d6   :  { %513 = vst.msk [vmem:[#allocation2 + $0x10] sm:$0xff] %vm201_vm2, %v511_v16  ;;  %5244 = vmatmul.mubr.msk.f32.vlgmr.msra.gmra.mxu1 %vm201_vm2, %v511_v16 }
 0x7d7   :  { %5258 = vmatpush3.msra.mxu1 %v6039_v0  ;;  %5265 = vmatprep.mubr.msk.f32.mxu1 %vm5989_vm1, %v7788_v3 }
 0x7d8   :  { %5259 = vmatprep.subr.mxu1 %v7788_v3 }
 0x7d9   :  { %5260 = vmatpush3.msra.mxu1 %v6051_v4 }
 0x7da   :  { %5261 = vmatprep.subr.mxu1 %v7788_v3 }
 0x7db   :  { %5262 = vmatpush3.msra.mxu1 %v6062_v6 }
 0x7dc   :  { %5263 = vmatprep.subr.mxu1 %v7788_v3 }
 0x7dd   :  { %5264 = vmatpush3.msra.mxu1 %v6070_v7 }
 0x7de   :  { %5279 = vmatprep.subr.mxu1 %v7788_v3 }
 0x896   :  { %v582_v17 = vpop.f32.mrf.mxu1 }
 0x897   :  { %v586_v18 = vadd.f32 %v5195_v53, %v582_v17 }
 0x898   :  { %v5245_v19 = vpop.f32.mrf.mxu1 }
 0x899   :  { %v4771_v20 = vclamps-f32 %v586_v18, 1.0  ;;  %v587_v21 = vmul.f32 0.16666667, %v586_v18 }
 0x89b   :  { %595 = vrot.lane.b32.xlu1 %v4771_v20, %s5990_s9  ;;  %v588_v22 = vadd.f32 0.5, %v587_v21 }
 0x89d   :  { %v589_v23 = vmax.f32 %v588_v22, 0.0 }
 0x89f   :  { %v590_v24 = vmin.f32 %v589_v23, 1.0 }
 0x8a1   :  { %v593_v27 = vmul.f32 %v590_v24, %v501_v12 }
 0x90d   :  { %v596_v25 = vpop.permute.xlu1 %595 }
 0x90e   :  { %v598_v26 = vmul.f32 %v596_v25, %v590_v24 }
 0x910   :  { %600 = vrot.lane.b32.xlu0 %v598_v26, %s5991_s12 }
 0x982   :  { %v601_v28 = vpop.permute.xlu0 %600 }
 0x983   :  { %v603_v29 = vadd.f32 %v601_v28, %v593_v27 }
 0x985   :  { %v4772_v30 = vclamps-f32 %v603_v29, 1.0 }
 0x987   :  { %607 = vrot.lane.b32.xlu1 %v4772_v30, %s5990_s9 }
 0x9f9   :  { %v608_v31 = vpop.permute.xlu1 %607 }
 0x9fa   :  { %v610_v32 = vmul.f32 %v608_v31, %v590_v24 }
 0x9fc   :  { %612 = vrot.lane.b32.xlu0 %v610_v32, %s5991_s12 }
 0xa6e   :  { %v613_v33 = vpop.permute.xlu0 %612 }
 0xa6f   :  { %615 = vst.msk [vmem:[#allocation2 + $0x18] sm:$0xff] %vm201_vm2, %v613_v33  ;;  %5255 = vmatmul.mubr.msk.f32.vlgmr.msra.gmra.mxu0 %vm201_vm2, %v613_v33 }
 0xa70   :  { %5269 = vmatpush3.msra.mxu0 %v6039_v0  ;;  %5276 = vmatprep.mubr.msk.f32.mxu0 %vm5989_vm1, %v7788_v3 }
 0xa71   :  { %5270 = vmatprep.subr.mxu0 %v7788_v3 }
 0xa72   :  { %5271 = vmatpush3.msra.mxu0 %v6051_v4 }
 0xa73   :  { %5272 = vmatprep.subr.mxu0 %v7788_v3 }
 0xa74   :  { %5273 = vmatpush3.msra.mxu0 %v6062_v6 }
 0xa75   :  { %5274 = vmatprep.subr.mxu0 %v7788_v3 }
 0xa76   :  { %5275 = vmatpush3.msra.mxu0 %v6070_v7 }
 0xb2f   :  { %v684_v34 = vpop.f32.mrf.mxu0 }
 0xb30   :  { %v688_v35 = vadd.f32 %v684_v34, %v6165_v56 }
 0xb31   :  { %v5256_v36 = vpop.f32.mrf.mxu0 }
 0xb32   :  { %v4774_v37 = vclamps-f32 %v688_v35, 1.0  ;;  %v689_v38 = vmul.f32 0.16666667, %v688_v35 }
 0xb34   :  { %697 = vrot.lane.b32.xlu1 %v4774_v37, %s5990_s9  ;;  %v690_v39 = vadd.f32 0.5, %v689_v38  ;;  %v6240_v38 = vld [vmem:[%s7784_s3] sm:$0xff] }
 0xb35   :  { %vm43_vm5 = vcmp.gt.f32.partialorder %v6240_v38, 0.0 }
 0xb36   :  { %v691_v40 = vmax.f32 %v690_v39, 0.0 }
 0xb38   :  { %v692_v41 = vmin.f32 %v691_v40, 1.0 }
 0xb3a   :  { %v695_v44 = vmul.f32 %v692_v41, %v603_v29 }
 0xba6   :  { %v698_v42 = vpop.permute.xlu1 %697 }
 0xba7   :  { %v700_v43 = vmul.f32 %v698_v42, %v692_v41 }
 0xba9   :  { %702 = vrot.lane.b32.xlu0 %v700_v43, %s5991_s12 }
 0xc1b   :  { %v703_v45 = vpop.permute.xlu0 %702 }
 0xc1c   :  { %v705_v46 = vadd.f32 %v703_v45, %v695_v44  ;;  %v1027_v44 = vld [vmem:[#allocation2 + $0x18] sm:$0xff]  ;;  %v1026_v45 = vld [vmem:[#allocation2 + $0x10] sm:$0xff] }
 0xc1e   :  { %v4775_v47 = vclamps-f32 %v705_v46, 1.0 }
 0xc20   :  { %709 = vrot.lane.b32.xlu1 %v4775_v47, %s5990_s9  ;;  %v1024_v47 = vld [vmem:[#allocation2] sm:$0xff] }
 0xc92   :  { %v710_v48 = vpop.permute.xlu1 %709 }
 0xc93   :  { %v712_v49 = vmul.f32 %v710_v48, %v692_v41  ;;  %v6251_v48 = vld [vmem:[%s7784_s3 + $0x8] sm:$0xff] }
 0xc94   :  { %vm44_vm4 = vcmp.gt.f32.partialorder %v6251_v48, 0.0 }
 0xc95   :  { %714 = vrot.lane.b32.xlu0 %v712_v49, %s5991_s12  ;;  %v6256_v49 = vld [vmem:[%s7784_s3 + $0x10] sm:$0xff] }
 0xc96   :  { %vm45_vm7 = vcmp.gt.f32.partialorder %v6256_v49, 0.0 }
 0xd07   :  { %v715_v50 = vpop.permute.xlu0 %714 }
 0xd08   :  { %717 = vst.msk [vmem:[#allocation2 + $0x20] sm:$0xff] %vm201_vm2, %v715_v50  ;;  %5266 = vmatmul.mubr.msk.f32.vlgmr.msra.gmra.mxu1 %vm201_vm2, %v715_v50  ;;  %v6265_v50 = vld [vmem:[%s7784_s3 + $0x18] sm:$0xff] }
 0xd09   :  { %5280 = vmatpush3.msra.mxu1 %v6039_v0  ;;  %5287 = vmatprep.mubr.msk.f32.mxu1 %vm5989_vm1, %v7788_v3  ;;  %vm46_vm15 = vcmp.gt.f32.partialorder %v6265_v50, 0.0 }
 0xd0a   :  { %5281 = vmatprep.subr.mxu1 %v7788_v3 }
 0xd0b   :  { %5282 = vmatpush3.msra.mxu1 %v6051_v4 }
 0xd0c   :  { %5283 = vmatprep.subr.mxu1 %v7788_v3 }
 0xd0d   :  { %5284 = vmatpush3.msra.mxu1 %v6062_v6 }
 0xd0e   :  { %5285 = vmatprep.subr.mxu1 %v7788_v3 }
 0xd0f   :  { %5286 = vmatpush3.msra.mxu1 %v6070_v7  ;;  %v1028_v43 = vld [vmem:[#allocation2 + $0x20] sm:$0xff] }
 0xdc8   :  { %v786_v51 = vpop.f32.mrf.mxu1 }
 0xdc9   :  { %v790_v52 = vadd.f32 %v6163_v55, %v786_v51  ;;  %v6270_v51 = vld [vmem:[%s7784_s3 + $0x20] sm:$0xff] }
 0xdca   :  { %v5267_v53 = vpop.f32.mrf.mxu1 }
 0xdcb   :  { %v4777_v0 = vclamps-f32 %v790_v52, 1.0  ;;  %v791_v54 = vmul.f32 0.16666667, %v790_v52  ;;  %v6279_v52 = vld [vmem:[%s7784_s3 + $0x28] sm:$0xff]  ;;  %v6284_v53 = vld [vmem:[%s7784_s3 + $0x30] sm:$0xff] }
 0xdcd   :  { %799 = vrot.lane.b32.xlu1 %v4777_v0, %s5990_s9  ;;  %v792_v56 = vadd.f32 0.5, %v791_v54  ;;  %v6293_v0 = vld [vmem:[%s7784_s3 + $0x38] sm:$0xff] }
 0xdce   :  { %vm50_vm6 = vcmp.gt.f32.partialorder %v6293_v0, 0.0 }
 0xdcf   :  { %v793_v59 = vmax.f32 %v792_v56, 0.0 }
 0xdd1   :  { %v794_v60 = vmin.f32 %v793_v59, 1.0 }
 0xdd3   :  { %v797_v6 = vmul.f32 %v794_v60, %v705_v46  ;;  %v1025_v46 = vld [vmem:[#allocation2 + $0x8] sm:$0xff] }
 0xe3f   :  { %v800_v4 = vpop.permute.xlu1 %799 }
 0xe40   :  { %v802_v61 = vmul.f32 %v800_v4, %v794_v60 }
 0xe42   :  { %804 = vrot.lane.b32.xlu0 %v802_v61, %s5991_s12 }
 0xeb4   :  { %v805_v62 = vpop.permute.xlu0 %804 }
 0xeb5   :  { %v807_v63 = vadd.f32 %v805_v62, %v797_v6 }
 0xeb7   :  { %v4778_v1 = vclamps-f32 %v807_v63, 1.0 }
 0xeb9   :  { %811 = vrot.lane.b32.xlu1 %v4778_v1, %s5990_s9 }
 0xf2b   :  { %v812_v7 = vpop.permute.xlu1 %811 }
 0xf2c   :  { %v814_v55 = vmul.f32 %v812_v7, %v794_v60 }
 0xf2e   :  { %816 = vrot.lane.b32.xlu0 %v814_v55, %s5991_s12 }
 0xfa0   :  { %v817_v2 = vpop.permute.xlu0 %816 }
 0xfa1   :  { %819 = vst.msk [vmem:[#allocation2 + $0x28] sm:$0xff] %vm201_vm2, %v817_v2  ;;  %5277 = vmatmul.mubr.msk.f32.vlgmr.msra.gmra.mxu0 %vm201_vm2, %v817_v2 }
 0xfa2   :  { %5306 = vmatprep.mubr.msk.f32.mxu0 %vm1032_vm3, %v6240_v38 }
 0xfa8   :  { %v1029_v42 = vld [vmem:[#allocation2 + $0x28] sm:$0xff] }
0x1061   :  { %v888_v5 = vpop.f32.mrf.mxu0 }
0x1062   :  { %v892_v8 = vadd.f32 %v888_v5, %v6169_v58 }
0x1063   :  { %v5278_v9 = vpop.f32.mrf.mxu0 }
0x1064   :  { %v4780_v10 = vclamps-f32 %v892_v8, 1.0  ;;  %v893_v11 = vmul.f32 0.16666667, %v892_v8 }
0x1066   :  { %901 = vrot.lane.b32.xlu1 %v4780_v10, %s5990_s9  ;;  %v894_v12 = vadd.f32 0.5, %v893_v11 }
0x1068   :  { %v895_v13 = vmax.f32 %v894_v12, 0.0 }
0x106a   :  { %v896_v14 = vmin.f32 %v895_v13, 1.0 }
0x106c   :  { %v899_v17 = vmul.f32 %v896_v14, %v807_v63 }
0x10d8   :  { %v902_v15 = vpop.permute.xlu1 %901 }
0x10d9   :  { %v904_v16 = vmul.f32 %v902_v15, %v896_v14 }
0x10db   :  { %906 = vrot.lane.b32.xlu0 %v904_v16, %s5991_s12 }
0x114d   :  { %v907_v18 = vpop.permute.xlu0 %906 }
0x114e   :  { %v909_v19 = vadd.f32 %v907_v18, %v899_v17  ;;  %v1302_v18 = vld [vmem:[%s7783_s2 + $0x18] sm:$0xff] }
0x1150   :  { %v4781_v20 = vclamps-f32 %v909_v19, 1.0 }
0x1152   :  { %913 = vrot.lane.b32.xlu1 %v4781_v20, %s5990_s9  ;;  %v1300_v20 = vld [vmem:[%s7783_s2 + $0x8] sm:$0xff] }
0x11c4   :  { %v914_v21 = vpop.permute.xlu1 %913 }
0x11c5   :  { %v916_v58 = vmul.f32 %v914_v21, %v896_v14  ;;  %v1299_v21 = vld [vmem:[%s7783_s2] sm:$0xff] }
0x11c7   :  { %918 = vrot.lane.b32.xlu0 %v916_v58, %s5991_s12  ;;  %v5992_v58 = vmov 65  }
0x11c8   :  { %5717 = vset.pattern.permute.xlu1 %v5992_v58 }
0x1239   :  { %v919_v22 = vpop.permute.xlu0 %918 }
0x123a   :  { %921 = vst.msk [vmem:[#allocation2 + $0x30] sm:$0xff] %vm201_vm2, %v919_v22  ;;  %5288 = vmatmul.mubr.msk.f32.vlgmr.msra.gmra.mxu1 %vm201_vm2, %v919_v22 }
0x123b   :  { %5334 = vmatprep.mubr.msk.f32.mxu1 %vm1032_vm3, %v6240_v38 }
0x1241   :  { %v1030_v41 = vld [vmem:[#allocation2 + $0x30] sm:$0xff] }
0x12fa   :  { %v990_v23 = vpop.f32.mrf.mxu1 }
0x12fb   :  { %v994_v24 = vadd.f32 %v6167_v57, %v990_v23 }
0x12fc   :  { %v5289_v25 = vpop.f32.mrf.mxu1 }
0x12fd   :  { %v4783_v26 = vclamps-f32 %v994_v24, 1.0  ;;  %v995_v27 = vmul.f32 0.16666667, %v994_v24 }
0x12ff   :  { %1003 = vrot.lane.b32.xlu1 %v4783_v26, %s5990_s9  ;;  %v996_v28 = vadd.f32 0.5, %v995_v27 }
0x1301   :  { %v997_v29 = vmax.f32 %v996_v28, 0.0 }
0x1303   :  { %v998_v30 = vmin.f32 %v997_v29, 1.0 }
0x1305   :  { %v1001_v33 = vmul.f32 %v998_v30, %v909_v19  ;;  %v1301_v19 = vld [vmem:[%s7783_s2 + $0x10] sm:$0xff] }
0x1371   :  { %v1004_v31 = vpop.permute.xlu1 %1003 }
0x1372   :  { %v1006_v32 = vmul.f32 %v1004_v31, %v998_v30 }
0x1374   :  { %1008 = vrot.lane.b32.xlu0 %v1006_v32, %s5991_s12 }
0x13e6   :  { %v1009_v34 = vpop.permute.xlu0 %1008 }
0x13e7   :  { %v1011_v35 = vadd.f32 %v1009_v34, %v1001_v33 }
0x13e9   :  { %v4784_v36 = vclamps-f32 %v1011_v35, 1.0 }
0x13eb   :  { %1015 = vrot.lane.b32.xlu1 %v4784_v36, %s5990_s9 }
0x145d   :  { %v1016_v37 = vpop.permute.xlu1 %1015 }
0x145e   :  { %v1018_v57 = vmul.f32 %v1016_v37, %v998_v30 }
0x1460   :  { %1020 = vrot.lane.b32.xlu0 %v1018_v57, %s5991_s12 }
0x14d2   :  { %v1021_v39 = vpop.permute.xlu0 %1020 }
0x14d3   :  { %1023 = vst.msk [vmem:[#allocation2 + $0x38] sm:$0xff] %vm201_vm2, %v1021_v39  ;;  %4732 = vst.msk [vmem:[#allocation4] sm:$0xff] %vm201_vm2, %v1021_v39 }
0x14da   :  { %v1031_v40 = vld [vmem:[#allocation2 + $0x38] sm:$0xff] }
0x14db   :  { %5290 = vmatprep.subr.mxu0 %v1031_v40 }
0x14dc   :  { %5291 = vmatpush3.msra.mxu0 %v1031_v40 }
0x14dd   :  { %5292 = vmatprep.subr.mxu0 %v1030_v41 }
0x14de   :  { %5293 = vmatpush3.msra.mxu0 %v1030_v41 }
0x14df   :  { %5294 = vmatprep.subr.mxu0 %v1029_v42 }
0x14e0   :  { %5295 = vmatpush3.msra.mxu0 %v1029_v42 }
0x14e1   :  { %5296 = vmatprep.subr.mxu0 %v1028_v43 }
0x14e2   :  { %5297 = vmatpush3.msra.mxu0 %v1028_v43 }
0x14e3   :  { %5298 = vmatprep.subr.mxu0 %v1027_v44 }
0x14e4   :  { %5299 = vmatpush3.msra.mxu0 %v1027_v44 }
0x14e5   :  { %5300 = vmatprep.subr.mxu0 %v1026_v45 }
0x14e6   :  { %5301 = vmatpush3.msra.mxu0 %v1026_v45 }
0x14e7   :  { %5302 = vmatprep.subr.mxu0 %v1025_v46 }
0x14e8   :  { %5303 = vmatpush3.msra.mxu0 %v1025_v46 }
0x14e9   :  { %5304 = vmatprep.subr.mxu0 %v1024_v47 }
0x14ea   :  { %5305 = vmatpush3.msra.mxu0 %v1024_v47 }
0x14eb   :  { %5307 = vmatmul.mubr.msk.f32.vlgmr.msra.gmra.mxu0 %vm1032_vm3, %v6251_v48  ;;  %5346 = vmatprep.subr.mxu0 %v1302_v18 }
0x14ec   :  { %5309 = vmatprep.mubr.msk.f32.mxu0 %vm1032_vm3, %v6256_v49  ;;  %5347 = vmatpush3.msra.mxu0 %v1302_v18 }
0x14ed   :  { %5348 = vmatprep.subr.mxu0 %v1301_v19 }
0x14ee   :  { %5349 = vmatpush3.msra.mxu0 %v1301_v19 }
0x14ef   :  { %5310 = vmatmul.mubr.msk.f32.gmra.mxu0 %vm1032_vm3, %v6265_v50  ;;  %5350 = vmatprep.subr.mxu0 %v1300_v20 }
0x14f0   :  { %5312 = vmatprep.mubr.msk.f32.mxu0 %vm1032_vm3, %v6270_v51  ;;  %5351 = vmatpush3.msra.mxu0 %v1300_v20 }
0x14f1   :  { %5352 = vmatprep.subr.mxu0 %v1299_v21 }
0x14f2   :  { %5353 = vmatpush3.msra.mxu0 %v1299_v21 }
0x14f3   :  { %5313 = vmatmul.mubr.msk.f32.gmra.mxu0 %vm1032_vm3, %v6279_v52 }
0x14f4   :  { %5315 = vmatprep.mubr.msk.f32.mxu0 %vm1032_vm3, %v6284_v53 }
0x14f7   :  { %5316 = vmatmul.mubr.msk.f32.gmra.mxu0 %vm1032_vm3, %v6293_v0 }
0x15ab   :  { %v5308_v54 = vpop.f32.mrf.mxu0 }
0x15ac   :  { %v6317_v12 = vsub.f32 %v1025_v46, %v5308_v54 }
0x15ad   :  { %v1123_v56 = vpop.f32.mrf.mxu0 }
0x15ae   :  { %v1162_v14 = vsub.f32 %v1024_v47, %v1123_v56  ;;  %v1171_v16 = vmul.f32 %v6317_v12, %v6317_v12 }
0x15af   :  { %v5311_v59 = vpop.f32.mrf.mxu0 }
0x15b0   :  { %v6309_v8 = vsub.f32 %v1027_v44, %v5311_v59  ;;  %v1170_v17 = vmul.f32 %v1162_v14, %v1162_v14 }
0x15b1   :  { %v1133_v60 = vpop.f32.mrf.mxu0 }
0x15b2   :  { %v6313_v10 = vsub.f32 %v1026_v45, %v1133_v60  ;;  %v1173_v13 = vmul.f32 %v6309_v8, %v6309_v8 }
0x15b3   :  { %v5314_v4 = vpop.f32.mrf.mxu0 }
0x15b4   :  { %v6299_v1 = vsub.f32 %v1029_v42, %v5314_v4  ;;  %v1172_v15 = vmul.f32 %v6313_v10, %v6313_v10 }
0x15b5   :  { %v1143_v61 = vpop.f32.mrf.mxu0 }
0x15b6   :  { %v6305_v2 = vsub.f32 %v1028_v43, %v1143_v61  ;;  %v1175_v9 = vmul.f32 %v6299_v1, %v6299_v1 }
0x15b7   :  { %v5317_v6 = vpop.f32.mrf.mxu0 }
0x15b8   :  { %v6297_v62 = vsub.f32 %v1031_v40, %v5317_v6  ;;  %v1174_v11 = vmul.f32 %v6305_v2, %v6305_v2  ;;  %v5993_v6 = vmov 64  }
0x15b9   :  { %v1153_v63 = vpop.f32.mrf.mxu0  ;;  %5716 = vset.pattern.permute.xlu0 %v5993_v6 }
0x15ba   :  { %v1177_v7 = vmul.f32 %v6297_v62, %v6297_v62  ;;  %v6303_v55 = vsub.f32 %v1030_v41, %v1153_v63 }
0x15bc   :  { %v1176_v5 = vmul.f32 %v6303_v55, %v6303_v55  ;;  %5318 = vmatprep.subr.mxu1 %v1177_v7 }
0x15bd   :  { %5319 = vmatpush3.msra.mxu1 %v1177_v7 }
0x15be   :  { %5320 = vmatprep.subr.mxu1 %v1176_v5 }
0x15bf   :  { %5321 = vmatpush3.msra.mxu1 %v1176_v5  ;;  %v5996_v5 = vmov 66  }
0x15c0   :  { %5322 = vmatprep.subr.mxu1 %v1175_v9 }
0x15c1   :  { %5323 = vmatpush3.msra.mxu1 %v1175_v9 }
0x15c2   :  { %5324 = vmatprep.subr.mxu1 %v1174_v11 }
0x15c3   :  { %5325 = vmatpush3.msra.mxu1 %v1174_v11 }
0x15c4   :  { %5326 = vmatprep.subr.mxu1 %v1173_v13 }
0x15c5   :  { %5327 = vmatpush3.msra.mxu1 %v1173_v13 }
0x15c6   :  { %5328 = vmatprep.subr.mxu1 %v1172_v15 }
0x15c7   :  { %5329 = vmatpush3.msra.mxu1 %v1172_v15 }
0x15c8   :  { %5330 = vmatprep.subr.mxu1 %v1171_v16 }
0x15c9   :  { %5331 = vmatpush3.msra.mxu1 %v1171_v16 }
0x15ca   :  { %5332 = vmatprep.subr.mxu1 %v1170_v17 }
0x15cb   :  { %5333 = vmatpush3.msra.mxu1 %v1170_v17 }
0x15cc   :  { %5335 = vmatmul.mubr.msk.f32.vlgmr.msra.gmra.mxu1 %vm1032_vm3, %v6251_v48 }
0x15cd   :  { %5337 = vmatprep.mubr.msk.f32.mxu1 %vm1032_vm3, %v6256_v49 }
0x15d0   :  { %5338 = vmatmul.mubr.msk.f32.gmra.mxu1 %vm1032_vm3, %v6265_v50 }
0x15d1   :  { %5340 = vmatprep.mubr.msk.f32.mxu1 %vm1032_vm3, %v6270_v51 }
0x15d4   :  { %5341 = vmatmul.mubr.msk.f32.gmra.mxu1 %vm1032_vm3, %v6279_v52 }
0x15d5   :  { %5343 = vmatprep.mubr.msk.f32.mxu1 %vm1032_vm3, %v6284_v53 }
0x15d8   :  { %5344 = vmatmul.mubr.msk.f32.gmra.mxu1 %vm1032_vm3, %v6293_v0 }
0x168c   :  { %v5336_v22 = vpop.f32.mrf.mxu1 }
0x168d   :  { %v1250_v23 = vadd.f32 1e-05, %v5336_v22 }
0x168e   :  { %v1244_v24 = vpop.f32.mrf.mxu1 }
0x168f   :  { %v1245_v25 = vadd.f32 1e-05, %v1244_v24  ;;  %5750 = vrsqrt.f32 %v1250_v23 }
0x1690   :  { %v5339_v26 = vpop.f32.mrf.mxu1 }
0x1691   :  { %5752 = vrsqrt.f32 %v1245_v25  ;;  %v1260_v27 = vadd.f32 1e-05, %v5339_v26 }
0x1692   :  { %v1254_v28 = vpop.f32.mrf.mxu1 }
0x1693   :  { %v1255_v29 = vadd.f32 1e-05, %v1254_v28  ;;  %5754 = vrsqrt.f32 %v1260_v27 }
0x1694   :  { %v5342_v30 = vpop.f32.mrf.mxu1 }
0x1695   :  { %5756 = vrsqrt.f32 %v1255_v29  ;;  %v1270_v31 = vadd.f32 1e-05, %v5342_v30 }
0x1696   :  { %v1264_v32 = vpop.f32.mrf.mxu1 }
0x1697   :  { %v1265_v33 = vadd.f32 1e-05, %v1264_v32  ;;  %5758 = vrsqrt.f32 %v1270_v31 }
0x1698   :  { %v5345_v34 = vpop.f32.mrf.mxu1 }
0x1699   :  { %5760 = vrsqrt.f32 %v1265_v33  ;;  %v1280_v35 = vadd.f32 1e-05, %v5345_v34 }
0x169a   :  { %v1274_v36 = vpop.f32.mrf.mxu1 }
0x169b   :  { %v1275_v37 = vadd.f32 1e-05, %v1274_v36  ;;  %5762 = vrsqrt.f32 %v1280_v35 }
0x169c   :  { %v5751_v57 = vpop.eup %5750 }
0x169d   :  { %5764 = vrsqrt.f32 %v1275_v37  ;;  %v1292_v41 = vmul.f32 %v5751_v57, %v6317_v12 }
0x169e   :  { %v5753_v39 = vpop.eup %5752 }
0x169f   :  { %v1291_v40 = vmul.f32 %v5753_v39, %v1162_v14 }
0x16a0   :  { %v5755_v42 = vpop.eup %5754 }
0x16a1   :  { %5354 = vmatprep.mubr.msk.f32.mxu0 %vm201_vm2, %v1291_v40  ;;  %v1294_v45 = vmul.f32 %v5755_v42, %v6309_v8 }
0x16a2   :  { %v5757_v43 = vpop.eup %5756  ;;  %5355 = vmatmul.mubr.msk.f32.vlgmr.msra.gmra.mxu0 %vm201_vm2, %v1292_v41 }
0x16a3   :  { %v1293_v44 = vmul.f32 %v5757_v43, %v6313_v10 }
0x16a4   :  { %v5759_v46 = vpop.eup %5758 }
0x16a5   :  { %5357 = vmatprep.mubr.msk.f32.mxu0 %vm201_vm2, %v1293_v44  ;;  %v1296_v56 = vmul.f32 %v5759_v46, %v6299_v1 }
0x16a6   :  { %v5761_v47 = vpop.eup %5760  ;;  %5358 = vmatmul.mubr.msk.f32.gmra.mxu0 %vm201_vm2, %v1294_v45 }
0x16a7   :  { %v1295_v54 = vmul.f32 %v5761_v47, %v6305_v2  ;;  %v5995_v2 = vmov 67  }
0x16a8   :  { %v5763_v59 = vpop.eup %5762 }
0x16a9   :  { %5360 = vmatprep.mubr.msk.f32.mxu0 %vm201_vm2, %v1295_v54  ;;  %v1298_v61 = vmul.f32 %v5763_v59, %v6297_v62 }
0x16aa   :  { %v5765_v60 = vpop.eup %5764  ;;  %5361 = vmatmul.mubr.msk.f32.gmra.mxu0 %vm201_vm2, %v1296_v56 }
0x16ab   :  { %v1297_v4 = vmul.f32 %v5765_v60, %v6303_v55 }
0x16ad   :  { %5363 = vmatprep.mubr.msk.f32.mxu0 %vm201_vm2, %v1297_v4 }
0x16ae   :  { %5364 = vmatmul.mubr.msk.f32.gmra.mxu0 %vm201_vm2, %v1298_v61 }
0x1762   :  { %v5356_v63 = vpop.f32.mrf.mxu0 }
0x1763   :  { %1827 = vperm.xlu1 %5717, %v5356_v63   ;;  %1442 = vrot.lane.b32.xlu0 %v5356_v63, %s5994_s0 }
0x1764   :  { %v6369_v1 = vpop.f32.mrf.mxu0 }
0x1766   :  { %v6371_v7 = vpop.f32.mrf.mxu0 }
0x1767   :  { %5719 = vset.pattern.permute.xlu1 %v5995_v2  ;;  %1501 = vperm.xlu0 %5716, %v5356_v63  }
0x1768   :  { %2591 = vperm.xlu1 %5719, %v5356_v63   ;;  %v6374_v62 = vpop.f32.mrf.mxu0 }
0x176a   :  { %v6376_v55 = vpop.f32.mrf.mxu0 }
0x176b   :  { %5718 = vset.pattern.permute.xlu0 %v5996_v5 }
0x176c   :  { %2736 = vrot.lane.b32.xlu1 %v5356_v63, %s5997_s25  ;;  %2209 = vperm.xlu0 %5718, %v5356_v63   ;;  %v6380_v8 = vpop.f32.mrf.mxu0 }
0x176d   :  { %5720 = vset.pattern.permute.xlu1 %v5993_v6 }
0x176e   :  { %v6383_v9 = vpop.f32.mrf.mxu0 }
0x176f   :  { %5366 = vmatprep.subr.mxu1 %v6383_v9 }
0x1770   :  { %1972 = vrot.lane.b32.xlu0 %v5356_v63, %s5998_s26  ;;  %1440 = vrot.lane.b32.xlu1 %v6369_v1, %s5994_s0  ;;  %v6389_v10 = vpop.f32.mrf.mxu0 }
0x1771   :  { %5367 = vmatpush3.msra.mxu1 %v6383_v9  ;;  %5728 = vset.pattern.permute.xlu0 %v5993_v6 }
0x1772   :  { %5368 = vmatprep.subr.mxu1 %v6389_v10 }
0x1773   :  { %5369 = vmatpush3.msra.mxu1 %v6389_v10 }
0x1774   :  { %5370 = vmatprep.subr.mxu1 %v6376_v55  ;;  %2354 = vrot.lane.b32.xlu0 %v5356_v63, %s5999_s27 }
0x1775   :  { %1497 = vperm.xlu1 %5720, %v6369_v1   ;;  %5371 = vmatpush3.msra.mxu1 %v6376_v55 }
0x1776   :  { %5372 = vmatprep.subr.mxu1 %v6380_v8 }
0x1777   :  { %5373 = vmatpush3.msra.mxu1 %v6380_v8 }
0x1778   :  { %5374 = vmatprep.subr.mxu1 %v6371_v7  ;;  %1446 = vrot.lane.b32.xlu0 %v6371_v7, %s5994_s0 }
0x1779   :  { %5721 = vset.pattern.permute.xlu1 %v5992_v58  ;;  %5375 = vmatpush3.msra.mxu1 %v6371_v7 }
0x177a   :  { %1823 = vperm.xlu1 %5721, %v6369_v1   ;;  %5376 = vmatprep.subr.mxu1 %v6374_v62 }
0x177b   :  { %5377 = vmatpush3.msra.mxu1 %v6374_v62 }
0x177c   :  { %5378 = vmatprep.subr.mxu1 %v5356_v63  ;;  %1976 = vrot.lane.b32.xlu0 %v6371_v7, %s5998_s26 }
0x177d   :  { %5379 = vmatpush3.msra.mxu1 %v5356_v63 }
0x177e   :  { %5722 = vset.pattern.permute.xlu1 %v5996_v5  ;;  %5380 = vmatprep.subr.mxu1 %v6369_v1 }
0x177f   :  { %2205 = vperm.xlu1 %5722, %v6369_v1   ;;  %5381 = vmatpush3.msra.mxu1 %v6369_v1 }
0x1780   :  { %2358 = vrot.lane.b32.xlu0 %v6371_v7, %s5999_s27 }
0x1783   :  { %5723 = vset.pattern.permute.xlu1 %v5995_v2 }
0x1784   :  { %2587 = vperm.xlu1 %5723, %v6369_v1   ;;  %1505 = vperm.xlu0 %5728, %v6374_v62  }
0x1788   :  { %1970 = vrot.lane.b32.xlu1 %v6369_v1, %s5998_s26  ;;  %5729 = vset.pattern.permute.xlu0 %v5992_v58 }
0x1789   :  { %1831 = vperm.xlu0 %5729, %v6374_v62   ;;  %5724 = vset.pattern.permute.xlu1 %v5993_v6 }
0x178c   :  { %1509 = vperm.xlu1 %5724, %v6371_v7  }
0x178d   :  { %5730 = vset.pattern.permute.xlu0 %v5996_v5 }
0x178e   :  { %2213 = vperm.xlu0 %5730, %v6374_v62  }
0x1790   :  { %5725 = vset.pattern.permute.xlu1 %v5992_v58 }
0x1791   :  { %1835 = vperm.xlu1 %5725, %v6371_v7  }
0x1792   :  { %5731 = vset.pattern.permute.xlu0 %v5995_v2 }
0x1793   :  { %2595 = vperm.xlu0 %5731, %v6374_v62  }
0x1795   :  { %5726 = vset.pattern.permute.xlu1 %v5996_v5 }
0x1796   :  { %2217 = vperm.xlu1 %5726, %v6371_v7  }
0x1797   :  { %2356 = vrot.lane.b32.xlu0 %v6374_v62, %s5999_s27 }
0x1798   :  { %5732 = vset.pattern.permute.xlu0 %v5993_v6 }
0x179a   :  { %5727 = vset.pattern.permute.xlu1 %v5995_v2 }
0x179b   :  { %2599 = vperm.xlu1 %5727, %v6371_v7   ;;  %1450 = vrot.lane.b32.xlu0 %v6376_v55, %s5994_s0 }
0x179f   :  { %2740 = vrot.lane.b32.xlu1 %v6371_v7, %s5997_s25  ;;  %1517 = vperm.xlu0 %5732, %v6376_v55  }
0x17a0   :  { %5733 = vset.pattern.permute.xlu1 %v5992_v58 }
0x17a3   :  { %1444 = vrot.lane.b32.xlu1 %v6374_v62, %s5994_s0  ;;  %5734 = vset.pattern.permute.xlu0 %v5996_v5 }
0x17a4   :  { %2225 = vperm.xlu0 %5734, %v6376_v55  }
0x17a7   :  { %1974 = vrot.lane.b32.xlu1 %v6374_v62, %s5998_s26 }
0x17a8   :  { %1980 = vrot.lane.b32.xlu0 %v6376_v55, %s5998_s26 }
0x17a9   :  { %5744 = vset.pattern.permute.xlu0 %v5993_v6 }
0x17ab   :  { %2738 = vrot.lane.b32.xlu1 %v6374_v62, %s5997_s25 }
0x17ac   :  { %2360 = vrot.lane.b32.xlu0 %v6380_v8, %s5999_s27 }
0x17af   :  { %1843 = vperm.xlu1 %5733, %v6376_v55  }
0x17b0   :  { %1454 = vrot.lane.b32.xlu0 %v6383_v9, %s5994_s0 }
0x17b3   :  { %5735 = vset.pattern.permute.xlu1 %v5995_v2 }
0x17b4   :  { %2607 = vperm.xlu1 %5735, %v6376_v55   ;;  %2366 = vrot.lane.b32.xlu0 %v6383_v9, %s5999_s27 }
0x17b8   :  { %2362 = vrot.lane.b32.xlu1 %v6376_v55, %s5999_s27  ;;  %1521 = vperm.xlu0 %5744, %v6389_v10  }
0x17b9   :  { %5736 = vset.pattern.permute.xlu1 %v5993_v6 }
0x17bc   :  { %2744 = vrot.lane.b32.xlu1 %v6376_v55, %s5997_s25  ;;  %5745 = vset.pattern.permute.xlu0 %v5992_v58 }
0x17bd   :  { %1847 = vperm.xlu0 %5745, %v6389_v10  }
0x17c0   :  { %1448 = vrot.lane.b32.xlu1 %v6380_v8, %s5994_s0 }
0x17c1   :  { %1982 = vrot.lane.b32.xlu0 %v6389_v10, %s5998_s26 }
0x17c4   :  { %1513 = vperm.xlu1 %5736, %v6380_v8  }
0x17c8   :  { %5737 = vset.pattern.permute.xlu1 %v5992_v58 }
0x17c9   :  { %1839 = vperm.xlu1 %5737, %v6380_v8  }
0x17cd   :  { %5738 = vset.pattern.permute.xlu1 %v5996_v5 }
0x17ce   :  { %2221 = vperm.xlu1 %5738, %v6380_v8  }
0x17d2   :  { %5739 = vset.pattern.permute.xlu1 %v5995_v2 }
0x17d3   :  { %2603 = vperm.xlu1 %5739, %v6380_v8  }
0x17d5   :  { %v1443_v11 = vpop.permute.xlu0 %1442 }
0x17d7   :  { %1978 = vrot.lane.b32.xlu1 %v6380_v8, %s5998_s26 }
0x17d8   :  { %5740 = vset.pattern.permute.xlu1 %v5993_v6 }
0x17db   :  { %2742 = vrot.lane.b32.xlu1 %v6380_v8, %s5997_s25 }
0x17de   :  { %v6489_v12 = vpop.permute.xlu1 %1827 }
0x17df   :  { %1525 = vperm.xlu1 %5740, %v6383_v9  }
0x17e2   :  { %v6492_v13 = vpop.permute.xlu0 %1501 }
0x17e3   :  { %5741 = vset.pattern.permute.xlu1 %v5992_v58  ;;  %v6495_v14 = vpop.permute.xlu1 %2591 }
0x17e4   :  { %1851 = vperm.xlu1 %5741, %v6383_v9  }
0x17e7   :  { %v6498_v15 = vpop.permute.xlu1 %2736  ;;  %v6500_v16 = vpop.permute.xlu0 %2209 }
0x17e8   :  { %7801 = vst [vmem:[#allocation7_spill] sm:$0xff] %v6498_v15  ;;  %5742 = vset.pattern.permute.xlu1 %v5996_v5 }
0x17e9   :  { %2233 = vperm.xlu1 %5742, %v6383_v9  }
0x17eb   :  { %v6504_v17 = vpop.permute.xlu0 %1972  ;;  %v1441_v18 = vpop.permute.xlu1 %1440 }
0x17ec   :  { %1464 = vxpose.xlu0.b32.start [1/8] (short) (narrow) %v1441_v18, 8 }
0x17ed   :  { %5743 = vset.pattern.permute.xlu1 %v5995_v2 }
0x17ee   :  { %2615 = vperm.xlu1 %5743, %v6383_v9  }
0x17ef   :  { %v6508_v19 = vpop.permute.xlu0 %2354 }
0x17f0   :  { %7802 = vst [vmem:[#allocation8_spill] sm:$0xff] %v6508_v19  ;;  %v6510_v20 = vpop.permute.xlu1 %1497  ;;  %1465 = vxpose.xlu0.b32.cont [2/8] (short) (narrow) %v1443_v11, 8 }
0x17f2   :  { %1984 = vrot.lane.b32.xlu1 %v6383_v9, %s5998_s26 }
0x17f3   :  { %v1447_v21 = vpop.permute.xlu0 %1446  ;;  %5746 = vset.pattern.permute.xlu1 %v5996_v5 }
0x17f5   :  { %v6515_v58 = vpop.permute.xlu1 %1823 }
0x17f6   :  { %2748 = vrot.lane.b32.xlu1 %v6383_v9, %s5997_s25 }
0x17f7   :  { %v6519_v22 = vpop.permute.xlu0 %1976 }
0x17fa   :  { %v6521_v23 = vpop.permute.xlu1 %2205  ;;  %1452 = vrot.lane.b32.xlu1 %v6389_v10, %s5994_s0 }
0x17fb   :  { %v6525_v24 = vpop.permute.xlu0 %2358 }
0x17fe   :  { %2229 = vperm.xlu1 %5746, %v6389_v10  }
0x17ff   :  { %v6528_v25 = vpop.permute.xlu1 %2587  ;;  %v6530_v26 = vpop.permute.xlu0 %1505 }
0x1802   :  { %5747 = vset.pattern.permute.xlu1 %v5995_v2 }
0x1803   :  { %v6533_v27 = vpop.permute.xlu1 %1970  ;;  %2611 = vperm.xlu1 %5747, %v6389_v10  }
0x1804   :  { %v6536_v28 = vpop.permute.xlu0 %1831 }
0x1807   :  { %v6538_v29 = vpop.permute.xlu1 %1509  ;;  %2364 = vrot.lane.b32.xlu1 %v6389_v10, %s5999_s27 }
0x1809   :  { %v6542_v30 = vpop.permute.xlu0 %2213 }
0x180b   :  { %2746 = vrot.lane.b32.xlu1 %v6389_v10, %s5997_s25 }
0x180c   :  { %v6546_v31 = vpop.permute.xlu1 %1835 }
0x180e   :  { %v6548_v32 = vpop.permute.xlu0 %2595 }
0x1811   :  { %v6550_v33 = vpop.permute.xlu1 %2217 }
0x1812   :  { %v6552_v34 = vpop.permute.xlu0 %2356 }
0x1813   :  { %7803 = vst [vmem:[#allocation9_spill] sm:$0xff] %v6552_v34 }
0x1816   :  { %v6554_v35 = vpop.permute.xlu1 %2599  ;;  %v1451_v36 = vpop.permute.xlu0 %1450 }
0x181a   :  { %v6556_v37 = vpop.permute.xlu1 %2740  ;;  %v6558_v57 = vpop.permute.xlu0 %1517 }
0x181b   :  { %7804 = vst [vmem:[#allocation10_spill] sm:$0xff] %v6556_v37 }
0x181e   :  { %v1445_v39 = vpop.permute.xlu1 %1444 }
0x181f   :  { %1466 = vxpose.xlu0.b32.cont [3/8] (short) (narrow) %v1445_v39, 8  ;;  %v6560_v40 = vpop.permute.xlu0 %2225  ;;  %v1528_v39 = vlaneseq }
0x1822   :  { %v1975_v41 = vpop.permute.xlu1 %1974 }
0x1823   :  { %1467 = vxpose.xlu0.b32.cont [4/8] (short) (narrow) %v1447_v21, 8  ;;  %v1981_v42 = vpop.permute.xlu0 %1980 }
0x1826   :  { %v6562_v43 = vpop.permute.xlu1 %2738 }
0x1827   :  { %7805 = vst [vmem:[#allocation11_spill] sm:$0xff] %v6562_v43  ;;  %v6564_v44 = vpop.permute.xlu0 %2360 }
0x182a   :  { %v6566_v45 = vpop.permute.xlu1 %1843 }
0x182b   :  { %v1455_v46 = vpop.permute.xlu0 %1454 }
0x182f   :  { %v6568_v47 = vpop.permute.xlu1 %2607  ;;  %v6570_v54 = vpop.permute.xlu0 %2366 }
0x1830   :  { %5422 = vmatprep.subr.mxu1 %v6570_v54 }
0x1833   :  { %v6573_v56 = vpop.permute.xlu1 %2362  ;;  %v6589_v5 = vpop.permute.xlu0 %1521 }
0x1837   :  { %v6575_v59 = vpop.permute.xlu1 %2744 }
0x1838   :  { %v6593_v9 = vpop.permute.xlu0 %1847 }
0x183b   :  { %v1449_v60 = vpop.permute.xlu1 %1448 }
0x183c   :  { %1468 = vxpose.xlu0.b32.cont [5/8] (short) (narrow) %v1449_v60, 8  ;;  %v1983_v18 = vpop.permute.xlu0 %1982 }
0x183f   :  { %v6577_v4 = vpop.permute.xlu1 %1513 }
0x1840   :  { %1469 = vxpose.xlu0.b32.cont [6/8] (short) (narrow) %v1451_v36, 8 }
0x1844   :  { %v6579_v61 = vpop.permute.xlu1 %1839 }
0x1849   :  { %v6581_v6 = vpop.permute.xlu1 %2221 }
0x184e   :  { %v6583_v63 = vpop.permute.xlu1 %2603 }
0x1852   :  { %v1979_v7 = vpop.permute.xlu1 %1978 }
0x1856   :  { %v6585_v2 = vpop.permute.xlu1 %2742 }
0x1857   :  { %7806 = vst [vmem:[#allocation12_spill] sm:$0xff] %v6585_v2 }
0x185a   :  { %v6587_v62 = vpop.permute.xlu1 %1525 }
0x185f   :  { %v1852_v55 = vpop.permute.xlu1 %1851 }
0x1864   :  { %v6591_v8 = vpop.permute.xlu1 %2233 }
0x1869   :  { %v6595_v10 = vpop.permute.xlu1 %2615 }
0x186d   :  { %v1985_v11 = vpop.permute.xlu1 %1984 }
0x186e   :  { %5394 = vmatprep.subr.mxu0 %v1985_v11 }
0x186f   :  { %5395 = vmatpush3.msra.mxu0 %v1985_v11 }
0x1870   :  { %5396 = vmatprep.subr.mxu0 %v1983_v18 }
0x1871   :  { %v6597_v21 = vpop.permute.xlu1 %2748  ;;  %5397 = vmatpush3.msra.mxu0 %v1983_v18  ;;  %v7790_v18 = vmov -1e+30  }
0x1872   :  { %5398 = vmatprep.subr.mxu0 %v1981_v42  ;;  %v6625_v48 = vsel %vm44_vm4, 0.0, %v7790_v18  ;;  %v6628_v38 = vsel %vm43_vm5, 0.0, %v7790_v18  ;;  %v6631_v49 = vsel %vm50_vm6, 0.0, %v7790_v18  ;;  %v6634_v0 = vsel %vm45_vm7, 0.0, %v7790_v18 }
0x1873   :  { %5399 = vmatpush3.msra.mxu0 %v1981_v42  ;;  %v6606_v42 = vshrl.u32 %v1528_v39, 7  ;;  %7808 = vst [vmem:[#allocation14_spill] sm:$0xff] %v6631_v49 }
0x1874   :  { %5400 = vmatprep.subr.mxu0 %v1979_v7 }
0x1875   :  { %5401 = vmatpush3.msra.mxu0 %v1979_v7  ;;  %v1453_v36 = vpop.permute.xlu1 %1452  ;;  %7807 = vst [vmem:[#allocation13_spill] sm:$0xff] %v6606_v42  ;;  %v7787_v60 = vsub.s32 0, %v6606_v42 }
0x1876   :  { %5402 = vmatprep.subr.mxu0 %v6519_v22  ;;  %1470 = vxpose.xlu0.b32.cont [7/8] (short) (narrow) %v1453_v36, 8 }
0x1877   :  { %5403 = vmatpush3.msra.mxu0 %v6519_v22  ;;  %v1856_v22 = vsub.s32 1, %v6606_v42 }
0x1878   :  { %5404 = vmatprep.subr.mxu0 %v1975_v41 }
0x1879   :  { %5405 = vmatpush3.msra.mxu0 %v1975_v41  ;;  %v2238_v41 = vsub.s32 2, %v6606_v42 }
0x187a   :  { %5406 = vmatprep.subr.mxu0 %v6504_v17  ;;  %1471 = vxpose.xlu0.b32.end [8/8] (short) (narrow) %v1455_v46, 8 }
0x187b   :  { %5407 = vmatpush3.msra.mxu0 %v6504_v17 }
0x187c   :  { %5408 = vmatprep.subr.mxu0 %v6533_v27 }
0x187d   :  { %5409 = vmatpush3.msra.mxu0 %v6533_v27  ;;  %v2620_v27 = vsub.s32 3, %v6606_v42 }
0x187e   :  { %5450 = vmatprep.subr.mxu0 %v6597_v21 }
0x18da   :  { %v1480_v17 = vpop.trf.xlu0 }
0x18db   :  { %v6618_v46 = vrot.slane %v1480_v17, %v7787_v60  ;;  %v6620_v7 = vrot.slane %v1480_v17, %v1856_v22  ;;  %v6622_v11 = vrot.slane %v1480_v17, %v2238_v41  ;;  %v6657_v19 = vrot.slane %v1480_v17, %v2620_v27 }
0x18dd   :  { %v1859_v36 = vadd.f32 %v6620_v7, %v6489_v12  ;;  %v1532_v39 = vadd.f32 %v6618_v46, %v6510_v20  ;;  %v1865_v22 = vadd.f32 %v6620_v7, %v1852_v55  ;;  %v1533_v41 = vadd.f32 %v6618_v46, %v6492_v13 }
0x18de   :  { %v2240_v60 = vadd.f32 %v6622_v11, %v6521_v23  ;;  %v1858_v3 = vadd.f32 %v6620_v7, %v6515_v58  ;;  %v2241_v18 = vadd.f32 %v6622_v11, %v6500_v16  ;;  %v1534_v12 = vadd.f32 %v6618_v46, %v6530_v26 }
0x18df   :  { %vm1867_vm8 = vcmp.ge.f32.partialorder %v1859_v36, 0.0  ;;  %v1875_v42 = vmul.f32 0.2, %v1859_v36  ;;  %vm1540_vm9 = vcmp.ge.f32.partialorder %v1532_v39, 0.0  ;;  %v1548_v20 = vmul.f32 0.2, %v1532_v39 }
0x18e0   :  { %vm1873_vm10 = vcmp.ge.f32.partialorder %v1865_v22, 0.0  ;;  %v1881_v55 = vmul.f32 0.2, %v1865_v22  ;;  %vm1541_vm11 = vcmp.ge.f32.partialorder %v1533_v41, 0.0  ;;  %v1549_v13 = vmul.f32 0.2, %v1533_v41 }
0x18e1   :  { %v1883_v15 = vsel %vm1867_vm8, %v1859_v36, %v1875_v42  ;;  %v1556_v43 = vsel %vm1540_vm9, %v1532_v39, %v1548_v20  ;;  %vm2248_vm12 = vcmp.ge.f32.partialorder %v2240_v60, 0.0  ;;  %v2256_v23 = vmul.f32 0.2, %v2240_v60 }
0x18e2   :  { %v6652_v58 = vadd.f32 %v1883_v15, %v6625_v48  ;;  %v6655_v16 = vadd.f32 %v1556_v43, %v6628_v38  ;;  %v1889_v37 = vsel %vm1873_vm10, %v1865_v22, %v1881_v55  ;;  %v1557_v26 = vsel %vm1541_vm11, %v1533_v41, %v1549_v13 }
0x18e3   :  { %v6660_v2 = vadd.f32 %v1889_v37, %v6631_v49  ;;  %v2264_v34 = vsel %vm2248_vm12, %v2240_v60, %v2256_v23  ;;  %vm1866_vm13 = vcmp.ge.f32.partialorder %v1858_v3, 0.0  ;;  %v6667_v15 = vadd.f32 %v1557_v26, %v6625_v48 }
0x18e4   :  { %v1901_v42 = vsel %vm1032_vm3, %v6652_v58, -inf  ;;  %v1572_v36 = vsel %vm1032_vm3, %v6655_v16, -inf  ;;  %v1874_v43 = vmul.f32 0.2, %v1858_v3  ;;  %v6670_v17 = vadd.f32 %v2264_v34, %v6628_v38 }
0x18e5   :  { %1902 = vmax.xlane.f32.xlu0 %v1901_v42  ;;  %1573 = vmax.xlane.f32.xlu1 %v1572_v36  ;;  %vm2249_vm14 = vcmp.ge.f32.partialorder %v2241_v18, 0.0  ;;  %v2257_v37 = vmul.f32 0.2, %v2241_v18  ;;  %v1919_v60 = vsel %vm1032_vm3, %v6660_v2, -inf  ;;  %vm1542_vm0 = vcmp.ge.f32.partialorder %v1534_v12, 0.0 }
0x18e6   :  { %v1882_v27 = vsel %vm1866_vm13, %v1858_v3, %v1874_v43  ;;  %v1550_v39 = vmul.f32 0.2, %v1534_v12  ;;  %v2622_v20 = vadd.f32 %v6657_v19, %v6528_v25  ;;  %v1535_v34 = vadd.f32 %v6618_v46, %v6538_v29 }
0x18e7   :  { %v6676_v22 = vadd.f32 %v1882_v27, %v6628_v38  ;;  %v2265_v41 = vsel %vm2249_vm14, %v2241_v18, %v2257_v37  ;;  %v1575_v55 = vsel %vm1032_vm3, %v6667_v15, -inf  ;;  %v2242_v23 = vadd.f32 %v6622_v11, %v6542_v30 }
0x18e8   :  { %v1558_v13 = vsel %vm1542_vm0, %v1534_v12, %v1550_v39  ;;  %v1860_v3 = vadd.f32 %v6620_v7, %v6536_v28  ;;  %vm2630_vm4 = vcmp.ge.f32.partialorder %v2622_v20, 0.0  ;;  %v2638_v18 = vmul.f32 0.2, %v2622_v20 }
0x18e9   :  { %1920 = vmax.xlane.f32.xlu0 %v1919_v60  ;;  %1576 = vmax.xlane.f32.xlu1 %v1575_v55  ;;  %v7809_v26 = vmov -1e+30   ;;  %v2280_v29 = vsel %vm1032_vm3, %v6670_v17, -inf  ;;  %v6696_v12 = vadd.f32 %v2265_v41, %v6625_v48  ;;  %vm1543_vm5 = vcmp.ge.f32.partialorder %v1535_v34, 0.0 }
0x18ea   :  { %v6691_v25 = vsel %vm46_vm15, 0.0, %v7809_v26  ;;  %v1551_v30 = vmul.f32 0.2, %v1535_v34  ;;  %v1898_v28 = vsel %vm1032_vm3, %v6676_v22, -inf  ;;  %v6701_v42 = vadd.f32 %v1558_v13, %v6634_v0 }
0x18eb   :  { %v2646_v36 = vsel %vm2630_vm4, %v2622_v20, %v2638_v18  ;;  %v2258_v43 = vmul.f32 0.2, %v2242_v23  ;;  %vm2250_vm6 = vcmp.ge.f32.partialorder %v2242_v23, 0.0  ;;  %v1876_v50 = vmul.f32 0.2, %v1860_v3 }
0x18ec   :  { %v1559_v37 = vsel %vm1543_vm5, %v1535_v34, %v1551_v30  ;;  %v2625_v60 = vadd.f32 %v6657_v19, %v6554_v35  ;;  %vm1868_vm7 = vcmp.ge.f32.partialorder %v1860_v3, 0.0  ;;  %v1861_v27 = vadd.f32 %v6620_v7, %v6546_v31 }
0x18ed   :  { %2281 = vmax.xlane.f32.xlu0 %v2280_v29  ;;  %1899 = vmax.xlane.f32.xlu1 %v1898_v28  ;;  %v2283_v39 = vsel %vm1032_vm3, %v6696_v12, -inf  ;;  %v6710_v41 = vadd.f32 %v2646_v36, %v6628_v38  ;;  %v1578_v20 = vsel %vm1032_vm3, %v6701_v42, -inf  ;;  %v6715_v34 = vadd.f32 %v1559_v37, %v6691_v25 }
0x18ee   :  { %v2266_v55 = vsel %vm2250_vm6, %v2242_v23, %v2258_v43  ;;  %v2641_v35 = vmul.f32 0.2, %v2625_v60  ;;  %v1884_v13 = vsel %vm1868_vm7, %v1860_v3, %v1876_v50  ;;  %vm2633_vm8 = vcmp.ge.f32.partialorder %v2625_v60, 0.0 }
0x18ef   :  { %v1877_v18 = vmul.f32 0.2, %v1861_v27  ;;  %v2245_v31 = vadd.f32 %v6622_v11, %v6560_v40  ;;  %vm1869_vm9 = vcmp.ge.f32.partialorder %v1861_v27, 0.0  ;;  %v1536_v29 = vadd.f32 %v6618_v46, %v6577_v4 }
0x18f0   :  { %v2662_v30 = vsel %vm1032_vm3, %v6710_v41, -inf  ;;  %vm48_vm10 = vcmp.gt.f32.partialorder %v6279_v52, 0.0  ;;  %vm47_vm11 = vcmp.gt.f32.partialorder %v6270_v51, 0.0  ;;  %v1581_v23 = vsel %vm1032_vm3, %v6715_v34, -inf }
0x18f1   :  { %2284 = vmax.xlane.f32.xlu0 %v2283_v39  ;;  %1579 = vmax.xlane.f32.xlu1 %v1578_v20  ;;  %v6728_v3 = vadd.f32 %v2266_v55, %v6634_v0  ;;  %v6731_v40 = vadd.f32 %v1884_v13, %v6634_v0  ;;  %v2649_v28 = vsel %vm2633_vm8, %v2625_v60, %v2641_v35  ;;  %v2261_v43 = vmul.f32 0.2, %v2245_v31 }
0x18f2   :  { %v1885_v36 = vsel %vm1869_vm9, %v1861_v27, %v1877_v18  ;;  %v2627_v4 = vadd.f32 %v6657_v19, %v6568_v47  ;;  %v1537_v52 = vadd.f32 %v6618_v46, %v6558_v57  ;;  %vm2253_vm12 = vcmp.ge.f32.partialorder %v2245_v31, 0.0 }
0x18f3   :  { %v1552_v51 = vmul.f32 0.2, %v1536_v29  ;;  %v6738_v37 = vsel %vm48_vm10, 0.0, %v7809_v26  ;;  %v6741_v50 = vsel %vm47_vm11, 0.0, %v7809_v26  ;;  %vm1544_vm13 = vcmp.ge.f32.partialorder %v1536_v29, 0.0 }
0x18f4   :  { %v2286_v60 = vsel %vm1032_vm3, %v6728_v3, -inf  ;;  %v1904_v47 = vsel %vm1032_vm3, %v6731_v40, -inf  ;;  %v6748_v27 = vadd.f32 %v2649_v28, %v6691_v25  ;;  %v6751_v57 = vadd.f32 %v1885_v36, %v6691_v25 }
0x18f5   :  { %2663 = vmax.xlane.f32.xlu0 %v2662_v30  ;;  %1582 = vmax.xlane.f32.xlu1 %v1581_v23  ;;  %v2269_v39 = vsel %vm2253_vm12, %v2245_v31, %v2261_v43  ;;  %v2643_v20 = vmul.f32 0.2, %v2627_v4  ;;  %v1553_v55 = vmul.f32 0.2, %v1537_v52  ;;  %v2247_v35 = vadd.f32 %v6622_v11, %v6591_v8 }
0x18f6   :  { %v1560_v13 = vsel %vm1544_vm13, %v1536_v29, %v1552_v51  ;;  %vm2635_vm14 = vcmp.ge.f32.partialorder %v2627_v4, 0.0  ;;  %vm1545_vm15 = vcmp.ge.f32.partialorder %v1537_v52, 0.0  ;;  %v1862_v18 = vadd.f32 %v6620_v7, %v6579_v61 }
0x18f7   :  { %v2671_v30 = vsel %vm1032_vm3, %v6748_v27, -inf  ;;  %v1907_v23 = vsel %vm1032_vm3, %v6751_v57, -inf  ;;  %v6762_v31 = vadd.f32 %v2269_v39, %v6738_v37  ;;  %v6765_v28 = vadd.f32 %v1560_v13, %v6741_v50 }
0x18f8   :  { %v2651_v8 = vsel %vm2635_vm14, %v2627_v4, %v2643_v20  ;;  %v1561_v36 = vsel %vm1545_vm15, %v1537_v52, %v1553_v55  ;;  %v2263_v29 = vmul.f32 0.2, %v2247_v35  ;;  %vm2255_vm0 = vcmp.ge.f32.partialorder %v2247_v35, 0.0 }
0x18f9   :  { %2287 = vmax.xlane.f32.xlu0 %v2286_v60  ;;  %1905 = vmax.xlane.f32.xlu1 %v1904_v47  ;;  %v1878_v43 = vmul.f32 0.2, %v1862_v18  ;;  %v2629_v61 = vadd.f32 %v6657_v19, %v6595_v10  ;;  %v1863_v51 = vadd.f32 %v6620_v7, %v6566_v45  ;;  %vm1870_vm4 = vcmp.ge.f32.partialorder %v1862_v18, 0.0 }
0x18fa   :  { %v2295_v60 = vsel %vm1032_vm3, %v6762_v31, -inf  ;;  %v1584_v47 = vsel %vm1032_vm3, %v6765_v28, -inf  ;;  %v6776_v4 = vadd.f32 %v2651_v8, %v6738_v37  ;;  %v6779_v52 = vadd.f32 %v1561_v36, %v6738_v37 }
0x18fb   :  { %v2271_v39 = vsel %vm2255_vm0, %v2247_v35, %v2263_v29  ;;  %v1886_v10 = vsel %vm1870_vm4, %v1862_v18, %v1878_v43  ;;  %v2645_v20 = vmul.f32 0.2, %v2629_v61  ;;  %v1879_v55 = vmul.f32 0.2, %v1863_v51 }
0x18fc   :  { %v1538_v45 = vadd.f32 %v6618_v46, %v6589_v5  ;;  %vm2637_vm5 = vcmp.ge.f32.partialorder %v2629_v61, 0.0  ;;  %vm1871_vm6 = vcmp.ge.f32.partialorder %v1863_v51, 0.0  ;;  %v2677_v13 = vsel %vm1032_vm3, %v6776_v4, -inf }
0x18fd   :  { %2672 = vmax.xlane.f32.xlu0 %v2671_v30  ;;  %1908 = vmax.xlane.f32.xlu1 %v1907_v23  ;;  %v1587_v30 = vsel %vm1032_vm3, %v6779_v52, -inf  ;;  %v6788_v23 = vadd.f32 %v2271_v39, %v6631_v49  ;;  %v6791_v35 = vadd.f32 %v1886_v10, %v6741_v50  ;;  %v2653_v18 = vsel %vm2637_vm5, %v2629_v61, %v2645_v20 }
0x18fe   :  { %v1887_v8 = vsel %vm1871_vm6, %v1863_v51, %v1879_v55  ;;  %v1554_v36 = vmul.f32 0.2, %v1538_v45  ;;  %v1539_v5 = vadd.f32 %v6618_v46, %v6587_v62  ;;  %vm49_vm7 = vcmp.gt.f32.partialorder %v6284_v53, 0.0 }
0x18ff   :  { %vm1546_vm8 = vcmp.ge.f32.partialorder %v1538_v45, 0.0  ;;  %v2301_v29 = vsel %vm1032_vm3, %v6788_v23, -inf  ;;  %v1910_v43 = vsel %vm1032_vm3, %v6791_v35, -inf  ;;  %v6807_v61 = vsel %vm49_vm7, 0.0, %v7809_v26 }
0x1900   :  { %7810 = vst [vmem:[#allocation15_spill] sm:$0xff] %v6807_v61  ;;  %v1562_v62 = vsel %vm1546_vm8, %v1538_v45, %v1554_v36  ;;  %v1555_v53 = vmul.f32 0.2, %v1539_v5  ;;  %v1864_v46 = vadd.f32 %v6620_v7, %v6593_v9  ;;  %vm1547_vm9 = vcmp.ge.f32.partialorder %v1539_v5, 0.0 }
0x1901   :  { %2296 = vmax.xlane.f32.xlu0 %v2295_v60  ;;  %1585 = vmax.xlane.f32.xlu1 %v1584_v47  ;;  %v6801_v60 = vadd.f32 %v2653_v18, %v6631_v49  ;;  %v6804_v47 = vadd.f32 %v1887_v8, %v6738_v37  ;;  %v6816_v10 = vadd.f32 %v1562_v62, %v6807_v61  ;;  %vm1813_vm5 = vcmask 130048  }
0x1902   :  { %v1563_v20 = vsel %vm1547_vm9, %v1539_v5, %v1555_v53  ;;  %v1880_v26 = vmul.f32 0.2, %v1864_v46  ;;  %v2623_v55 = vadd.f32 %v6657_v19, %v6495_v14  ;;  %vm1872_vm10 = vcmp.ge.f32.partialorder %v1864_v46, 0.0 }
0x1903   :  { %v2683_v51 = vsel %vm1032_vm3, %v6801_v60, -inf  ;;  %v1913_v39 = vsel %vm1032_vm3, %v6804_v47, -inf  ;;  %v1590_v9 = vsel %vm1032_vm3, %v6816_v10, -inf  ;;  %v6823_v7 = vadd.f32 %v1563_v20, %v6631_v49 }
0x1904   :  { %v1888_v45 = vsel %vm1872_vm10, %v1864_v46, %v1880_v26  ;;  %vm2631_vm11 = vcmp.ge.f32.partialorder %v2623_v55, 0.0  ;;  %v2624_v5 = vadd.f32 %v6657_v19, %v6548_v32  ;;  %v2244_v53 = vadd.f32 %v6622_v11, %v6581_v6  ;;  %v2230_v26 = vpop.permute.xlu1 %2229 }
0x1905   :  { %2678 = vmax.xlane.f32.xlu0 %v2677_v13  ;;  %1588 = vmax.xlane.f32.xlu1 %v1587_v30  ;;  %v2639_v13 = vmul.f32 0.2, %v2623_v55  ;;  %v2243_v30 = vadd.f32 %v6622_v11, %v6550_v33  ;;  %v1593_v18 = vsel %vm1032_vm3, %v6823_v7, -inf  ;;  %v6830_v8 = vadd.f32 %v1888_v45, %v6807_v61 }
0x1906   :  { %v2640_v62 = vmul.f32 0.2, %v2624_v5  ;;  %vm2632_vm13 = vcmp.ge.f32.partialorder %v2624_v5, 0.0  ;;  %v2626_v20 = vadd.f32 %v6657_v19, %v6583_v63  ;;  %vm2252_vm14 = vcmp.ge.f32.partialorder %v2244_v53, 0.0 }
0x1907   :  { %v2647_v14 = vsel %vm2631_vm11, %v2623_v55, %v2639_v13  ;;  %v2259_v36 = vmul.f32 0.2, %v2243_v30  ;;  %vm2251_vm12 = vcmp.ge.f32.partialorder %v2243_v30, 0.0  ;;  %v2246_v13 = vadd.f32 %v6622_v11, %v2230_v26 }
0x1908   :  { %v2648_v32 = vsel %vm2632_vm13, %v2624_v5, %v2640_v62  ;;  %v2642_v45 = vmul.f32 0.2, %v2626_v20  ;;  %vm2634_vm15 = vcmp.ge.f32.partialorder %v2626_v20, 0.0  ;;  %vm2195_vm6 = vcmask 261248  }
0x1909   :  { %2302 = vmax.xlane.f32.xlu0 %v2301_v29  ;;  %1911 = vmax.xlane.f32.xlu1 %v1910_v43  ;;  %v1916_v29 = vsel %vm1032_vm3, %v6830_v8, -inf  ;;  %v6837_v43 = vadd.f32 %v2647_v14, %v6625_v48  ;;  %v2267_v33 = vsel %vm2251_vm12, %v2243_v30, %v2259_v36  ;;  %v6851_v6 = vadd.f32 %v2648_v32, %v6634_v0  ;;  %v2612_v30 = vpop.permute.xlu1 %2611 }
0x190a   :  { %v2650_v14 = vsel %vm2634_vm15, %v2626_v20, %v2642_v45  ;;  %v2262_v36 = vmul.f32 0.2, %v2246_v13  ;;  %v2628_v5 = vadd.f32 %v6657_v19, %v2612_v30  ;;  %vm2254_vm0 = vcmp.ge.f32.partialorder %v2246_v13, 0.0 }
0x190b   :  { %v2665_v46 = vsel %vm1032_vm3, %v6837_v43, -inf  ;;  %v2668_v63 = vsel %vm1032_vm3, %v6851_v6, -inf  ;;  %vm2577_vm7 = vcmask 392448   ;;  %vm2959_vm8 = vcmask 523648  }
0x190c   :  { %v2644_v62 = vmul.f32 0.2, %v2628_v5  ;;  %vm2636_vm4 = vcmp.ge.f32.partialorder %v2628_v5, 0.0 }
0x190d   :  { %2684 = vmax.xlane.f32.xlu0 %v2683_v51  ;;  %1914 = vmax.xlane.f32.xlu1 %v1913_v39  ;;  %v6844_v51 = vadd.f32 %v2267_v33, %v6691_v25  ;;  %v2260_v39 = vmul.f32 0.2, %v2244_v53  ;;  %v2270_v33 = vsel %vm2254_vm0, %v2246_v13, %v2262_v36  ;;  %v2365_v26 = vpop.permute.xlu1 %2364 }
0x190e   :  { %v2652_v32 = vsel %vm2636_vm4, %v2628_v5, %v2644_v62 }
0x190f   :  { %v2289_v55 = vsel %vm1032_vm3, %v6844_v51, -inf }
0x1911   :  { %1591 = vmax.xlane.f32.xlu1 %v1590_v9  ;;  %v2268_v9 = vsel %vm2252_vm14, %v2244_v53, %v2260_v39  ;;  %v6875_v39 = vadd.f32 %v2652_v32, %v6807_v61 }
0x1913   :  { %v2680_v20 = vsel %vm1032_vm3, %v6875_v39, -inf }
0x1915   :  { %1594 = vmax.xlane.f32.xlu1 %v1593_v18  ;;  %v6859_v18 = vadd.f32 %v2268_v9, %v6741_v50 }
0x1917   :  { %v2292_v11 = vsel %vm1032_vm3, %v6859_v18, -inf }
0x1919   :  { %1917 = vmax.xlane.f32.xlu1 %v1916_v29  ;;  %v6865_v29 = vadd.f32 %v2650_v14, %v6741_v50 }
0x191b   :  { %v2674_v53 = vsel %vm1032_vm3, %v6865_v29, -inf }
0x191d   :  { %2666 = vmax.xlane.f32.xlu1 %v2665_v46  ;;  %v6870_v46 = vadd.f32 %v2270_v33, %v6807_v61 }
0x191f   :  { %v2298_v19 = vsel %vm1032_vm3, %v6870_v46, -inf }
0x1921   :  { %2290 = vmax.xlane.f32.xlu1 %v2289_v55  ;;  %v6881_v55 = vpop.permute.xlu1 %2746 }
0x1923   :  { %2352 = vrot.lane.b32.xlu0 %v6369_v1, %s5999_s27 }
0x1925   :  { %2669 = vmax.xlane.f32.xlu1 %v2668_v63 }
0x1929   :  { %2293 = vmax.xlane.f32.xlu1 %v2292_v11 }
0x192d   :  { %2675 = vmax.xlane.f32.xlu1 %v2674_v53 }
0x1931   :  { %2299 = vmax.xlane.f32.xlu1 %v2298_v19 }
0x1935   :  { %2681 = vmax.xlane.f32.xlu1 %v2680_v20 }
0x1946   :  { %2734 = vrot.lane.b32.xlu1 %v6369_v1, %s5997_s25 }
0x196e   :  { %v1903_v9 = vpop.xlane.xlu0 %1902  ;;  %v1574_v45 = vpop.xlane.xlu1 %1573 }
0x196f   :  { %v1596_v13 = vsub.f32 %v6655_v16, %v1574_v45  ;;  %v1923_v11 = vsub.f32 %v6652_v58, %v1903_v9 }
0x1971   :  { %v1604_v30 = vmul.f32 1.442695, %v1596_v13  ;;  %v1932_v16 = vmul.f32 1.442695, %v1923_v11 }
0x1972   :  { %v1921_v63 = vpop.xlane.xlu0 %1920  ;;  %v1577_v14 = vpop.xlane.xlu1 %1576 }
0x1973   :  { %v1929_v36 = vsub.f32 %v6660_v2, %v1921_v63  ;;  %v1597_v5 = vsub.f32 %v6667_v15, %v1577_v14  ;;  %5766 = vpow2.f32 %v1604_v30 }
0x1975   :  { %v1944_v33 = vmul.f32 1.442695, %v1929_v36  ;;  %v1606_v62 = vmul.f32 1.442695, %v1597_v5 }
0x1976   :  { %v6887_v1 = vpop.xlane.xlu0 %2281  ;;  %v1900_v53 = vpop.xlane.xlu1 %1899 }
0x1977   :  { %5768 = vpow2.f32 %v1944_v33  ;;  %v1922_v32 = vsub.f32 %v6676_v22, %v1900_v53 }
0x1978   :  { %5770 = vpow2.f32 %v1606_v62 }
0x1979   :  { %v1930_v19 = vmul.f32 1.442695, %v1922_v32 }
0x197a   :  { %v6890_v20 = vpop.xlane.xlu0 %2284  ;;  %v1580_v45 = vpop.xlane.xlu1 %1579 }
0x197b   :  { %v1598_v2 = vsub.f32 %v6701_v42, %v1580_v45  ;;  %5772 = vpow2.f32 %v1930_v19 }
0x197c   :  { %5774 = vpow2.f32 %v1932_v16 }
0x197d   :  { %v1608_v15 = vmul.f32 1.442695, %v1598_v2 }
0x197e   :  { %v6893_v58 = vpop.xlane.xlu0 %2663  ;;  %v1583_v9 = vpop.xlane.xlu1 %1582 }
0x197f   :  { %v1599_v13 = vsub.f32 %v6715_v34, %v1583_v9  ;;  %5776 = vpow2.f32 %v1608_v15  ;;  %v7812_v15 = vld [vmem:[#allocation12_spill] sm:$0xff] }
0x1980   :  { %v6896_v30 = vpop.eup %5766  ;;  %v7813_v9 = vld [vmem:[#allocation8_spill] sm:$0xff] }
0x1981   :  { %v1610_v22 = vmul.f32 1.442695, %v1599_v13  ;;  %5382 = vmatprep.mubr.msk.f32.mxu1 %vm1032_vm3, %v6896_v30 }
0x1982   :  { %v6900_v63 = vpop.xlane.xlu0 %2287  ;;  %v1906_v14 = vpop.xlane.xlu1 %1905 }
0x1983   :  { %v1924_v42 = vsub.f32 %v6731_v40, %v1906_v14  ;;  %5778 = vpow2.f32 %v1610_v22 }
0x1984   :  { %v6903_v36 = vpop.eup %5768 }
0x1985   :  { %v6905_v5 = vpop.eup %5770  ;;  %v1934_v11 = vmul.f32 1.442695, %v1924_v42  ;;  %v1967_v34 = vsel %vm1032_vm3, %v6903_v36, 0.0 }
0x1986   :  { %5383 = vmatmul.mubr.msk.f32.vlgmr.msra.gmra.mxu1 %vm1032_vm3, %v6905_v5  ;;  %1968 = vadd.xlane.f32.xlu0 %v1967_v34  ;;  %v6911_v33 = vpop.xlane.xlu0 %2672  ;;  %v1909_v62 = vpop.xlane.xlu1 %1908  ;;  %v7815_v34 = vld [vmem:[#allocation11_spill] sm:$0xff] }
0x1987   :  { %5423 = vmatpush3.msra.mxu1 %v6570_v54  ;;  %v1925_v40 = vsub.f32 %v6751_v57, %v1909_v62  ;;  %5780 = vpow2.f32 %v1934_v11 }
0x1988   :  { %5424 = vmatprep.subr.mxu1 %v2365_v26  ;;  %v6915_v53 = vpop.eup %5772 }
0x1989   :  { %v1936_v32 = vmul.f32 1.442695, %v1925_v40  ;;  %5425 = vmatpush3.msra.mxu1 %v2365_v26  ;;  %v6917_v16 = vpop.eup %5774  ;;  %5410 = vmatprep.mubr.msk.f32.mxu0 %vm1032_vm3, %v6915_v53  ;;  %v7816_v40 = vld [vmem:[#allocation7_spill] sm:$0xff] }
0x198a   :  { %5426 = vmatprep.subr.mxu1 %v6573_v56  ;;  %v6922_v19 = vpop.xlane.xlu0 %2296  ;;  %v1586_v45 = vpop.xlane.xlu1 %1585  ;;  %5411 = vmatmul.mubr.msk.f32.vlgmr.msra.gmra.mxu0 %vm1032_vm3, %v6917_v16 }
0x198b   :  { %5427 = vmatpush3.msra.mxu1 %v6573_v56  ;;  %v1600_v54 = vsub.f32 %v6765_v28, %v1586_v45  ;;  %5782 = vpow2.f32 %v1936_v32  ;;  %5451 = vmatpush3.msra.mxu0 %v6597_v21 }
0x198c   :  { %5428 = vmatprep.subr.mxu1 %v6564_v44  ;;  %v6930_v57 = vpop.eup %5776  ;;  %5452 = vmatprep.subr.mxu0 %v6881_v55 }
0x198d   :  { %v1612_v26 = vmul.f32 1.442695, %v1600_v54  ;;  %5429 = vmatpush3.msra.mxu1 %v6564_v44  ;;  %5453 = vmatpush3.msra.mxu0 %v6881_v55  ;;  %v7811_v44 = vld [vmem:[#allocation9_spill] sm:$0xff] }
0x198e   :  { %5430 = vmatprep.subr.mxu1 %v6525_v24  ;;  %v6936_v56 = vpop.xlane.xlu0 %2678  ;;  %v1589_v2 = vpop.xlane.xlu1 %1588  ;;  %5385 = vmatprep.mubr.msk.f32.mxu1 %vm1032_vm3, %v6930_v57 }
0x198f   :  { %5431 = vmatpush3.msra.mxu1 %v6525_v24  ;;  %v1601_v21 = vsub.f32 %v6779_v52, %v1589_v2  ;;  %5784 = vpow2.f32 %v1612_v26  ;;  %5454 = vmatprep.subr.mxu0 %v6575_v59 }
0x1990   :  { %5432 = vmatprep.subr.mxu1 %v7811_v44  ;;  %v6944_v28 = vpop.eup %5778  ;;  %5455 = vmatpush3.msra.mxu0 %v6575_v59  ;;  %v7814_v59 = vld [vmem:[#allocation10_spill] sm:$0xff] }
0x1991   :  { %v1614_v55 = vmul.f32 1.442695, %v1601_v21  ;;  %5433 = vmatpush3.msra.mxu1 %v7811_v44  ;;  %5456 = vmatprep.subr.mxu0 %v7812_v15  ;;  %v2304_v21 = vsub.f32 %v6670_v17, %v6887_v1  ;;  %v2305_v44 = vsub.f32 %v6696_v12, %v6890_v20  ;;  %v2306_v17 = vsub.f32 %v6728_v3, %v6900_v63 }
0x1992   :  { %5434 = vmatprep.subr.mxu1 %v7813_v9  ;;  %v2303_v13 = vpop.xlane.xlu0 %2302  ;;  %v1912_v24 = vpop.xlane.xlu1 %1911  ;;  %5457 = vmatpush3.msra.mxu0 %v7812_v15  ;;  %v2686_v15 = vsub.f32 %v6710_v41, %v6893_v58 }
0x1993   :  { %5386 = vmatmul.mubr.msk.f32.gmra.mxu1 %vm1032_vm3, %v6944_v28  ;;  %v2311_v52 = vsub.f32 %v6788_v23, %v2303_v13  ;;  %v1926_v22 = vsub.f32 %v6791_v35, %v1912_v24  ;;  %5786 = vpow2.f32 %v1614_v55  ;;  %5458 = vmatprep.subr.mxu0 %v7814_v59  ;;  %v2312_v13 = vmul.f32 1.442695, %v2304_v21 }
0x1994   :  { %5435 = vmatpush3.msra.mxu1 %v7813_v9  ;;  %v6957_v14 = vpop.eup %5780  ;;  %5459 = vmatpush3.msra.mxu0 %v7814_v59  ;;  %v2314_v24 = vmul.f32 1.442695, %v2305_v44 }
0x1995   :  { %v2326_v42 = vmul.f32 1.442695, %v2311_v52  ;;  %v1938_v11 = vmul.f32 1.442695, %v1926_v22  ;;  %5460 = vmatprep.subr.mxu0 %v7815_v34  ;;  %5413 = vmatprep.mubr.msk.f32.mxu0 %vm1032_vm3, %v6957_v14  ;;  %v2694_v52 = vmul.f32 1.442695, %v2686_v15 }
0x1996   :  { %v2685_v62 = vpop.xlane.xlu0 %2684  ;;  %v1915_v23 = vpop.xlane.xlu1 %1914  ;;  %5461 = vmatpush3.msra.mxu0 %v7815_v34 }
0x1997   :  { %5788 = vpow2.f32 %v2326_v42  ;;  %v1927_v35 = vsub.f32 %v6804_v47, %v1915_v23  ;;  %5462 = vmatprep.subr.mxu0 %v7816_v40  ;;  %v2693_v12 = vsub.f32 %v6801_v60, %v2685_v62 }
0x1998   :  { %5790 = vpow2.f32 %v1938_v11  ;;  %v6966_v32 = vpop.eup %5782  ;;  %5463 = vmatpush3.msra.mxu0 %v7816_v40  ;;  %v2309_v11 = vsub.f32 %v6762_v31, %v6922_v19  ;;  %v2691_v40 = vsub.f32 %v6776_v4, %v6936_v56  ;;  %v2689_v56 = vsub.f32 %v6748_v27, %v6911_v33 }
0x1999   :  { %v1940_v45 = vmul.f32 1.442695, %v1927_v35  ;;  %5414 = vmatmul.mubr.msk.f32.gmra.mxu0 %vm1032_vm3, %v6966_v32  ;;  %v2708_v3 = vmul.f32 1.442695, %v2693_v12 }
0x199a   :  { %v2353_v54 = vpop.permute.xlu0 %2352  ;;  %v1592_v26 = vpop.xlane.xlu1 %1591  ;;  %v2322_v35 = vmul.f32 1.442695, %v2309_v11 }
0x199b   :  { %v1602_v2 = vsub.f32 %v6816_v10, %v1592_v26  ;;  %5436 = vmatprep.subr.mxu1 %v2353_v54  ;;  %5792 = vpow2.f32 %v1940_v45 }
0x199c   :  { %5437 = vmatpush3.msra.mxu1 %v2353_v54  ;;  %v6974_v47 = vpop.eup %5784 }
0x199d   :  { %v1616_v55 = vmul.f32 1.442695, %v1602_v2  ;;  %5388 = vmatprep.mubr.msk.f32.mxu1 %vm1032_vm3, %v6974_v47 }
0x199e   :  { %v1595_v9 = vpop.xlane.xlu1 %1594 }
0x199f   :  { %5794 = vpow2.f32 %v1616_v55  ;;  %v1603_v10 = vsub.f32 %v6823_v7, %v1595_v9  ;;  %v2316_v7 = vmul.f32 1.442695, %v2306_v17 }
0x19a0   :  { %v6985_v1 = vpop.eup %5786 }
0x19a1   :  { %v1618_v20 = vmul.f32 1.442695, %v1603_v10  ;;  %5389 = vmatmul.mubr.msk.f32.gmra.mxu1 %vm1032_vm3, %v6985_v1 }
0x19a2   :  { %v1918_v41 = vpop.xlane.xlu1 %1917 }
0x19a3   :  { %5796 = vpow2.f32 %v1618_v20  ;;  %v1928_v58 = vsub.f32 %v6830_v8, %v1918_v41 }
0x19a4   :  { %v6991_v22 = vpop.eup %5788  ;;  %5798 = vpow2.f32 %v2312_v13  ;;  %v2700_v13 = vmul.f32 1.442695, %v2689_v56 }
0x19a5   :  { %v6993_v59 = vpop.eup %5790  ;;  %5800 = vpow2.f32 %v2314_v24  ;;  %v1942_v63 = vmul.f32 1.442695, %v1928_v58  ;;  %v2349_v60 = vsel %vm1032_vm3, %v6991_v22, 0.0 }
0x19a6   :  { %5802 = vpow2.f32 %v2694_v52  ;;  %5416 = vmatprep.mubr.msk.f32.mxu0 %vm1032_vm3, %v6993_v59  ;;  %2350 = vadd.xlane.f32.xlu1 %v2349_v60  ;;  %v2667_v42 = vpop.xlane.xlu1 %2666 }
0x19a7   :  { %5804 = vpow2.f32 %v1942_v63  ;;  %v2687_v54 = vsub.f32 %v6837_v43, %v2667_v42 }
0x19a8   :  { %5806 = vpow2.f32 %v2316_v7  ;;  %v5793_v8 = vpop.eup %5792 }
0x19a9   :  { %5808 = vpow2.f32 %v2708_v3  ;;  %5417 = vmatmul.mubr.msk.f32.gmra.mxu0 %vm1032_vm3, %v5793_v8  ;;  %v2696_v21 = vmul.f32 1.442695, %v2687_v54 }
0x19aa   :  { %v2291_v34 = vpop.xlane.xlu1 %2290 }
0x19ab   :  { %v2307_v62 = vsub.f32 %v6844_v51, %v2291_v34  ;;  %v2704_v51 = vmul.f32 1.442695, %v2691_v40  ;;  %v1955_v40 = vsel %vm1032_vm3, %v6966_v32, 0.0  ;;  %v5958_v32 = vld [vmem:[%s7784_s3] sm:$0xff] }
0x19ac   :  { %v7003_v23 = vpop.eup %5794 }
0x19ad   :  { %v2318_v45 = vmul.f32 1.442695, %v2307_v62  ;;  %5391 = vmatprep.mubr.msk.f32.mxu1 %vm1032_vm3, %v7003_v23 }
0x19ae   :  { %v2670_v26 = vpop.xlane.xlu1 %2669 }
0x19af   :  { %5810 = vpow2.f32 %v2318_v45  ;;  %v2688_v2 = vsub.f32 %v6851_v6, %v2670_v26 }
0x19b0   :  { %v7010_v31 = vpop.eup %5796  ;;  %5812 = vpow2.f32 %v2322_v35 }
0x19b1   :  { %v7012_v19 = vpop.eup %5798  ;;  %5392 = vmatmul.mubr.msk.f32.gmra.mxu1 %vm1032_vm3, %v7010_v31  ;;  %5814 = vpow2.f32 %v2704_v51  ;;  %v2698_v6 = vmul.f32 1.442695, %v2688_v2 }
0x19b2   :  { %v7017_v4 = vpop.eup %5800  ;;  %v2294_v43 = vpop.xlane.xlu1 %2293  ;;  %5438 = vmatprep.mubr.msk.f32.mxu1 %vm1032_vm3, %v7012_v19  ;;  %5816 = vpow2.f32 %v2696_v21  ;;  %v1958_v21 = vsel %vm1032_vm3, %v6993_v59, 0.0  ;;  %v1952_v59 = vsel %vm1032_vm3, %v6957_v14, 0.0  ;;  %v1626_v14 = vsel %vm1032_vm3, %v6930_v57, 0.0 }
0x19b3   :  { %v7023_v44 = vpop.eup %5802  ;;  %v2308_v55 = vsub.f32 %v6859_v18, %v2294_v43  ;;  %v2331_v43 = vsel %vm1032_vm3, %v7017_v4, 0.0  ;;  %v1635_v57 = vsel %vm1032_vm3, %v6985_v1, 0.0 }
0x19b4   :  { %v5805_v15 = vpop.eup %5804 }
0x19b5   :  { %v7026_v9 = vpop.eup %5806  ;;  %v2320_v10 = vmul.f32 1.442695, %v2308_v55  ;;  %5419 = vmatprep.mubr.msk.f32.mxu0 %vm1032_vm3, %v5805_v15  ;;  %5439 = vmatmul.mubr.msk.f32.vlgmr.msra.gmra.mxu1 %vm1032_vm3, %v7017_v4  ;;  %v1964_v27 = vsel %vm1032_vm3, %v5805_v15, 0.0  ;;  %v1638_v4 = vsel %vm1032_vm3, %v7003_v23, 0.0  ;;  %v1620_v23 = vsel %vm1032_vm3, %v6896_v30, 0.0 }
0x19b6   :  { %v7032_v33 = vpop.eup %5808  ;;  %5420 = vmatmul.mubr.msk.f32.gmra.mxu0 %vm1032_vm3, %v6903_v36  ;;  %1965 = vadd.xlane.f32.xlu0 %v1964_v27  ;;  %v2676_v18 = vpop.xlane.xlu1 %2675  ;;  %v1632_v27 = vsel %vm1032_vm3, %v6974_v47, 0.0  ;;  %v1641_v47 = vsel %vm1032_vm3, %v7010_v31, 0.0  ;;  %v1623_v30 = vsel %vm1032_vm3, %v6905_v5, 0.0 }
0x19b7   :  { %5818 = vpow2.f32 %v2320_v10  ;;  %v2690_v17 = vsub.f32 %v6865_v29, %v2676_v18  ;;  %5441 = vmatprep.mubr.msk.f32.mxu1 %vm1032_vm3, %v7026_v9  ;;  %5466 = vmatprep.mubr.msk.f32.mxu0 %vm1032_vm3, %v7023_v44  ;;  %v2731_v12 = vsel %vm1032_vm3, %v7032_v33, 0.0  ;;  %v1961_v29 = vsel %vm1032_vm3, %v5793_v8, 0.0 }
0x19b8   :  { %5820 = vpow2.f32 %v2698_v6  ;;  %v2334_v10 = vsel %vm1032_vm3, %v7026_v9, 0.0  ;;  %v2328_v9 = vsel %vm1032_vm3, %v7012_v19, 0.0 }
0x19b9   :  { %v2702_v24 = vmul.f32 1.442695, %v2690_v17  ;;  %5822 = vpow2.f32 %v2700_v13 }
0x19ba   :  { %2732 = vadd.xlane.f32.xlu0 %v2731_v12  ;;  %v2300_v20 = vpop.xlane.xlu1 %2299 }
0x19bb   :  { %5824 = vpow2.f32 %v2702_v24  ;;  %v2310_v36 = vsub.f32 %v6870_v46, %v2300_v20 }
0x19bc   :  { %v5811_v52 = vpop.eup %5810 }
0x19bd   :  { %v2324_v41 = vmul.f32 1.442695, %v2310_v36  ;;  %5442 = vmatmul.mubr.msk.f32.gmra.mxu1 %vm1032_vm3, %v5811_v52  ;;  %v5813_v58 = vpop.eup %5812  ;;  %v2337_v54 = vsel %vm1032_vm3, %v5811_v52, 0.0 }
0x19be   :  { %1962 = vadd.xlane.f32.xlu0 %v1961_v29  ;;  %v2682_v7 = vpop.xlane.xlu1 %2681  ;;  %v2343_v60 = vsel %vm1032_vm3, %v5813_v58, 0.0  ;;  %v5815_v42 = vpop.eup %5814 }
0x19bf   :  { %5826 = vpow2.f32 %v2324_v41  ;;  %v2692_v3 = vsub.f32 %v6875_v39, %v2682_v7  ;;  %v5817_v34 = vpop.eup %5816  ;;  %v2725_v8 = vsel %vm1032_vm3, %v5815_v42, 0.0 }
0x19c0   :  { %v2713_v15 = vsel %vm1032_vm3, %v5817_v34, 0.0 }
0x19c1   :  { %v2706_v63 = vmul.f32 1.442695, %v2692_v3 }
0x19c2   :  { %2344 = vadd.xlane.f32.xlu0 %v2343_v60  ;;  %v2735_v11 = vpop.permute.xlu1 %2734 }
0x19c3   :  { %5828 = vpow2.f32 %v2706_v63  ;;  %5464 = vmatprep.subr.mxu0 %v2735_v11 }
0x19c4   :  { %v5819_v46 = vpop.eup %5818  ;;  %5465 = vmatpush3.msra.mxu0 %v2735_v11 }
0x19c5   :  { %5444 = vmatprep.mubr.msk.f32.mxu1 %vm1032_vm3, %v5819_v46  ;;  %5467 = vmatmul.mubr.msk.f32.vlgmr.msra.gmra.mxu0 %vm1032_vm3, %v5817_v34  ;;  %v5821_v62 = vpop.eup %5820  ;;  %v2340_v55 = vsel %vm1032_vm3, %v5819_v46, 0.0 }
0x19c6   :  { %2726 = vadd.xlane.f32.xlu0 %v2725_v8  ;;  %5445 = vmatmul.mubr.msk.f32.gmra.mxu1 %vm1032_vm3, %v5813_v58  ;;  %v5823_v39 = vpop.eup %5822 }
0x19c7   :  { %5469 = vmatprep.mubr.msk.f32.mxu0 %vm1032_vm3, %v5821_v62  ;;  %v2719_v2 = vsel %vm1032_vm3, %v5823_v39, 0.0 }
0x19c8   :  { %v5825_v35 = vpop.eup %5824 }
0x19c9   :  { %5470 = vmatmul.mubr.msk.f32.gmra.mxu0 %vm1032_vm3, %v5823_v39  ;;  %v2722_v6 = vsel %vm1032_vm3, %v5825_v35, 0.0 }
0x19ca   :  { %1956 = vadd.xlane.f32.xlu0 %v1955_v40  ;;  %5472 = vmatprep.mubr.msk.f32.mxu0 %vm1032_vm3, %v5825_v35 }
0x19cc   :  { %v5827_v45 = vpop.eup %5826 }
0x19cd   :  { %5447 = vmatprep.mubr.msk.f32.mxu1 %vm1032_vm3, %v5827_v45  ;;  %5473 = vmatmul.mubr.msk.f32.gmra.mxu0 %vm1032_vm3, %v5815_v42  ;;  %v2346_v26 = vsel %vm1032_vm3, %v5827_v45, 0.0 }
0x19ce   :  { %2338 = vadd.xlane.f32.xlu0 %v2337_v54  ;;  %2347 = vadd.xlane.f32.xlu1 %v2346_v26 }
0x19cf   :  { %5448 = vmatmul.mubr.msk.f32.gmra.mxu1 %vm1032_vm3, %v6991_v22  ;;  %v1949_v22 = vsel %vm1032_vm3, %v6917_v16, 0.0  ;;  %v2710_v16 = vsel %vm1032_vm3, %v7023_v44, 0.0  ;;  %v1946_v44 = vsel %vm1032_vm3, %v6915_v53, 0.0  ;;  %v1629_v53 = vsel %vm1032_vm3, %v6944_v28, 0.0 }
0x19d0   :  { %v5829_v51 = vpop.eup %5828  ;;  %5494 = vmatprep.mubr.msk.f32.mxu1 %vm1032_vm3, %v5958_v32 }
0x19d1   :  { %5475 = vmatprep.mubr.msk.f32.mxu0 %vm1032_vm3, %v5829_v51  ;;  %v2728_v56 = vsel %vm1032_vm3, %v5829_v51, 0.0 }
0x19d2   :  { %2720 = vadd.xlane.f32.xlu0 %v2719_v2  ;;  %2729 = vadd.xlane.f32.xlu1 %v2728_v56 }
0x19d3   :  { %5476 = vmatmul.mubr.msk.f32.gmra.mxu0 %vm1032_vm3, %v7032_v33  ;;  %v2716_v33 = vsel %vm1032_vm3, %v5821_v62, 0.0 }
0x19d4   :  { %5522 = vmatprep.mubr.msk.f32.mxu0 %vm1032_vm3, %v5958_v32 }
0x19d6   :  { %1950 = vadd.xlane.f32.xlu0 %v1949_v22  ;;  %1959 = vadd.xlane.f32.xlu1 %v1958_v21 }
0x19da   :  { %2332 = vadd.xlane.f32.xlu0 %v2331_v43  ;;  %2341 = vadd.xlane.f32.xlu1 %v2340_v55 }
0x19de   :  { %2714 = vadd.xlane.f32.xlu0 %v2713_v15  ;;  %2723 = vadd.xlane.f32.xlu1 %v2722_v6 }
0x19e2   :  { %2711 = vadd.xlane.f32.xlu0 %v2710_v16  ;;  %1953 = vadd.xlane.f32.xlu1 %v1952_v59 }
0x19e6   :  { %1639 = vadd.xlane.f32.xlu0 %v1638_v4  ;;  %2335 = vadd.xlane.f32.xlu1 %v2334_v10 }
0x19ea   :  { %1633 = vadd.xlane.f32.xlu0 %v1632_v27  ;;  %2717 = vadd.xlane.f32.xlu1 %v2716_v33 }
0x19ee   :  { %1627 = vadd.xlane.f32.xlu0 %v1626_v14  ;;  %1947 = vadd.xlane.f32.xlu1 %v1946_v44 }
0x19f2   :  { %1621 = vadd.xlane.f32.xlu0 %v1620_v23  ;;  %2329 = vadd.xlane.f32.xlu1 %v2328_v9 }
0x19f6   :  { %1642 = vadd.xlane.f32.xlu1 %v1641_v47 }
0x19fa   :  { %1636 = vadd.xlane.f32.xlu1 %v1635_v57 }
0x19fe   :  { %1630 = vadd.xlane.f32.xlu1 %v1629_v53 }
0x1a02   :  { %1624 = vadd.xlane.f32.xlu1 %v1623_v30 }
0x1a0f   :  { %v1969_v13 = vpop.xlane.xlu0 %1968 }
0x1a2f   :  { %v7115_v1 = vpop.xlane.xlu1 %2350 }
0x1a3f   :  { %v1966_v19 = vpop.xlane.xlu0 %1965 }
0x1a43   :  { %v7109_v18 = vpop.xlane.xlu0 %2732 }
0x1a46   :  { %v7123_v52 = vpop.f32.mrf.mxu1 }
0x1a47   :  { %v1963_v17 = vpop.xlane.xlu0 %1962 }
0x1a48   :  { %5830 = vrcp.f32 %v1963_v17  ;;  %v7131_v60 = vpop.f32.mrf.mxu1 }
0x1a4a   :  { %v7125_v41 = vpop.f32.mrf.mxu0 }
0x1a4b   :  { %v7111_v24 = vpop.xlane.xlu0 %2344 }
0x1a4c   :  { %v7133_v42 = vpop.f32.mrf.mxu0 }
0x1a4f   :  { %v7113_v31 = vpop.xlane.xlu0 %2726 }
0x1a53   :  { %v1957_v12 = vpop.xlane.xlu0 %1956  ;;  %v7139_v8 = vpop.f32.mrf.mxu1 }
0x1a54   :  { %5832 = vrcp.f32 %v1957_v12 }
0x1a55   :  { %5834 = vrcp.f32 %v1969_v13  ;;  %v5831_v29 = vpop.eup %5830  ;;  %v7145_v26 = vpop.f32.mrf.mxu1 }
0x1a56   :  { %5836 = vrcp.f32 %v1966_v19  ;;  %v2136_v63 = vmul.f32 %v5831_v29, %v1963_v17 }
0x1a57   :  { %v2339_v28 = vpop.xlane.xlu0 %2338  ;;  %v7117_v20 = vpop.xlane.xlu1 %2347 }
0x1a58   :  { %5838 = vrcp.f32 %v2339_v28  ;;  %v2144_v35 = vsub.f32 2.0, %v2136_v63 }
0x1a59   :  { %v5415_v39 = vpop.f32.mrf.mxu0 }
0x1a5a   :  { %v2152_v21 = vmul.f32 %v5831_v29, %v2144_v35 }
0x1a5b   :  { %v7119_v36 = vpop.xlane.xlu0 %2720  ;;  %v7121_v5 = vpop.xlane.xlu1 %2729 }
0x1a5c   :  { %v7147_v32 = vpop.f32.mrf.mxu0 }
0x1a5f   :  { %v7127_v58 = vpop.xlane.xlu0 %1950  ;;  %v7129_v7 = vpop.xlane.xlu1 %1959 }
0x1a60   :  { %5840 = vrcp.f32 %v7129_v7 }
0x1a61   :  { %v5833_v3 = vpop.eup %5832  ;;  %v7150_v56 = vpop.f32.mrf.mxu1 }
0x1a62   :  { %v2134_v11 = vmul.f32 %v5833_v3, %v1957_v12  ;;  %v5835_v2 = vpop.eup %5834 }
0x1a63   :  { %v7135_v34 = vpop.xlane.xlu0 %2332  ;;  %v7137_v46 = vpop.xlane.xlu1 %2341  ;;  %v2138_v6 = vmul.f32 %v5835_v2, %v1969_v13 }
0x1a64   :  { %v2142_v62 = vsub.f32 2.0, %v2134_v11  ;;  %v5837_v16 = vpop.eup %5836  ;;  %v7155_v59 = vpop.f32.mrf.mxu1 }
0x1a65   :  { %v5839_v27 = vpop.eup %5838  ;;  %v2146_v33 = vsub.f32 2.0, %v2138_v6  ;;  %v2137_v14 = vmul.f32 %v5837_v16, %v1966_v19 }
0x1a66   :  { %v2150_v40 = vmul.f32 %v5833_v3, %v2142_v62  ;;  %v2516_v47 = vmul.f32 %v5839_v27, %v2339_v28 }
0x1a67   :  { %v7141_v45 = vpop.xlane.xlu0 %2714  ;;  %v7143_v54 = vpop.xlane.xlu1 %2723  ;;  %v2145_v30 = vsub.f32 2.0, %v2137_v14  ;;  %v2154_v13 = vmul.f32 %v5835_v2, %v2146_v33 }
0x1a68   :  { %v2158_v51 = vmul.f32 %v5415_v39, %v2150_v40  ;;  %v2524_v28 = vsub.f32 2.0, %v2516_v47 }
0x1a69   :  { %v5418_v22 = vpop.f32.mrf.mxu0  ;;  %v2153_v39 = vmul.f32 %v5837_v16, %v2145_v30 }
0x1a6a   :  { %2177 = vrot.lane.b32.xlu1 %v2158_v51, %s6001_s30  ;;  %v2160_v15 = vmul.f32 %v5418_v22, %v2152_v21  ;;  %v2532_v6 = vmul.f32 %v5839_v27, %v2524_v28 }
0x1a6b   :  { %v7153_v43 = vpop.xlane.xlu0 %2711  ;;  %v1954_v55 = vpop.xlane.xlu1 %1953 }
0x1a6c   :  { %5842 = vrcp.f32 %v1954_v55  ;;  %v7165_v57 = vpop.f32.mrf.mxu0 }
0x1a6d   :  { %5844 = vrcp.f32 %v7119_v36  ;;  %v5841_v17 = vpop.eup %5840 }
0x1a6e   :  { %2181 = vrot.lane.b32.xlu1 %v2160_v15, %s6001_s30  ;;  %v2135_v62 = vmul.f32 %v5841_v17, %v7129_v7 }
0x1a6f   :  { %v1640_v4 = vpop.xlane.xlu0 %1639  ;;  %v2336_v10 = vpop.xlane.xlu1 %2335 }
0x1a70   :  { %5846 = vrcp.f32 %v1640_v4  ;;  %v2143_v16 = vsub.f32 2.0, %v2135_v62 }
0x1a71   :  { %5848 = vrcp.f32 %v2336_v10  ;;  %v7159_v44 = vpop.f32.mrf.mxu1 }
0x1a72   :  { %5850 = vrcp.f32 %v7111_v24 }
0x1a73   :  { %5852 = vrcp.f32 %v7137_v46  ;;  %v1634_v23 = vpop.xlane.xlu0 %1633  ;;  %v7163_v9 = vpop.xlane.xlu1 %2717 }
0x1a74   :  { %5854 = vrcp.f32 %v1634_v23  ;;  %v7167_v53 = vpop.f32.mrf.mxu1 }
0x1a75   :  { %5856 = vrcp.f32 %v7143_v54 }
0x1a76   :  { %v7170_v19 = vpop.f32.mrf.mxu1  ;;  %v5421_v12 = vpop.f32.mrf.mxu0  ;;  %5858 = vrcp.f32 %v7113_v31 }
0x1a77   :  { %v2162_v29 = vmul.f32 %v5421_v12, %v2154_v13  ;;  %v7173_v3 = vpop.xlane.xlu0 %1627  ;;  %v7175_v63 = vpop.xlane.xlu1 %1947 }
0x1a78   :  { %5860 = vrcp.f32 %v7173_v3  ;;  %v2114_v11 = vpop.f32.mrf.mxu0  ;;  %v7181_v40 = vpop.f32.mrf.mxu1 }
0x1a79   :  { %5862 = vrcp.f32 %v7115_v1  ;;  %2185 = vrot.lane.b32.xlu1 %v2162_v29, %s6001_s30  ;;  %v5843_v35 = vpop.eup %5842  ;;  %v2161_v2 = vmul.f32 %v2153_v39, %v2114_v11 }
0x1a7a   :  { %5864 = vrcp.f32 %v7109_v18  ;;  %v2133_v51 = vmul.f32 %v5843_v35, %v1954_v55  ;;  %v7188_v15 = vpop.eup %5844 }
0x1a7b   :  { %v7184_v22 = vpop.xlane.xlu0 %1621  ;;  %v7186_v21 = vpop.xlane.xlu1 %2329  ;;  %v2898_v28 = vmul.f32 %v7188_v15, %v7119_v36 }
0x1a7c   :  { %5866 = vrcp.f32 %v7184_v22  ;;  %v2141_v33 = vsub.f32 2.0, %v2133_v51  ;;  %v2151_v51 = vmul.f32 %v5841_v17, %v2143_v16 }
0x1a7d   :  { %v5847_v7 = vpop.eup %5846  ;;  %5868 = vrcp.f32 %v7127_v58  ;;  %2183 = vrot.lane.b32.xlu1 %v2161_v2, %s6001_s30  ;;  %v5443_v14 = vpop.f32.mrf.mxu1  ;;  %v2906_v16 = vsub.f32 2.0, %v2898_v28 }
0x1a7e   :  { %v5849_v47 = vpop.eup %5848  ;;  %v1787_v55 = vmul.f32 %v5847_v7, %v1640_v4  ;;  %v2540_v30 = vmul.f32 %v5443_v14, %v2532_v6  ;;  %5870 = vrcp.f32 %v7117_v20  ;;  %v2149_v12 = vmul.f32 %v5843_v35, %v2141_v33 }
0x1a7f   :  { %v7193_v13 = vpop.eup %5850  ;;  %v2515_v29 = vmul.f32 %v5849_v47, %v2336_v10  ;;  %v7196_v11 = vpop.xlane.xlu1 %1642 }
0x1a80   :  { %v7198_v27 = vpop.eup %5852  ;;  %v1795_v62 = vsub.f32 2.0, %v1787_v55  ;;  %5872 = vrcp.f32 %v7196_v11  ;;  %v2157_v2 = vmul.f32 %v2149_v12, %v7147_v32  ;;  %v2518_v33 = vmul.f32 %v7193_v13, %v7111_v24  ;;  %v2476_v14 = vpop.f32.mrf.mxu1 }
0x1a81   :  { %v5855_v39 = vpop.eup %5854  ;;  %v2523_v4 = vsub.f32 2.0, %v2515_v29  ;;  %2559 = vrot.lane.b32.xlu1 %v2540_v30, %s5991_s12  ;;  %5874 = vrcp.f32 %v7135_v34  ;;  %v2517_v36 = vmul.f32 %v7198_v27, %v7137_v46  ;;  %v2159_v55 = vmul.f32 %v2151_v51, %v7165_v57 }
0x1a82   :  { %v1785_v10 = vmul.f32 %v5855_v39, %v1634_v23  ;;  %v1803_v35 = vmul.f32 %v5847_v7, %v1795_v62  ;;  %v7206_v6 = vpop.eup %5856  ;;  %5876 = vrcp.f32 %v7121_v5  ;;  %2175 = vrot.lane.b32.xlu0 %v2157_v2, %s6001_s30  ;;  %v2526_v2 = vsub.f32 2.0, %v2518_v33 }
0x1a83   :  { %v7214_v17 = vpop.xlane.xlu1 %1636  ;;  %v7216_v32 = vpop.eup %5858  ;;  %v2531_v30 = vmul.f32 %v5849_v47, %v2523_v4  ;;  %v2899_v29 = vmul.f32 %v7206_v6, %v7143_v54  ;;  %v2525_v47 = vsub.f32 2.0, %v2517_v36 }
0x1a84   :  { %v1793_v23 = vsub.f32 2.0, %v1785_v10  ;;  %v1811_v7 = vmul.f32 %v1803_v35, %v7167_v53  ;;  %5878 = vrcp.f32 %v7214_v17  ;;  %v2900_v57 = vmul.f32 %v7216_v32, %v7113_v31 }
0x1a85   :  { %v5861_v24 = vpop.eup %5860  ;;  %v7221_v12 = vpop.f32.mrf.mxu0  ;;  %5880 = vrcp.f32 %v7141_v45  ;;  %v2539_v33 = vmul.f32 %v2531_v30, %v2476_v14 }
0x1a86   :  { %v7223_v46 = vpop.eup %5862  ;;  %v1801_v28 = vmul.f32 %v5855_v39, %v1793_v23  ;;  %1820 = vst.msk [vmem:[#allocation3 + $0x30] sm:$0xff] %vm1813_vm5, %v1811_v7  ;;  %v1783_v53 = vmul.f32 %v5861_v24, %v7173_v3  ;;  %v5446_v62 = vpop.f32.mrf.mxu1  ;;  %5882 = vrcp.f32 %v7163_v9  ;;  %2179 = vrot.lane.b32.xlu0 %v2159_v55, %s6001_s30  ;;  %v2914_v3 = vmul.f32 %v7188_v15, %v2906_v16 }
0x1a87   :  { %v7234_v51 = vpop.f32.mrf.mxu0  ;;  %v7236_v4 = vpop.xlane.xlu1 %1630  ;;  %v2520_v31 = vmul.f32 %v7223_v46, %v7115_v1  ;;  %v2907_v7 = vsub.f32 2.0, %v2899_v29  ;;  %v2534_v1 = vmul.f32 %v7193_v13, %v2526_v2  ;;  %v2533_v15 = vmul.f32 %v7198_v27, %v2525_v47 }
0x1a88   :  { %v7238_v54 = vpop.eup %5864  ;;  %v1791_v39 = vsub.f32 2.0, %v1783_v53  ;;  %5884 = vrcp.f32 %v7236_v4  ;;  %v1809_v10 = vmul.f32 %v1801_v28, %v7155_v59  ;;  %v2486_v49 = vpop.f32.mrf.mxu1 }
0x1a89   :  { %v5867_v35 = vpop.eup %5866  ;;  %5886 = vrcp.f32 %v7175_v63  ;;  %v5471_v36 = vpop.f32.mrf.mxu0  ;;  %v2902_v59 = vmul.f32 %v7238_v54, %v7109_v18  ;;  %v2541_v27 = vmul.f32 %v2533_v15, %v2486_v49 }
0x1a8a   :  { %v7246_v23 = vpop.eup %5868  ;;  %v1799_v55 = vmul.f32 %v5861_v24, %v1791_v39  ;;  %v1781_v53 = vmul.f32 %v5867_v35, %v7184_v22  ;;  %v2922_v61 = vmul.f32 %v5471_v36, %v2914_v3  ;;  %1818 = vst.msk [vmem:[#allocation3 + $0x20] sm:$0xff] %vm1813_vm5, %v1809_v10  ;;  %5888 = vrcp.f32 %v7153_v43  ;;  %2557 = vrot.lane.b32.xlu0 %v2539_v33, %s5991_s12 }
0x1a8b   :  { %v7256_v16 = vpop.f32.mrf.mxu0  ;;  %v7258_v14 = vpop.xlane.xlu1 %1624  ;;  %v2908_v24 = vsub.f32 2.0, %v2900_v57  ;;  %v2132_v13 = vmul.f32 %v7246_v23, %v7127_v58  ;;  %v2542_v57 = vmul.f32 %v5446_v62, %v2534_v1  ;;  %v2915_v39 = vmul.f32 %v7206_v6, %v2907_v7 }
0x1a8c   :  { %v5871_v22 = vpop.eup %5870  ;;  %v1789_v30 = vsub.f32 2.0, %v1781_v53  ;;  %5890 = vrcp.f32 %v7258_v14  ;;  %2941 = vrot.lane.b32.xlu1 %v2922_v61, %s6002_s6  ;;  %v1807_v18 = vmul.f32 %v1799_v55, %v7145_v26  ;;  %v2528_v61 = vsub.f32 2.0, %v2520_v31 }
0x1a8d   :  { %v5873_v29 = vpop.eup %5872  ;;  %5892 = vrcp.f32 %v7186_v21  ;;  %v5474_v28 = vpop.f32.mrf.mxu0  ;;  %v2910_v10 = vsub.f32 2.0, %v2902_v59  ;;  %v2519_v26 = vmul.f32 %v5871_v22, %v7117_v20  ;;  %v2916_v49 = vmul.f32 %v7216_v32, %v2908_v24 }
0x1a8e   :  { %v1797_v2 = vmul.f32 %v5867_v35, %v1789_v30  ;;  %v1788_v47 = vmul.f32 %v5873_v29, %v7196_v11  ;;  %1816 = vst.msk [vmem:[#allocation3 + $0x10] sm:$0xff] %vm1813_vm5, %v1807_v18  ;;  %v5875_v3 = vpop.eup %5874  ;;  %2561 = vrot.lane.b32.xlu0 %v2541_v27, %s5991_s12  ;;  %v2140_v62 = vsub.f32 2.0, %v2132_v13  ;;  %v2536_v15 = vmul.f32 %v7223_v46, %v2528_v61 }
0x1a8f   :  { %v2868_v58 = vpop.f32.mrf.mxu0  ;;  %v5877_v33 = vpop.eup %5876  ;;  %v2514_v7 = vmul.f32 %v5875_v3, %v7135_v34  ;;  %v2924_v20 = vmul.f32 %v5474_v28, %v2916_v49  ;;  %v2527_v1 = vsub.f32 2.0, %v2519_v26  ;;  %v2918_v34 = vmul.f32 %v7238_v54, %v2910_v10 }
0x1a90   :  { %v1796_v36 = vsub.f32 2.0, %v1788_v47  ;;  %v2923_v35 = vmul.f32 %v2915_v39, %v2868_v58  ;;  %2563 = vrot.lane.b32.xlu1 %v2542_v57, %s5991_s12  ;;  %v1805_v11 = vmul.f32 %v1797_v2, %v7131_v60  ;;  %v5449_v53 = vpop.f32.mrf.mxu1  ;;  %v2901_v32 = vmul.f32 %v5877_v33, %v7121_v5 }
0x1a91   :  { %v5879_v6 = vpop.eup %5878  ;;  %v2544_v13 = vmul.f32 %v5449_v53, %v2536_v15  ;;  %v2522_v28 = vsub.f32 2.0, %v2514_v7  ;;  %v2535_v39 = vmul.f32 %v5871_v22, %v2527_v1 }
0x1a92   :  { %v1804_v31 = vmul.f32 %v5873_v29, %v1796_v36  ;;  %v1786_v55 = vmul.f32 %v5879_v6, %v7214_v17  ;;  %1814 = vst.msk [vmem:[#allocation3] sm:$0xff] %vm1813_vm5, %v1805_v11  ;;  %v5881_v59 = vpop.eup %5880  ;;  %2943 = vrot.lane.b32.xlu0 %v2923_v35, %s6002_s6  ;;  %v2148_v29 = vmul.f32 %v7246_v23, %v2140_v62  ;;  %v2496_v2 = vpop.f32.mrf.mxu1  ;;  %v2909_v57 = vsub.f32 2.0, %v2901_v32 }
0x1a93   :  { %v5477_v24 = vpop.f32.mrf.mxu0  ;;  %v5883_v60 = vpop.eup %5882  ;;  %v2896_v61 = vmul.f32 %v5881_v59, %v7141_v45  ;;  %v2543_v58 = vmul.f32 %v2535_v39, %v2496_v2  ;;  %v2530_v49 = vmul.f32 %v5875_v3, %v2522_v28  ;;  %v4841_v39 = vld [vmem:[%s7783_s2 + $0x60] ss:$0 sm:$0xff] }
0x1a94   :  { %v1794_v30 = vsub.f32 2.0, %v1786_v55  ;;  %2945 = vrot.lane.b32.xlu1 %v2924_v20, %s6002_s6  ;;  %v1812_v17 = vmul.f32 %v7159_v44, %v1804_v31  ;;  %v2926_v47 = vmul.f32 %v5477_v24, %v2918_v34  ;;  %v2897_v54 = vmul.f32 %v5883_v60, %v7163_v9 }
0x1a95   :  { %v5885_v18 = vpop.eup %5884  ;;  %v2878_v22 = vpop.f32.mrf.mxu0  ;;  %v2156_v11 = vmul.f32 %v7125_v41, %v2148_v29  ;;  %v2904_v62 = vsub.f32 2.0, %v2896_v61  ;;  %v2538_v41 = vmul.f32 %v7170_v19, %v2530_v49 }
0x1a96   :  { %v5887_v27 = vpop.eup %5886  ;;  %v1802_v5 = vmul.f32 %v5879_v6, %v1794_v30  ;;  %v1784_v46 = vmul.f32 %v5885_v18, %v7236_v4  ;;  %1821 = vst.msk [vmem:[#allocation3 + $0x38] sm:$0xff] %vm1813_vm5, %v1812_v17  ;;  %2567 = vrot.lane.b32.xlu0 %v2544_v13, %s5991_s12  ;;  %v2905_v45 = vsub.f32 2.0, %v2897_v54  ;;  %v2917_v6 = vmul.f32 %v5877_v33, %v2909_v57 }
0x1a97   :  { %v5889_v44 = vpop.eup %5888  ;;  %v2131_v4 = vmul.f32 %v5887_v27, %v7175_v63  ;;  %v2912_v53 = vmul.f32 %v5881_v59, %v2904_v62 }
0x1a98   :  { %v1792_v23 = vsub.f32 2.0, %v1784_v46  ;;  %2949 = vrot.lane.b32.xlu1 %v2926_v47, %s6002_s6  ;;  %v1810_v10 = vmul.f32 %v7150_v56, %v1802_v5  ;;  %v2895_v56 = vmul.f32 %v5889_v44, %v7153_v43  ;;  %v2925_v31 = vmul.f32 %v2917_v6, %v2878_v22 }
0x1a99   :  { %v5891_v26 = vpop.eup %5890  ;;  %v2139_v3 = vsub.f32 2.0, %v2131_v4  ;;  %v2913_v33 = vmul.f32 %v5883_v60, %v2905_v45 }
0x1a9a   :  { %v5893_v36 = vpop.eup %5892  ;;  %v1800_v35 = vmul.f32 %v5885_v18, %v1792_v23  ;;  %v1782_v9 = vmul.f32 %v5891_v26, %v7258_v14  ;;  %1819 = vst.msk [vmem:[#allocation3 + $0x28] sm:$0xff] %vm1813_vm5, %v1810_v10  ;;  %2565 = vrot.lane.b32.xlu0 %v2543_v58, %s5991_s12  ;;  %v2903_v20 = vsub.f32 2.0, %v2895_v56 }
0x1a9b   :  { %v2513_v14 = vmul.f32 %v5893_v36, %v7186_v21  ;;  %v2147_v1 = vmul.f32 %v5887_v27, %v2139_v3  ;;  %v2921_v32 = vmul.f32 %v2913_v33, %v7256_v16  ;;  %v2920_v21 = vmul.f32 %v7221_v12, %v2912_v53 }
0x1a9c   :  { %v1790_v7 = vsub.f32 2.0, %v1782_v9  ;;  %2173 = vrot.lane.b32.xlu1 %v2156_v11, %s6001_s30  ;;  %v1808_v63 = vmul.f32 %v7139_v8, %v1800_v35  ;;  %v2911_v19 = vmul.f32 %v5889_v44, %v2903_v20 }
0x1a9d   :  { %v2521_v8 = vsub.f32 2.0, %v2513_v14  ;;  %v2155_v15 = vmul.f32 %v2147_v1, %v7133_v42 }
0x1a9e   :  { %v1798_v55 = vmul.f32 %v5891_v26, %v1790_v7  ;;  %1817 = vst.msk [vmem:[#allocation3 + $0x18] sm:$0xff] %vm1813_vm5, %v1808_v63  ;;  %2947 = vrot.lane.b32.xlu0 %v2925_v31, %s6002_s6  ;;  %v2919_v24 = vmul.f32 %v2911_v19, %v7234_v51 }
0x1a9f   :  { %v2529_v59 = vmul.f32 %v5893_v36, %v2521_v8 }
0x1aa0   :  { %2555 = vrot.lane.b32.xlu1 %v2538_v41, %s5991_s12  ;;  %v1806_v43 = vmul.f32 %v7123_v52, %v1798_v55 }
0x1aa1   :  { %v2537_v52 = vmul.f32 %v2529_v59, %v7181_v40 }
0x1aa2   :  { %1815 = vst.msk [vmem:[#allocation3 + $0x8] sm:$0xff] %vm1813_vm5, %v1806_v43  ;;  %2939 = vrot.lane.b32.xlu0 %v2921_v32, %s6002_s6 }
0x1aa4   :  { %2937 = vrot.lane.b32.xlu1 %v2920_v21, %s6002_s6 }
0x1aa6   :  { %2171 = vrot.lane.b32.xlu0 %v2155_v15, %s6001_s30 }
0x1aa8   :  { %2935 = vrot.lane.b32.xlu1 %v2919_v24, %s6002_s6 }
0x1aaa   :  { %2553 = vrot.lane.b32.xlu0 %v2537_v52, %s5991_s12 }
0x1adc   :  { %v2178_v12 = vpop.permute.xlu1 %2177 }
0x1add   :  { %2199 = vst.msk [vmem:[#allocation3 + $0x18] sm:$0xff] %vm2195_vm6, %v2178_v12 }
0x1ae0   :  { %v2182_v16 = vpop.permute.xlu1 %2181 }
0x1ae1   :  { %2201 = vst.msk [vmem:[#allocation3 + $0x28] sm:$0xff] %vm2195_vm6, %v2182_v16 }
0x1aeb   :  { %v2186_v60 = vpop.permute.xlu1 %2185 }
0x1aec   :  { %2203 = vst.msk [vmem:[#allocation3 + $0x38] sm:$0xff] %vm2195_vm6, %v2186_v60 }
0x1aef   :  { %v2184_v42 = vpop.permute.xlu1 %2183 }
0x1af0   :  { %2202 = vst.msk [vmem:[#allocation3 + $0x30] sm:$0xff] %vm2195_vm6, %v2184_v42 }
0x1af3   :  { %v2560_v51 = vpop.permute.xlu1 %2559 }
0x1af4   :  { %2581 = vst.msk [vmem:[#allocation3 + $0x18] sm:$0xff] %vm2577_vm7, %v2560_v51  ;;  %v2176_v40 = vpop.permute.xlu0 %2175 }
0x1af5   :  { %2198 = vst.msk [vmem:[#allocation3 + $0x10] sm:$0xff] %vm2195_vm6, %v2176_v40 }
0x1af8   :  { %v2180_v30 = vpop.permute.xlu0 %2179 }
0x1af9   :  { %2200 = vst.msk [vmem:[#allocation3 + $0x20] sm:$0xff] %vm2195_vm6, %v2180_v30 }
0x1afc   :  { %v2558_v34 = vpop.permute.xlu0 %2557 }
0x1afd   :  { %2580 = vst.msk [vmem:[#allocation3 + $0x10] sm:$0xff] %vm2577_vm7, %v2558_v34 }
0x1afe   :  { %v2942_v17 = vpop.permute.xlu1 %2941 }
0x1aff   :  { %2963 = vst.msk [vmem:[#allocation3 + $0x18] sm:$0xff] %vm2959_vm8, %v2942_v17 }
0x1b00   :  { %v2562_v18 = vpop.permute.xlu0 %2561 }
0x1b01   :  { %2582 = vst.msk [vmem:[#allocation3 + $0x20] sm:$0xff] %vm2577_vm7, %v2562_v18 }
0x1b02   :  { %v2564_v29 = vpop.permute.xlu1 %2563 }
0x1b03   :  { %2583 = vst.msk [vmem:[#allocation3 + $0x28] sm:$0xff] %vm2577_vm7, %v2564_v29 }
0x1b04   :  { %v2944_v13 = vpop.permute.xlu0 %2943 }
0x1b05   :  { %2964 = vst.msk [vmem:[#allocation3 + $0x20] sm:$0xff] %vm2959_vm8, %v2944_v13 }
0x1b06   :  { %v2946_v27 = vpop.permute.xlu1 %2945  ;;  %v2971_v4 = vld [vmem:[#allocation3 + $0x18] sm:$0xff] }
0x1b07   :  { %2965 = vst.msk [vmem:[#allocation3 + $0x28] sm:$0xff] %vm2959_vm8, %v2946_v27  ;;  %v7344_v9 = vadd.f32 %v4841_v39, %v2971_v4  ;;  %v5962_v4 = vld [vmem:[%s7784_s3 + $0x20] sm:$0xff] }
0x1b08   :  { %v2568_v28 = vpop.permute.xlu0 %2567 }
0x1b09   :  { %2585 = vst.msk [vmem:[#allocation3 + $0x38] sm:$0xff] %vm2577_vm7, %v2568_v28  ;;  %v3000_v7 = vmin.f32 %v7344_v9, 0.0  ;;  %vm2992_vm13 = vcmp.gt.f32.partialorder %v7344_v9, 0.0 }
0x1b0a   :  { %v2950_v5 = vpop.permute.xlu1 %2949 }
0x1b0b   :  { %2967 = vst.msk [vmem:[#allocation3 + $0x38] sm:$0xff] %vm2959_vm8, %v2950_v5  ;;  %v3011_v33 = vmul.f32 1.442695, %v3000_v7 }
0x1b0c   :  { %v2566_v46 = vpop.permute.xlu0 %2565  ;;  %v2972_v57 = vld [vmem:[#allocation3 + $0x20] sm:$0xff] }
0x1b0d   :  { %2584 = vst.msk [vmem:[#allocation3 + $0x30] sm:$0xff] %vm2577_vm7, %v2566_v46  ;;  %v7340_v26 = vadd.f32 %v4841_v39, %v2972_v57 }
0x1b0e   :  { %v2174_v2 = vpop.permute.xlu1 %2173  ;;  %v2973_v47 = vld [vmem:[#allocation3 + $0x28] sm:$0xff] }
0x1b0f   :  { %2197 = vst.msk [vmem:[#allocation3 + $0x8] sm:$0xff] %vm2195_vm6, %v2174_v2  ;;  %v7337_v23 = vadd.f32 %v4841_v39, %v2973_v47  ;;  %v3001_v11 = vmin.f32 %v7340_v26, 0.0  ;;  %vm2993_vm12 = vcmp.gt.f32.partialorder %v7340_v26, 0.0 }
0x1b10   :  { %v2948_v54 = vpop.permute.xlu0 %2947 }
0x1b11   :  { %2966 = vst.msk [vmem:[#allocation3 + $0x30] sm:$0xff] %vm2959_vm8, %v2948_v54  ;;  %v3002_v35 = vmin.f32 %v7337_v23, 0.0  ;;  %v3013_v63 = vmul.f32 1.442695, %v3001_v11  ;;  %vm2994_vm11 = vcmp.gt.f32.partialorder %v7337_v23, 0.0 }
0x1b12   :  { %v2556_v44 = vpop.permute.xlu1 %2555  ;;  %v2975_v61 = vld [vmem:[#allocation3 + $0x38] sm:$0xff] }
0x1b13   :  { %2579 = vst.msk [vmem:[#allocation3 + $0x8] sm:$0xff] %vm2577_vm7, %v2556_v44  ;;  %v2988_v10 = vadd.f32 %v4841_v39, %v2975_v61  ;;  %v3015_v56 = vmul.f32 1.442695, %v3002_v35 }
0x1b14   :  { %v2940_v58 = vpop.permute.xlu0 %2939 }
0x1b15   :  { %v3004_v36 = vmin.f32 %v2988_v10, 0.0  ;;  %2962 = vst.msk [vmem:[#allocation3 + $0x10] sm:$0xff] %vm2959_vm8, %v2940_v58  ;;  %vm2996_vm9 = vcmp.gt.f32.partialorder %v2988_v10, 0.0  ;;  %v5963_v58 = vld [vmem:[%s7784_s3 + $0x28] sm:$0xff] }
0x1b16   :  { %v2938_v49 = vpop.permute.xlu1 %2937 }
0x1b17   :  { %2961 = vst.msk [vmem:[#allocation3 + $0x8] sm:$0xff] %vm2959_vm8, %v2938_v49  ;;  %v3019_v22 = vmul.f32 1.442695, %v3004_v36  ;;  %v5964_v36 = vld [vmem:[%s7784_s3 + $0x30] sm:$0xff]  ;;  %v5965_v49 = vld [vmem:[%s7784_s3 + $0x38] sm:$0xff] }
0x1b18   :  { %v2172_v45 = vpop.permute.xlu0 %2171  ;;  %v2974_v6 = vld [vmem:[#allocation3 + $0x30] sm:$0xff] }
0x1b19   :  { %5894 = vpow2.f32 %v3019_v22  ;;  %2196 = vst.msk [vmem:[#allocation3] sm:$0xff] %vm2195_vm6, %v2172_v45  ;;  %v2987_v62 = vadd.f32 %v4841_v39, %v2974_v6 }
0x1b1a   :  { %v2936_v41 = vpop.permute.xlu1 %2935  ;;  %5896 = vpow2.f32 %v3015_v56 }
0x1b1b   :  { %v3003_v3 = vmin.f32 %v2987_v62, 0.0  ;;  %5898 = vpow2.f32 %v3013_v63  ;;  %vm2995_vm10 = vcmp.gt.f32.partialorder %v2987_v62, 0.0 }
0x1b1c   :  { %v2554_v14 = vpop.permute.xlu0 %2553  ;;  %v2970_v31 = vld [vmem:[#allocation3 + $0x10] sm:$0xff] }
0x1b1d   :  { %2578 = vst.msk [vmem:[#allocation3] sm:$0xff] %vm2577_vm7, %v2554_v14  ;;  %v3017_v55 = vmul.f32 1.442695, %v3003_v3  ;;  %v2983_v20 = vadd.f32 %v4841_v39, %v2970_v31 }
0x1b1e   :  { %v2969_v53 = vld [vmem:[#allocation3 + $0x8] sm:$0xff]  ;;  %2960 = vst.msk [vmem:[#allocation3] sm:$0xff] %vm2959_vm8, %v2936_v41 }
0x1b1f   :  { %v2982_v43 = vadd.f32 %v4841_v39, %v2969_v53  ;;  %5900 = vpow2.f32 %v3017_v55  ;;  %v2999_v1 = vmin.f32 %v2983_v20, 0.0  ;;  %vm2991_vm14 = vcmp.gt.f32.partialorder %v2983_v20, 0.0 }
0x1b20   :  { %5902 = vpow2.f32 %v3011_v33 }
0x1b21   :  { %v2998_v8 = vmin.f32 %v2982_v43, 0.0  ;;  %v3009_v32 = vmul.f32 1.442695, %v2999_v1  ;;  %vm2990_vm15 = vcmp.gt.f32.partialorder %v2982_v43, 0.0 }
0x1b23   :  { %v3007_v21 = vmul.f32 1.442695, %v2998_v8  ;;  %5904 = vpow2.f32 %v3009_v32 }
0x1b25   :  { %5906 = vpow2.f32 %v3007_v21  ;;  %v2968_v15 = vld [vmem:[#allocation3] sm:$0xff] }
0x1b26   :  { %v5895_v19 = vpop.eup %5894  ;;  %v2981_v24 = vadd.f32 %v4841_v39, %v2968_v15  ;;  %v3286_v15 = vld [vmem:[%s7783_s2 + $0x58] sm:$0xff] }
0x1b27   :  { %v4849_v59 = vadd.f32 -1.0, %v5895_v19  ;;  %v5897_v16 = vpop.eup %5896 }
0x1b28   :  { %v2997_v12 = vmin.f32 %v2981_v24, 0.0  ;;  %v5899_v42 = vpop.eup %5898  ;;  %v4847_v30 = vadd.f32 -1.0, %v5897_v16  ;;  %vm2989_vm0 = vcmp.gt.f32.partialorder %v2981_v24, 0.0  ;;  %v3281_v16 = vld [vmem:[%s7783_s2 + $0x30] sm:$0xff] }
0x1b29   :  { %v7352_v52 = vsel %vm2996_vm9, %v2988_v10, %v4849_v59  ;;  %v4846_v18 = vadd.f32 -1.0, %v5899_v42  ;;  %v5960_v10 = vld [vmem:[%s7784_s3 + $0x10] sm:$0xff]  ;;  %v3279_v42 = vld [vmem:[%s7783_s2 + $0x20] sm:$0xff] }
0x1b2a   :  { %5478 = vmatprep.subr.mxu1 %v7352_v52  ;;  %v3005_v60 = vmul.f32 1.442695, %v2997_v12  ;;  %v3034_v13 = vsel %vm2994_vm11, %v7337_v23, %v4847_v30  ;;  %v5959_v23 = vld [vmem:[%s7784_s3 + $0x8] sm:$0xff]  ;;  %v3285_v59 = vld [vmem:[%s7783_s2 + $0x50] sm:$0xff]  ;;  %v3282_v12 = vld [vmem:[%s7783_s2 + $0x38] sm:$0xff] }
0x1b2b   :  { %5479 = vmatpush3.msra.mxu1 %v7352_v52  ;;  %v3033_v5 = vsel %vm2993_vm12, %v7340_v26, %v4846_v18  ;;  %v5961_v26 = vld [vmem:[%s7784_s3 + $0x18] sm:$0xff] }
0x1b2c   :  { %v5901_v51 = vpop.eup %5900  ;;  %5908 = vpow2.f32 %v3005_v60  ;;  %v3280_v60 = vld [vmem:[%s7783_s2 + $0x28] sm:$0xff] }
0x1b2d   :  { %v4848_v40 = vadd.f32 -1.0, %v5901_v51  ;;  %v5903_v34 = vpop.eup %5902 }
0x1b2e   :  { %v4845_v27 = vadd.f32 -1.0, %v5903_v34 }
0x1b2f   :  { %v3035_v17 = vsel %vm2995_vm10, %v2987_v62, %v4848_v40 }
0x1b30   :  { %v5905_v29 = vpop.eup %5904  ;;  %5480 = vmatprep.subr.mxu1 %v3035_v17  ;;  %v3032_v2 = vsel %vm2992_vm13, %v7344_v9, %v4845_v27 }
0x1b31   :  { %5481 = vmatpush3.msra.mxu1 %v3035_v17  ;;  %v4844_v46 = vadd.f32 -1.0, %v5905_v29 }
0x1b32   :  { %v5907_v28 = vpop.eup %5906  ;;  %5482 = vmatprep.subr.mxu1 %v3034_v13 }
0x1b33   :  { %5483 = vmatpush3.msra.mxu1 %v3034_v13  ;;  %v4843_v47 = vadd.f32 -1.0, %v5907_v28  ;;  %v3031_v57 = vsel %vm2991_vm14, %v2983_v20, %v4844_v46 }
0x1b34   :  { %5484 = vmatprep.subr.mxu1 %v3033_v5 }
0x1b35   :  { %5485 = vmatpush3.msra.mxu1 %v3033_v5  ;;  %v3030_v39 = vsel %vm2990_vm15, %v2982_v43, %v4843_v47 }
0x1b36   :  { %5486 = vmatprep.subr.mxu1 %v3032_v2 }
0x1b37   :  { %5487 = vmatpush3.msra.mxu1 %v3032_v2 }
0x1b38   :  { %5488 = vmatprep.subr.mxu1 %v3031_v57 }
0x1b39   :  { %v5909_v54 = vpop.eup %5908  ;;  %5489 = vmatpush3.msra.mxu1 %v3031_v57 }
0x1b3a   :  { %5490 = vmatprep.subr.mxu1 %v3030_v39  ;;  %v4842_v44 = vadd.f32 -1.0, %v5909_v54 }
0x1b3b   :  { %5491 = vmatpush3.msra.mxu1 %v3030_v39 }
0x1b3c   :  { %v3029_v61 = vsel %vm2989_vm0, %v2981_v24, %v4842_v44  ;;  %v3284_v24 = vld [vmem:[%s7783_s2 + $0x48] sm:$0xff] }
0x1b3d   :  { %5492 = vmatprep.subr.mxu1 %v3029_v61 }
0x1b3e   :  { %5493 = vmatpush3.msra.mxu1 %v3029_v61 }
0x1b3f   :  { %5495 = vmatmul.mubr.msk.f32.vlgmr.msra.gmra.mxu1 %vm1032_vm3, %v5959_v23  ;;  %5534 = vmatprep.subr.mxu1 %v3286_v15 }
0x1b40   :  { %5497 = vmatprep.mubr.msk.f32.mxu1 %vm1032_vm3, %v5960_v10  ;;  %5535 = vmatpush3.msra.mxu1 %v3286_v15 }
0x1b41   :  { %5536 = vmatprep.subr.mxu1 %v3285_v59 }
0x1b42   :  { %5537 = vmatpush3.msra.mxu1 %v3285_v59 }
0x1b43   :  { %5498 = vmatmul.mubr.msk.f32.gmra.mxu1 %vm1032_vm3, %v5961_v26  ;;  %5538 = vmatprep.subr.mxu1 %v3284_v24 }
0x1b44   :  { %5500 = vmatprep.mubr.msk.f32.mxu1 %vm1032_vm3, %v5962_v4  ;;  %5539 = vmatpush3.msra.mxu1 %v3284_v24  ;;  %v7818_v24 = vld [vmem:[#allocation13_spill] sm:$0xff] }
0x1b47   :  { %5501 = vmatmul.mubr.msk.f32.gmra.mxu1 %vm1032_vm3, %v5963_v58 }
0x1b48   :  { %5503 = vmatprep.mubr.msk.f32.mxu1 %vm1032_vm3, %v5964_v36 }
0x1b4b   :  { %5504 = vmatmul.mubr.msk.f32.gmra.mxu1 %vm1032_vm3, %v5965_v49 }
0x1bff   :  { %v5496_v35 = vpop.f32.mrf.mxu1 }
0x1c00   :  { %v7411_v43 = vsub.f32 %v3030_v39, %v5496_v35 }
0x1c01   :  { %v3103_v9 = vpop.f32.mrf.mxu1 }
0x1c02   :  { %v7415_v8 = vsub.f32 %v3029_v61, %v3103_v9  ;;  %v3151_v21 = vmul.f32 %v7411_v43, %v7411_v43 }
0x1c03   :  { %v5499_v22 = vpop.f32.mrf.mxu1 }
0x1c04   :  { %v7403_v55 = vsub.f32 %v3032_v2, %v5499_v22  ;;  %v3150_v19 = vmul.f32 %v7415_v8, %v7415_v8 }
0x1c05   :  { %v3113_v11 = vpop.f32.mrf.mxu1 }
0x1c06   :  { %v7407_v20 = vsub.f32 %v3031_v57, %v3113_v11  ;;  %v3153_v1 = vmul.f32 %v7403_v55, %v7403_v55 }
0x1c07   :  { %v5502_v45 = vpop.f32.mrf.mxu1 }
0x1c08   :  { %v7393_v63 = vsub.f32 %v3034_v13, %v5502_v45  ;;  %v3152_v32 = vmul.f32 %v7407_v20, %v7407_v20 }
0x1c09   :  { %v3123_v6 = vpop.f32.mrf.mxu1 }
0x1c0a   :  { %v7399_v31 = vsub.f32 %v3033_v5, %v3123_v6  ;;  %v3155_v33 = vmul.f32 %v7393_v63, %v7393_v63 }
0x1c0b   :  { %v5505_v62 = vpop.f32.mrf.mxu1 }
0x1c0c   :  { %v7391_v56 = vsub.f32 %v7352_v52, %v5505_v62  ;;  %v3154_v53 = vmul.f32 %v7399_v31, %v7399_v31  ;;  %v3283_v52 = vld [vmem:[%s7783_s2 + $0x40] sm:$0xff]  ;;  %v6003_v62 = vmov 32   ;;  %s6004_s2 = smov 95  }
0x1c0d   :  { %v3133_v7 = vpop.f32.mrf.mxu1  ;;  %5540 = vmatprep.subr.mxu1 %v3283_v52  ;;  %5749 = vset.pattern.permute.xlu1 %v6003_v62 }
0x1c0e   :  { %v3157_v3 = vmul.f32 %v7391_v56, %v7391_v56  ;;  %v7397_v14 = vsub.f32 %v3035_v17, %v3133_v7  ;;  %5541 = vmatpush3.msra.mxu1 %v3283_v52  ;;  %5748 = vset.pattern.permute.xlu0 %v6003_v62  ;;  %v7819_v52 = vsub.s32 0, %v7818_v24  ;;  %v28_v24 = vld [vmem:[%s7782_s1 + $0x38] sm:$0xff] }
0x1c0f   :  { %5542 = vmatprep.subr.mxu1 %v3282_v12 }
0x1c10   :  { %v3156_v41 = vmul.f32 %v7397_v14, %v7397_v14  ;;  %5506 = vmatprep.subr.mxu0 %v3157_v3  ;;  %5543 = vmatpush3.msra.mxu1 %v3282_v12 }
0x1c11   :  { %5507 = vmatpush3.msra.mxu0 %v3157_v3  ;;  %5544 = vmatprep.subr.mxu1 %v3281_v16 }
0x1c12   :  { %5508 = vmatprep.subr.mxu0 %v3156_v41  ;;  %5545 = vmatpush3.msra.mxu1 %v3281_v16 }
0x1c13   :  { %5509 = vmatpush3.msra.mxu0 %v3156_v41  ;;  %5546 = vmatprep.subr.mxu1 %v3280_v60 }
0x1c14   :  { %5510 = vmatprep.subr.mxu0 %v3155_v33  ;;  %5547 = vmatpush3.msra.mxu1 %v3280_v60 }
0x1c15   :  { %5511 = vmatpush3.msra.mxu0 %v3155_v33  ;;  %5548 = vmatprep.subr.mxu1 %v3279_v42  ;;  %v7817_v33 = vmov 0.0  }
0x1c16   :  { %5512 = vmatprep.subr.mxu0 %v3154_v53  ;;  %5549 = vmatpush3.msra.mxu1 %v3279_v42 }
0x1c17   :  { %5513 = vmatpush3.msra.mxu0 %v3154_v53 }
0x1c18   :  { %5514 = vmatprep.subr.mxu0 %v3153_v1 }
0x1c19   :  { %5515 = vmatpush3.msra.mxu0 %v3153_v1 }
0x1c1a   :  { %5516 = vmatprep.subr.mxu0 %v3152_v32 }
0x1c1b   :  { %5517 = vmatpush3.msra.mxu0 %v3152_v32 }
0x1c1c   :  { %5518 = vmatprep.subr.mxu0 %v3151_v21 }
0x1c1d   :  { %5519 = vmatpush3.msra.mxu0 %v3151_v21 }
0x1c1e   :  { %5520 = vmatprep.subr.mxu0 %v3150_v19 }
0x1c1f   :  { %5521 = vmatpush3.msra.mxu0 %v3150_v19 }
0x1c20   :  { %5523 = vmatmul.mubr.msk.f32.vlgmr.msra.gmra.mxu0 %vm1032_vm3, %v5959_v23 }
0x1c21   :  { %5525 = vmatprep.mubr.msk.f32.mxu0 %vm1032_vm3, %v5960_v10 }
0x1c24   :  { %5526 = vmatmul.mubr.msk.f32.gmra.mxu0 %vm1032_vm3, %v5961_v26 }
0x1c25   :  { %5528 = vmatprep.mubr.msk.f32.mxu0 %vm1032_vm3, %v5962_v4 }
0x1c28   :  { %5529 = vmatmul.mubr.msk.f32.gmra.mxu0 %vm1032_vm3, %v5963_v58 }
0x1c29   :  { %5531 = vmatprep.mubr.msk.f32.mxu0 %vm1032_vm3, %v5964_v36 }
0x1c2c   :  { %5532 = vmatmul.mubr.msk.f32.gmra.mxu0 %vm1032_vm3, %v5965_v49 }
0x1ce0   :  { %v5524_v51 = vpop.f32.mrf.mxu0 }
0x1ce1   :  { %v3230_v40 = vadd.f32 1e-05, %v5524_v51 }
0x1ce2   :  { %v3224_v30 = vpop.f32.mrf.mxu0 }
0x1ce3   :  { %v3225_v34 = vadd.f32 1e-05, %v3224_v30  ;;  %5910 = vrsqrt.f32 %v3230_v40 }
0x1ce4   :  { %v5527_v17 = vpop.f32.mrf.mxu0 }
0x1ce5   :  { %5912 = vrsqrt.f32 %v3225_v34  ;;  %v3240_v18 = vadd.f32 1e-05, %v5527_v17 }
0x1ce6   :  { %v3234_v29 = vpop.f32.mrf.mxu0 }
0x1ce7   :  { %v3235_v13 = vadd.f32 1e-05, %v3234_v29  ;;  %5914 = vrsqrt.f32 %v3240_v18 }
0x1ce8   :  { %v5530_v27 = vpop.f32.mrf.mxu0 }
0x1ce9   :  { %5916 = vrsqrt.f32 %v3235_v13  ;;  %v3250_v28 = vadd.f32 1e-05, %v5530_v27 }
0x1cea   :  { %v3244_v5 = vpop.f32.mrf.mxu0 }
0x1ceb   :  { %v3245_v46 = vadd.f32 1e-05, %v3244_v5  ;;  %5918 = vrsqrt.f32 %v3250_v28 }
0x1cec   :  { %v5533_v2 = vpop.f32.mrf.mxu0 }
0x1ced   :  { %5920 = vrsqrt.f32 %v3245_v46  ;;  %v3260_v47 = vadd.f32 1e-05, %v5533_v2 }
0x1cee   :  { %v3254_v57 = vpop.f32.mrf.mxu0 }
0x1cef   :  { %v3255_v54 = vadd.f32 1e-05, %v3254_v57  ;;  %5922 = vrsqrt.f32 %v3260_v47 }
0x1cf0   :  { %v5911_v39 = vpop.eup %5910 }
0x1cf1   :  { %5924 = vrsqrt.f32 %v3255_v54  ;;  %v3272_v23 = vmul.f32 %v5911_v39, %v7411_v43 }
0x1cf2   :  { %v5913_v44 = vpop.eup %5912 }
0x1cf3   :  { %v3271_v61 = vmul.f32 %v5913_v44, %v7415_v8 }
0x1cf4   :  { %v5915_v10 = vpop.eup %5914 }
0x1cf5   :  { %5550 = vmatprep.mubr.msk.f32.mxu1 %vm1032_vm3, %v3271_v61  ;;  %v3274_v58 = vmul.f32 %v5915_v10, %v7403_v55 }
0x1cf6   :  { %v5917_v26 = vpop.eup %5916  ;;  %5551 = vmatmul.mubr.msk.f32.vlgmr.msra.gmra.mxu1 %vm1032_vm3, %v3272_v23 }
0x1cf7   :  { %v3273_v4 = vmul.f32 %v5917_v26, %v7407_v20 }
0x1cf8   :  { %v5919_v36 = vpop.eup %5918 }
0x1cf9   :  { %5553 = vmatprep.mubr.msk.f32.mxu1 %vm1032_vm3, %v3273_v4  ;;  %v3276_v9 = vmul.f32 %v5919_v36, %v7393_v63 }
0x1cfa   :  { %v5921_v49 = vpop.eup %5920  ;;  %5554 = vmatmul.mubr.msk.f32.gmra.mxu1 %vm1032_vm3, %v3274_v58 }
0x1cfb   :  { %v3275_v35 = vmul.f32 %v5921_v49, %v7399_v31 }
0x1cfc   :  { %v5923_v22 = vpop.eup %5922 }
0x1cfd   :  { %5556 = vmatprep.mubr.msk.f32.mxu1 %vm1032_vm3, %v3275_v35  ;;  %v3278_v6 = vmul.f32 %v5923_v22, %v7391_v56 }
0x1cfe   :  { %v5925_v11 = vpop.eup %5924  ;;  %5557 = vmatmul.mubr.msk.f32.gmra.mxu1 %vm1032_vm3, %v3276_v9 }
0x1cff   :  { %v3277_v45 = vmul.f32 %v5925_v11, %v7397_v14 }
0x1d01   :  { %5559 = vmatprep.mubr.msk.f32.mxu1 %vm1032_vm3, %v3277_v45 }
0x1d02   :  { %5560 = vmatmul.mubr.msk.f32.gmra.mxu1 %vm1032_vm3, %v3278_v6 }
0x1db6   :  { %v5552_v7 = vpop.f32.mrf.mxu1 }
0x1db7   :  { %3426 = vrot.lane.b32.xlu1 %v5552_v7, %s6004_s2 }
0x1db8   :  { %v3377_v63 = vpop.f32.mrf.mxu1 }
0x1db9   :  { %3424 = vrot.lane.b32.xlu0 %v3377_v63, %s6004_s2 }
0x1dba   :  { %v7470_v3 = vpop.f32.mrf.mxu1 }
0x1dbb   :  { %3430 = vrot.lane.b32.xlu1 %v7470_v3, %s6004_s2 }
0x1dbc   :  { %v7473_v31 = vpop.f32.mrf.mxu1 }
0x1dbd   :  { %3428 = vrot.lane.b32.xlu0 %v7473_v31, %s6004_s2 }
0x1dbe   :  { %v7476_v56 = vpop.f32.mrf.mxu1 }
0x1dbf   :  { %3434 = vrot.lane.b32.xlu1 %v7476_v56, %s6004_s2 }
0x1dc0   :  { %v3397_v14 = vpop.f32.mrf.mxu1 }
0x1dc1   :  { %3432 = vrot.lane.b32.xlu0 %v3397_v14, %s6004_s2 }
0x1dc2   :  { %v5561_v41 = vpop.f32.mrf.mxu1 }
0x1dc3   :  { %3438 = vrot.lane.b32.xlu1 %v5561_v41, %s6004_s2  ;;  %5562 = vmatprep.subr.mxu0 %v5561_v41 }
0x1dc4   :  { %v3407_v55 = vpop.f32.mrf.mxu1  ;;  %5563 = vmatpush3.msra.mxu0 %v5561_v41 }
0x1dc5   :  { %3436 = vrot.lane.b32.xlu0 %v3407_v55, %s6004_s2  ;;  %5564 = vmatprep.subr.mxu0 %v3407_v55 }
0x1dc6   :  { %5565 = vmatpush3.msra.mxu0 %v3407_v55 }
0x1dc7   :  { %3485 = vperm.xlu1 %5749, %v5552_v7   ;;  %5566 = vmatprep.subr.mxu0 %v7476_v56 }
0x1dc8   :  { %5567 = vmatpush3.msra.mxu0 %v7476_v56 }
0x1dc9   :  { %3481 = vperm.xlu0 %5748, %v3377_v63   ;;  %5568 = vmatprep.subr.mxu0 %v3397_v14 }
0x1dca   :  { %5569 = vmatpush3.msra.mxu0 %v3397_v14 }
0x1dcb   :  { %5570 = vmatprep.subr.mxu0 %v7470_v3 }
0x1dcc   :  { %5571 = vmatpush3.msra.mxu0 %v7470_v3 }
0x1dcd   :  { %5572 = vmatprep.subr.mxu0 %v7473_v31 }
0x1dce   :  { %5573 = vmatpush3.msra.mxu0 %v7473_v31 }
0x1dcf   :  { %5574 = vmatprep.subr.mxu0 %v5552_v7 }
0x1dd0   :  { %5575 = vmatpush3.msra.mxu0 %v5552_v7 }
0x1dd1   :  { %5576 = vmatprep.subr.mxu0 %v3377_v63 }
0x1dd2   :  { %5577 = vmatpush3.msra.mxu0 %v3377_v63 }
0x1dd3   :  { %5610 = vmatprep.subr.mxu0 %v7817_v33 }
0x1e29   :  { %v3427_v53 = vpop.permute.xlu1 %3426 }
0x1e2b   :  { %v3425_v20 = vpop.permute.xlu0 %3424 }
0x1e2c   :  { %3448 = vxpose.xlu1.b32.start [1/8] (short) (narrow) %v3425_v20, 8  ;;  %v7820_v20 = vld [vmem:[#allocation15_spill] sm:$0xff] }
0x1e2d   :  { %v3431_v1 = vpop.permute.xlu1 %3430 }
0x1e2f   :  { %v3429_v43 = vpop.permute.xlu0 %3428 }
0x1e30   :  { %3449 = vxpose.xlu1.b32.cont [2/8] (short) (narrow) %v3427_v53, 8 }
0x1e31   :  { %v3435_v32 = vpop.permute.xlu1 %3434 }
0x1e33   :  { %v3433_v8 = vpop.permute.xlu0 %3432 }
0x1e34   :  { %3450 = vxpose.xlu1.b32.cont [3/8] (short) (narrow) %v3429_v43, 8 }
0x1e35   :  { %v3439_v19 = vpop.permute.xlu1 %3438 }
0x1e37   :  { %v3437_v21 = vpop.permute.xlu0 %3436 }
0x1e38   :  { %3451 = vxpose.xlu1.b32.cont [4/8] (short) (narrow) %v3431_v1, 8 }
0x1e3c   :  { %3452 = vxpose.xlu1.b32.cont [5/8] (short) (narrow) %v3433_v8, 8 }
0x1e40   :  { %3453 = vxpose.xlu1.b32.cont [6/8] (short) (narrow) %v3435_v32, 8 }
0x1e42   :  { %v3486_v15 = vpop.permute.xlu1 %3485 }
0x1e44   :  { %3454 = vxpose.xlu1.b32.cont [7/8] (short) (narrow) %v3437_v21, 8  ;;  %v3482_v16 = vpop.permute.xlu0 %3481 }
0x1e48   :  { %3455 = vxpose.xlu1.b32.end [8/8] (short) (narrow) %v3439_v19, 8  ;;  %v7821_v19 = vld [vmem:[#allocation14_spill] sm:$0xff] }
0x1e66   :  { %3505 = vperm.xlu1 %5749, %v3407_v55  }
0x1ea8   :  { %v3464_v59 = vpop.trf.xlu1 }
0x1ea9   :  { %v7488_v12 = vrot.slane %v3464_v59, %v7819_v52  ;;  %v29_v59 = vld [vmem:[%s7782_s1 + $0x40] sm:$0xff] }
0x1eaa   :  { %v7536_v52 = vld [vmem:[%s7782_s1 + $0x60] sm:$0xff]  ;;  %5590 = vmatprep.subr.mxu1 %v29_v59 }
0x1eab   :  { %v3516_v60 = vadd.f32 %v7488_v12, %v3482_v16  ;;  %v3517_v42 = vadd.f32 %v7488_v12, %v3486_v15  ;;  %5591 = vmatpush3.msra.mxu1 %v29_v59  ;;  %v27_v16 = vld [vmem:[%s7782_s1 + $0x30] sm:$0xff] }
0x1eac   :  { %5592 = vmatprep.subr.mxu1 %v28_v24 }
0x1ead   :  { %vm3524_vm4 = vcmp.ge.f32.partialorder %v3516_v60, 0.0  ;;  %v3532_v51 = vmul.f32 0.2, %v3516_v60  ;;  %vm3525_vm5 = vcmp.ge.f32.partialorder %v3517_v42, 0.0  ;;  %v3533_v40 = vmul.f32 0.2, %v3517_v42  ;;  %5593 = vmatpush3.msra.mxu1 %v28_v24 }
0x1eae   :  { %5594 = vmatprep.subr.mxu1 %v27_v16 }
0x1eaf   :  { %v3540_v30 = vsel %vm3524_vm4, %v3516_v60, %v3532_v51  ;;  %v3541_v34 = vsel %vm3525_vm5, %v3517_v42, %v3533_v40  ;;  %5595 = vmatpush3.msra.mxu1 %v27_v16  ;;  %v26_v60 = vld [vmem:[%s7782_s1 + $0x28] sm:$0xff]  ;;  %v7556_v42 = vld [vmem:[%s7782_s1 + $0x50] sm:$0xff]  ;;  %v62_v40 = vld [vmem:[%s7785_s4 + $0x18] sm:$0xff] }
0x1eb0   :  { %v3548_v17 = vadd.f32 %v3540_v30, %v6628_v38  ;;  %v3549_v29 = vadd.f32 %v3541_v34, %v6625_v48  ;;  %5596 = vmatprep.subr.mxu1 %v26_v60  ;;  %v7563_v51 = vld [vmem:[%s7782_s1 + $0x48] sm:$0xff] }
0x1eb1   :  { %5597 = vmatpush3.msra.mxu1 %v26_v60 }
0x1eb2   :  { %v3556_v18 = vsel %vm1032_vm3, %v3548_v17, -inf  ;;  %v3559_v13 = vsel %vm1032_vm3, %v3549_v29, -inf  ;;  %5621 = vmatprep.subr.mxu1 %v7817_v33 }
0x1eb3   :  { %3557 = vmax.xlane.f32.xlu0 %v3556_v18 }
0x1eb7   :  { %3560 = vmax.xlane.f32.xlu0 %v3559_v13 }
0x1ecd   :  { %3489 = vperm.xlu0 %5748, %v7473_v31  }
0x1ed1   :  { %3493 = vperm.xlu0 %5748, %v7470_v3  }
0x1ed5   :  { %3497 = vperm.xlu0 %5748, %v3397_v14  }
0x1ed9   :  { %3501 = vperm.xlu0 %5748, %v7476_v56  }
0x1edd   :  { %3509 = vperm.xlu0 %5748, %v5561_v41  }
0x1ee1   :  { %v3506_v23 = vpop.permute.xlu1 %3505 }
0x1ee2   :  { %v3522_v36 = vadd.f32 %v7488_v12, %v3506_v23 }
0x1ee4   :  { %v3538_v6 = vmul.f32 0.2, %v3522_v36  ;;  %vm3530_vm9 = vcmp.ge.f32.partialorder %v3522_v36, 0.0 }
0x1ee6   :  { %v3546_v56 = vsel %vm3530_vm9, %v3522_v36, %v3538_v6 }
0x1ee7   :  { %v3554_v53 = vadd.f32 %v3546_v56, %v7820_v20 }
0x1ee9   :  { %v3574_v1 = vsel %vm1032_vm3, %v3554_v53, -inf }
0x1f3c   :  { %v3558_v27 = vpop.xlane.xlu0 %3557 }
0x1f3d   :  { %v3580_v28 = vsub.f32 %v3548_v17, %v3558_v27 }
0x1f3f   :  { %v3588_v5 = vmul.f32 1.442695, %v3580_v28 }
0x1f40   :  { %v3561_v38 = vpop.xlane.xlu0 %3560 }
0x1f41   :  { %5926 = vpow2.f32 %v3588_v5  ;;  %v3581_v46 = vsub.f32 %v3549_v29, %v3561_v38 }
0x1f43   :  { %v3590_v2 = vmul.f32 1.442695, %v3581_v46 }
0x1f45   :  { %5928 = vpow2.f32 %v3590_v2 }
0x1f48   :  { %v3490_v48 = vpop.permute.xlu0 %3489 }
0x1f49   :  { %v3518_v47 = vadd.f32 %v7488_v12, %v3490_v48 }
0x1f4b   :  { %vm3526_vm6 = vcmp.ge.f32.partialorder %v3518_v47, 0.0  ;;  %v3534_v57 = vmul.f32 0.2, %v3518_v47 }
0x1f4c   :  { %v3494_v54 = vpop.permute.xlu0 %3493 }
0x1f4d   :  { %v3519_v39 = vadd.f32 %v7488_v12, %v3494_v54  ;;  %v3542_v44 = vsel %vm3526_vm6, %v3518_v47, %v3534_v57 }
0x1f4e   :  { %v5927_v61 = vpop.eup %5926  ;;  %v7502_v10 = vadd.f32 %v3542_v44, %v6634_v0 }
0x1f4f   :  { %vm3527_vm7 = vcmp.ge.f32.partialorder %v3519_v39, 0.0  ;;  %v3535_v26 = vmul.f32 0.2, %v3519_v39  ;;  %5578 = vmatprep.mubr.msk.f32.mxu0 %vm1032_vm3, %v5927_v61  ;;  %v3604_v8 = vsel %vm1032_vm3, %v5927_v61, 0.0 }
0x1f50   :  { %v3498_v4 = vpop.permute.xlu0 %3497  ;;  %v3562_v58 = vsel %vm1032_vm3, %v7502_v10, -inf }
0x1f51   :  { %v3520_v49 = vadd.f32 %v7488_v12, %v3498_v4  ;;  %3563 = vmax.xlane.f32.xlu0 %v3562_v58  ;;  %v3543_v35 = vsel %vm3527_vm7, %v3519_v39, %v3535_v26 }
0x1f52   :  { %v5929_v9 = vpop.eup %5928  ;;  %v7510_v22 = vadd.f32 %v3543_v35, %v6691_v25 }
0x1f53   :  { %vm3528_vm8 = vcmp.ge.f32.partialorder %v3520_v49, 0.0  ;;  %v3536_v0 = vmul.f32 0.2, %v3520_v49  ;;  %5579 = vmatmul.mubr.msk.f32.vlgmr.msra.gmra.mxu0 %vm1032_vm3, %v5929_v9  ;;  %v3607_v21 = vsel %vm1032_vm3, %v5929_v9, 0.0 }
0x1f54   :  { %v3502_v11 = vpop.permute.xlu0 %3501  ;;  %v3565_v45 = vsel %vm1032_vm3, %v7510_v22, -inf  ;;  %5611 = vmatpush3.msra.mxu0 %v7536_v52 }
0x1f55   :  { %v3521_v62 = vadd.f32 %v7488_v12, %v3502_v11  ;;  %3566 = vmax.xlane.f32.xlu1 %v3565_v45  ;;  %v3544_v7 = vsel %vm3528_vm8, %v3520_v49, %v3536_v0  ;;  %5612 = vmatprep.subr.mxu0 %v7817_v33 }
0x1f56   :  { %v3552_v63 = vadd.f32 %v3544_v7, %v6741_v50 }
0x1f57   :  { %vm3529_vm10 = vcmp.ge.f32.partialorder %v3521_v62, 0.0  ;;  %v3537_v3 = vmul.f32 0.2, %v3521_v62 }
0x1f58   :  { %v3568_v25 = vsel %vm1032_vm3, %v3552_v63, -inf  ;;  %v3510_v14 = vpop.permute.xlu0 %3509 }
0x1f59   :  { %3569 = vmax.xlane.f32.xlu0 %v3568_v25  ;;  %v3545_v31 = vsel %vm3529_vm10, %v3521_v62, %v3537_v3  ;;  %v3523_v43 = vadd.f32 %v7488_v12, %v3510_v14  ;;  %v7542_v12 = vld [vmem:[%s7782_s1 + $0x58] sm:$0xff] }
0x1f5a   :  { %v3553_v41 = vadd.f32 %v3545_v31, %v6738_v37  ;;  %5613 = vmatpush3.msra.mxu0 %v7542_v12 }
0x1f5b   :  { %v3539_v50 = vmul.f32 0.2, %v3523_v43  ;;  %vm3531_vm11 = vcmp.ge.f32.partialorder %v3523_v43, 0.0  ;;  %5614 = vmatprep.subr.mxu0 %v7817_v33 }
0x1f5c   :  { %v3571_v55 = vsel %vm1032_vm3, %v3553_v41, -inf  ;;  %5615 = vmatpush3.msra.mxu0 %v7556_v42 }
0x1f5d   :  { %3572 = vmax.xlane.f32.xlu0 %v3571_v55  ;;  %v3547_v32 = vsel %vm3531_vm11, %v3523_v43, %v3539_v50  ;;  %5616 = vmatprep.subr.mxu0 %v7817_v33 }
0x1f5e   :  { %v3555_v37 = vadd.f32 %v3547_v32, %v7821_v19  ;;  %5617 = vmatpush3.msra.mxu0 %v7563_v51 }
0x1f5f   :  { %5632 = vmatprep.subr.mxu0 %v7817_v33 }
0x1f60   :  { %v3577_v15 = vsel %vm1032_vm3, %v3555_v37, -inf }
0x1f61   :  { %3575 = vmax.xlane.f32.xlu0 %v3574_v1 }
0x1f65   :  { %3605 = vadd.xlane.f32.xlu0 %v3604_v8  ;;  %v7637_v8 = vld [vmem:[%s7782_s1 + $0x68] ss:$0 sm:$0xff]  ;;  %s6005_s1 = smov [#allocation4]  }
0x1f66   :  { %4011 = vrot.lane.b32.xlu1 %v62_v40, %s5991_s12  ;;  %s4745_s11 = sshll.u32 %s6005_s1, 4  ;;  %s4746_s11 = int_to_ptr.vmem [resolvable:$true] %s4745_s11 }
0x1f67   :  { %s5966_s13 = scalar_lea.vmem %s4746_s11, 128  ;;  %p5971_p1 = scmp.lt.s32.totalorder %s4746_s11, %s4746_s11 }
0x1f68   :  { %p5967_p0 = scmp.ne.s32.totalorder %s4746_s11, %s5966_s13  ;;  %p5972_p2 = scmp.lt.s32.totalorder %s5966_s13, %s5966_s13 }
0x1f69   :  { %3608 = vadd.xlane.f32.xlu0 %v3607_v21 }
0x1f6a   :  { %p5973_p3 = por %p5972_p2, %p5971_p1 }
0x1f6c   :  { %p5974_p4 = pnand %p5973_p3, %p5967_p0 }
0x1f6d   :  { %3578 = vmax.xlane.f32.xlu0 %v3577_v15 }
0x1fda   :  { %v3564_v30 = vpop.xlane.xlu0 %3563 }
0x1fdb   :  { %v3582_v34 = vsub.f32 %v7502_v10, %v3564_v30 }
0x1fdd   :  { %v3592_v17 = vmul.f32 1.442695, %v3582_v34 }
0x1fde   :  { %v3567_v18 = vpop.xlane.xlu1 %3566 }
0x1fdf   :  { %5930 = vpow2.f32 %v3592_v17  ;;  %v3583_v29 = vsub.f32 %v7510_v22, %v3567_v18  ;;  %v61_v22 = vld [vmem:[%s7785_s4 + $0x10] sm:$0xff] }
0x1fe1   :  { %v3594_v13 = vmul.f32 1.442695, %v3583_v29 }
0x1fe2   :  { %v3570_v27 = vpop.xlane.xlu0 %3569 }
0x1fe3   :  { %5932 = vpow2.f32 %v3594_v13  ;;  %v3584_v28 = vsub.f32 %v3552_v63, %v3570_v27  ;;  %v4012_v13 = vpop.permute.xlu1 %4011 }
0x1fe5   :  { %v3596_v5 = vmul.f32 1.442695, %v3584_v28 }
0x1fe6   :  { %v3573_v38 = vpop.xlane.xlu0 %3572 }
0x1fe7   :  { %5934 = vpow2.f32 %v3596_v5  ;;  %v3585_v46 = vsub.f32 %v3553_v41, %v3573_v38 }
0x1fe9   :  { %v3598_v2 = vmul.f32 1.442695, %v3585_v46 }
0x1fea   :  { %v3576_v48 = vpop.xlane.xlu0 %3575 }
0x1feb   :  { %5936 = vpow2.f32 %v3598_v2  ;;  %v3586_v47 = vsub.f32 %v3554_v53, %v3576_v48 }
0x1fec   :  { %v7574_v57 = vpop.eup %5930 }
0x1fed   :  { %v3600_v54 = vmul.f32 1.442695, %v3586_v47  ;;  %5581 = vmatprep.mubr.msk.f32.mxu0 %vm1032_vm3, %v7574_v57  ;;  %v3610_v17 = vsel %vm1032_vm3, %v7574_v57, 0.0 }
0x1fee   :  { %v3606_v39 = vpop.xlane.xlu0 %3605 }
0x1fef   :  { %5938 = vpow2.f32 %v3600_v54 }
0x1ff0   :  { %v7578_v44 = vpop.eup %5932 }
0x1ff1   :  { %5582 = vmatmul.mubr.msk.f32.gmra.mxu0 %vm1032_vm3, %v7578_v44  ;;  %v3613_v15 = vsel %vm1032_vm3, %v7578_v44, 0.0 }
0x1ff2   :  { %v3609_v61 = vpop.xlane.xlu0 %3608 }
0x1ff4   :  { %v7582_v23 = vpop.eup %5934 }
0x1ff5   :  { %5584 = vmatprep.mubr.msk.f32.mxu0 %vm1032_vm3, %v7582_v23  ;;  %v3616_v59 = vsel %vm1032_vm3, %v7582_v23, 0.0 }
0x1ff6   :  { %v3579_v10 = vpop.xlane.xlu0 %3578 }
0x1ff7   :  { %v3587_v26 = vsub.f32 %v3555_v37, %v3579_v10 }
0x1ff8   :  { %v7586_v4 = vpop.eup %5936 }
0x1ff9   :  { %v3602_v58 = vmul.f32 1.442695, %v3587_v26  ;;  %5585 = vmatmul.mubr.msk.f32.gmra.mxu0 %vm1032_vm3, %v7586_v4  ;;  %v3619_v18 = vsel %vm1032_vm3, %v7586_v4, 0.0 }
0x1ffb   :  { %5940 = vpow2.f32 %v3602_v58 }
0x1ffc   :  { %v7590_v36 = vpop.eup %5938  ;;  %5942 = vrcp.f32 %v3606_v39 }
0x1ffd   :  { %5944 = vrcp.f32 %v3609_v61  ;;  %5587 = vmatprep.mubr.msk.f32.mxu0 %vm1032_vm3, %v7590_v36  ;;  %v3622_v46 = vsel %vm1032_vm3, %v7590_v36, 0.0 }
0x2008   :  { %v7594_v49 = vpop.eup %5940 }
0x2009   :  { %v5943_v35 = vpop.eup %5942  ;;  %5588 = vmatmul.mubr.msk.f32.gmra.mxu0 %vm1032_vm3, %v7594_v49  ;;  %v3625_v29 = vsel %vm1032_vm3, %v7594_v49, 0.0 }
0x200a   :  { %v5945_v9 = vpop.eup %5944  ;;  %5618 = vmatprep.mubr.msk.f32.mxu0 %vm5989_vm1, %v7817_v33  ;;  %v3765_v0 = vmul.f32 %v5943_v35, %v3606_v39 }
0x200b   :  { %v3766_v11 = vmul.f32 %v5945_v9, %v3609_v61 }
0x200c   :  { %v3773_v45 = vsub.f32 2.0, %v3765_v0 }
0x200d   :  { %5619 = vmatmul.mubr.msk.f32.vlgmr.msra.gmra.mxu0 %vm201_vm2, %v61_v22  ;;  %v3774_v6 = vsub.f32 2.0, %v3766_v11 }
0x200e   :  { %5633 = vmatpush3.msra.mxu0 %v7536_v52  ;;  %5640 = vmatprep.mubr.msk.f32.mxu0 %vm5989_vm1, %v7817_v33  ;;  %v3781_v7 = vmul.f32 %v5943_v35, %v3773_v45 }
0x200f   :  { %5634 = vmatprep.subr.mxu0 %v7817_v33  ;;  %v3782_v63 = vmul.f32 %v5945_v9, %v3774_v6 }
0x2010   :  { %5635 = vmatpush3.msra.mxu0 %v7542_v12 }
0x2011   :  { %5636 = vmatprep.subr.mxu0 %v7817_v33 }
0x2012   :  { %5637 = vmatpush3.msra.mxu0 %v7556_v42 }
0x2013   :  { %v5580_v62 = vpop.f32.mrf.mxu0  ;;  %5638 = vmatprep.subr.mxu0 %v7817_v33 }
0x2014   :  { %5639 = vmatpush3.msra.mxu0 %v7563_v51  ;;  %v3790_v31 = vmul.f32 %v5580_v62, %v3782_v63 }
0x2015   :  { %v3718_v3 = vpop.f32.mrf.mxu0  ;;  %5654 = vmatprep.subr.mxu0 %v7817_v33 }
0x2016   :  { %v3789_v25 = vmul.f32 %v3781_v7, %v3718_v3 }
0x2018   :  { %5598 = vmatprep.mubr.msk.f32.mxu1 %vm201_vm2, %v3789_v25 }
0x2019   :  { %5599 = vmatmul.mubr.msk.f32.vlgmr.msra.gmra.mxu1 %vm201_vm2, %v3790_v31 }
0x201a   :  { %5622 = vmatpush3.msra.mxu1 %v7536_v52 }
0x201b   :  { %5623 = vmatprep.subr.mxu1 %v7817_v33 }
0x201c   :  { %5624 = vmatpush3.msra.mxu1 %v7542_v12 }
0x201d   :  { %5625 = vmatprep.subr.mxu1 %v7817_v33 }
0x201e   :  { %5626 = vmatpush3.msra.mxu1 %v7556_v42 }
0x201f   :  { %5627 = vmatprep.subr.mxu1 %v7817_v33 }
0x2020   :  { %5628 = vmatpush3.msra.mxu1 %v7563_v51 }
0x2021   :  { %5643 = vmatprep.subr.mxu1 %v7817_v33 }
0x20b1   :  { %v7624_v56 = vpop.f32.mrf.mxu0 }
0x20b3   :  { %v3728_v14 = vpop.f32.mrf.mxu0 }
0x20b9   :  { %v7626_v41 = vpop.f32.mrf.mxu0 }
0x20bb   :  { %v3738_v55 = vpop.f32.mrf.mxu0 }
0x20c9   :  { %v7628_v20 = vpop.f32.mrf.mxu0 }
0x20cb   :  { %v7630_v53 = vpop.f32.mrf.mxu0 }
0x20cd   :  { %v3999_v43 = vpop.f32.mrf.mxu0 }
0x20cf   :  { %v5620_v1 = vpop.f32.mrf.mxu0 }
0x20d9   :  { %v7632_v50 = vpop.f32.mrf.mxu1 }
0x20db   :  { %v3891_v32 = vpop.f32.mrf.mxu1 }
0x20dc   :  { %v3892_v21 = vadd.f32 %v7637_v8, %v3891_v32 }
0x20de   :  { %v4003_v19 = vadd.f32 %v3999_v43, %v3892_v21 }
0x20e0   :  { %v4892_v37 = vclamps-f32 %v4003_v19, 1.0  ;;  %v4004_v24 = vmul.f32 0.16666667, %v4003_v19 }
0x20e2   :  { %4016 = vrot.lane.b32.xlu0 %v4892_v37, %s5990_s9  ;;  %v4005_v16 = vadd.f32 0.5, %v4004_v24 }
0x20e4   :  { %v4006_v60 = vmax.f32 %v4005_v16, 0.0 }
0x20e6   :  { %v4007_v40 = vmin.f32 %v4006_v60, 1.0 }
0x20e8   :  { %v4014_v27 = vmul.f32 %v4012_v13, %v4007_v40 }
0x2101   :  { %3614 = vadd.xlane.f32.xlu0 %v3613_v15 }
0x2105   :  { %3617 = vadd.xlane.f32.xlu0 %v3616_v59 }
0x2154   :  { %v4017_v30 = vpop.permute.xlu0 %4016 }
0x2155   :  { %v4019_v34 = vmul.f32 %v4017_v30, %v4007_v40 }
0x2157   :  { %4021 = vrot.lane.b32.xlu1 %v4019_v34, %s5991_s12 }
0x217b   :  { %3611 = vadd.xlane.f32.xlu1 %v3610_v17 }
0x217f   :  { %3620 = vadd.xlane.f32.xlu1 %v3619_v18 }
0x2183   :  { %3626 = vadd.xlane.f32.xlu1 %v3625_v29 }
0x218a   :  { %v3615_v2 = vpop.xlane.xlu0 %3614 }
0x218b   :  { %5946 = vrcp.f32 %v3615_v2 }
0x218e   :  { %v3618_v48 = vpop.xlane.xlu0 %3617 }
0x218f   :  { %5948 = vrcp.f32 %v3618_v48 }
0x2198   :  { %v5947_v54 = vpop.eup %5946 }
0x2199   :  { %v3768_v44 = vmul.f32 %v5947_v54, %v3615_v2 }
0x219b   :  { %v3776_v10 = vsub.f32 2.0, %v3768_v44 }
0x219c   :  { %v5949_v39 = vpop.eup %5948 }
0x219d   :  { %v3769_v61 = vmul.f32 %v5949_v39, %v3618_v48  ;;  %v3784_v36 = vmul.f32 %v5947_v54, %v3776_v10 }
0x219f   :  { %v3777_v26 = vsub.f32 2.0, %v3769_v61  ;;  %v3792_v45 = vmul.f32 %v7624_v56, %v3784_v36 }
0x21a1   :  { %v3785_v35 = vmul.f32 %v5949_v39, %v3777_v26 }
0x21a3   :  { %v3793_v6 = vmul.f32 %v3785_v35, %v3738_v55 }
0x21c9   :  { %v4022_v28 = vpop.permute.xlu1 %4021 }
0x21ca   :  { %v7652_v5 = vadd.f32 %v4022_v28, %v4014_v27 }
0x21cc   :  { %v4893_v38 = vclamps-f32 %v7652_v5, 1.0 }
0x21ce   :  { %4028 = vrot.lane.b32.xlu0 %v4893_v38, %s5990_s9 }
0x21ed   :  { %3623 = vadd.xlane.f32.xlu0 %v3622_v46 }
0x2204   :  { %v3612_v47 = vpop.xlane.xlu1 %3611 }
0x2205   :  { %5950 = vrcp.f32 %v3612_v47 }
0x2208   :  { %v3621_v57 = vpop.xlane.xlu1 %3620 }
0x2209   :  { %5952 = vrcp.f32 %v3621_v57 }
0x220c   :  { %v3627_v25 = vpop.xlane.xlu1 %3626 }
0x220d   :  { %5954 = vrcp.f32 %v3627_v25 }
0x2212   :  { %v5951_v23 = vpop.eup %5950 }
0x2213   :  { %v3767_v4 = vmul.f32 %v5951_v23, %v3612_v47 }
0x2215   :  { %v3775_v58 = vsub.f32 2.0, %v3767_v4 }
0x2216   :  { %v5953_v49 = vpop.eup %5952 }
0x2217   :  { %v3783_v9 = vmul.f32 %v5951_v23, %v3775_v58  ;;  %v3770_v22 = vmul.f32 %v5953_v49, %v3621_v57 }
0x2219   :  { %v3791_v0 = vmul.f32 %v3783_v9, %v3728_v14  ;;  %v3778_v11 = vsub.f32 2.0, %v3770_v22 }
0x221a   :  { %v5955_v56 = vpop.eup %5954 }
0x221b   :  { %v3786_v62 = vmul.f32 %v5953_v49, %v3778_v11  ;;  %5601 = vmatprep.mubr.msk.f32.mxu1 %vm201_vm2, %v3791_v0  ;;  %v3772_v14 = vmul.f32 %v5955_v56, %v3627_v25 }
0x221c   :  { %5602 = vmatmul.mubr.msk.f32.gmra.mxu1 %vm201_vm2, %v3792_v45 }
0x221d   :  { %v3794_v7 = vmul.f32 %v7626_v41, %v3786_v62  ;;  %5604 = vmatprep.mubr.msk.f32.mxu1 %vm201_vm2, %v3793_v6  ;;  %v3780_v43 = vsub.f32 2.0, %v3772_v14 }
0x221f   :  { %v3788_v21 = vmul.f32 %v5955_v56, %v3780_v43 }
0x2220   :  { %5605 = vmatmul.mubr.msk.f32.gmra.mxu1 %vm201_vm2, %v3794_v7 }
0x2221   :  { %v3796_v37 = vmul.f32 %v7628_v20, %v3788_v21 }
0x2240   :  { %v4029_v63 = vpop.permute.xlu0 %4028 }
0x2241   :  { %v4031_v3 = vmul.f32 %v4029_v63, %v4007_v40  ;;  %v3897_v40 = vadd.f32 %v7632_v50, %v7637_v8 }
0x2243   :  { %4033 = vrot.lane.b32.xlu0 %v4031_v3, %s5991_s12 }
0x2276   :  { %v3624_v31 = vpop.xlane.xlu0 %3623 }
0x2277   :  { %5956 = vrcp.f32 %v3624_v31 }
0x2284   :  { %v5957_v55 = vpop.eup %5956 }
0x2285   :  { %v3771_v1 = vmul.f32 %v5957_v55, %v3624_v31 }
0x2287   :  { %v3779_v32 = vsub.f32 2.0, %v3771_v1 }
0x2289   :  { %v3787_v41 = vmul.f32 %v5957_v55, %v3779_v32 }
0x228b   :  { %v3795_v19 = vmul.f32 %v3787_v41, %v7630_v53 }
0x228d   :  { %5607 = vmatprep.mubr.msk.f32.mxu1 %vm201_vm2, %v3795_v19 }
0x228e   :  { %5608 = vmatmul.mubr.msk.f32.gmra.mxu1 %vm201_vm2, %v3796_v37 }
0x228f   :  { %5629 = vmatprep.mubr.msk.f32.mxu1 %vm5989_vm1, %v7817_v33 }
0x22b5   :  { %v4034_v15 = vpop.permute.xlu0 %4033 }
0x22b6   :  { %5630 = vmatmul.mubr.msk.f32.vlgmr.msra.gmra.mxu1 %vm201_vm2, %v4034_v15 }
0x22b7   :  { %5644 = vmatpush3.msra.mxu1 %v7536_v52  ;;  %5651 = vmatprep.mubr.msk.f32.mxu1 %vm5989_vm1, %v7817_v33 }
0x22b8   :  { %5645 = vmatprep.subr.mxu1 %v7817_v33 }
0x22b9   :  { %5646 = vmatpush3.msra.mxu1 %v7542_v12 }
0x22ba   :  { %5647 = vmatprep.subr.mxu1 %v7817_v33 }
0x22bb   :  { %5648 = vmatpush3.msra.mxu1 %v7556_v42 }
0x22bc   :  { %5649 = vmatprep.subr.mxu1 %v7817_v33 }
0x22bd   :  { %5650 = vmatpush3.msra.mxu1 %v7563_v51 }
0x22be   :  { %5665 = vmatprep.subr.mxu1 %v7817_v33 }
0x22dc   :  { %v7682_v20 = vpop.f32.mrf.mxu1 }
0x22dd   :  { %v3907_v7 = vadd.f32 %v7682_v20, %v7637_v8 }
0x22de   :  { %v3901_v53 = vpop.f32.mrf.mxu1 }
0x22e0   :  { %v7684_v59 = vpop.f32.mrf.mxu1 }
0x22e2   :  { %v7686_v24 = vpop.f32.mrf.mxu1 }
0x234e   :  { %v7688_v16 = vpop.f32.mrf.mxu1 }
0x2350   :  { %v7690_v60 = vpop.f32.mrf.mxu1 }
0x2376   :  { %v4103_v30 = vpop.f32.mrf.mxu1 }
0x2377   :  { %v4107_v34 = vadd.f32 %v4103_v30, %v3897_v40  ;;  %v3912_v40 = vadd.f32 %v7637_v8, %v7686_v24 }
0x2378   :  { %v5631_v17 = vpop.f32.mrf.mxu1 }
0x2379   :  { %v4895_v18 = vclamps-f32 %v4107_v34, 1.0  ;;  %v4108_v29 = vmul.f32 0.16666667, %v4107_v34 }
0x237b   :  { %4116 = vrot.lane.b32.xlu1 %v4895_v18, %s5990_s9  ;;  %v4109_v13 = vadd.f32 0.5, %v4108_v29 }
0x237d   :  { %v4110_v27 = vmax.f32 %v4109_v13, 0.0 }
0x237f   :  { %v4111_v28 = vmin.f32 %v4110_v27, 1.0 }
0x2381   :  { %v4114_v2 = vmul.f32 %v4111_v28, %v7652_v5  ;;  %v3902_v5 = vadd.f32 %v7637_v8, %v3901_v53 }
0x23ed   :  { %v4117_v38 = vpop.permute.xlu1 %4116 }
0x23ee   :  { %v4119_v46 = vmul.f32 %v4117_v38, %v4111_v28 }
0x23f0   :  { %4121 = vrot.lane.b32.xlu1 %v4119_v46, %s5991_s12 }
0x2462   :  { %v4122_v48 = vpop.permute.xlu1 %4121 }
0x2463   :  { %v4124_v47 = vadd.f32 %v4122_v48, %v4114_v2 }
0x2465   :  { %v4896_v57 = vclamps-f32 %v4124_v47, 1.0 }
0x2467   :  { %4128 = vrot.lane.b32.xlu0 %v4896_v57, %s5990_s9 }
0x24d9   :  { %v4129_v50 = vpop.permute.xlu0 %4128 }
0x24da   :  { %v4131_v54 = vmul.f32 %v4129_v50, %v4111_v28 }
0x24dc   :  { %4133 = vrot.lane.b32.xlu1 %v4131_v54, %s5991_s12 }
0x254e   :  { %v4134_v39 = vpop.permute.xlu1 %4133 }
0x254f   :  { %5641 = vmatmul.mubr.msk.f32.vlgmr.msra.gmra.mxu0 %vm201_vm2, %v4134_v39  ;;  %v3917_v39 = vadd.f32 %v7684_v59, %v7637_v8 }
0x2550   :  { %5655 = vmatpush3.msra.mxu0 %v7536_v52  ;;  %5662 = vmatprep.mubr.msk.f32.mxu0 %vm5989_vm1, %v7817_v33 }
0x2551   :  { %5656 = vmatprep.subr.mxu0 %v7817_v33 }
0x2552   :  { %5657 = vmatpush3.msra.mxu0 %v7542_v12 }
0x2553   :  { %5658 = vmatprep.subr.mxu0 %v7817_v33 }
0x2554   :  { %5659 = vmatpush3.msra.mxu0 %v7556_v42 }
0x2555   :  { %5660 = vmatprep.subr.mxu0 %v7817_v33 }
0x2556   :  { %5661 = vmatpush3.msra.mxu0 %v7563_v51 }
0x2557   :  { %5676 = vmatprep.subr.mxu0 %v7817_v33 }
0x260f   :  { %v4203_v44 = vpop.f32.mrf.mxu0 }
0x2610   :  { %v4207_v61 = vadd.f32 %v4203_v44, %v3902_v5 }
0x2611   :  { %v5642_v23 = vpop.f32.mrf.mxu0 }
0x2612   :  { %v4898_v10 = vclamps-f32 %v4207_v61, 1.0  ;;  %v4208_v26 = vmul.f32 0.16666667, %v4207_v61 }
0x2614   :  { %4216 = vrot.lane.b32.xlu0 %v4898_v10, %s5990_s9  ;;  %v4209_v4 = vadd.f32 0.5, %v4208_v26 }
0x2616   :  { %v4210_v58 = vmax.f32 %v4209_v4, 0.0 }
0x2618   :  { %v4211_v49 = vmin.f32 %v4210_v58, 1.0 }
0x261a   :  { %v4214_v9 = vmul.f32 %v4211_v49, %v4124_v47 }
0x2686   :  { %v4217_v36 = vpop.permute.xlu0 %4216 }
0x2687   :  { %v4219_v35 = vmul.f32 %v4217_v36, %v4211_v49 }
0x2689   :  { %4221 = vrot.lane.b32.xlu1 %v4219_v35, %s5991_s12 }
0x26fb   :  { %v4222_v22 = vpop.permute.xlu1 %4221 }
0x26fc   :  { %v4224_v0 = vadd.f32 %v4222_v22, %v4214_v9  ;;  %v3922_v9 = vadd.f32 %v7637_v8, %v7690_v60 }
0x26fe   :  { %v4899_v11 = vclamps-f32 %v4224_v0, 1.0 }
0x2700   :  { %4228 = vrot.lane.b32.xlu0 %v4899_v11, %s5990_s9 }
0x2772   :  { %v4229_v45 = vpop.permute.xlu0 %4228 }
0x2773   :  { %v4231_v6 = vmul.f32 %v4229_v45, %v4211_v49 }
0x2775   :  { %4233 = vrot.lane.b32.xlu1 %v4231_v6, %s5991_s12 }
0x27e7   :  { %v4234_v62 = vpop.permute.xlu1 %4233 }
0x27e8   :  { %5652 = vmatmul.mubr.msk.f32.vlgmr.msra.gmra.mxu1 %vm201_vm2, %v4234_v62 }
0x27e9   :  { %5666 = vmatpush3.msra.mxu1 %v7536_v52  ;;  %5673 = vmatprep.mubr.msk.f32.mxu1 %vm5989_vm1, %v7817_v33 }
0x27ea   :  { %5667 = vmatprep.subr.mxu1 %v7817_v33 }
0x27eb   :  { %5668 = vmatpush3.msra.mxu1 %v7542_v12 }
0x27ec   :  { %5669 = vmatprep.subr.mxu1 %v7817_v33 }
0x27ed   :  { %5670 = vmatpush3.msra.mxu1 %v7556_v42 }
0x27ee   :  { %5671 = vmatprep.subr.mxu1 %v7817_v33 }
0x27ef   :  { %5672 = vmatpush3.msra.mxu1 %v7563_v51 }
0x27f0   :  { %5687 = vmatprep.subr.mxu1 %v7817_v33 }
0x28a8   :  { %v4303_v63 = vpop.f32.mrf.mxu1 }
0x28a9   :  { %v4307_v3 = vadd.f32 %v4303_v63, %v3907_v7 }
0x28aa   :  { %v5653_v25 = vpop.f32.mrf.mxu1 }
0x28ab   :  { %v4901_v31 = vclamps-f32 %v4307_v3, 1.0  ;;  %v4308_v56 = vmul.f32 0.16666667, %v4307_v3 }
0x28ad   :  { %4316 = vrot.lane.b32.xlu0 %v4901_v31, %s5990_s9  ;;  %v4309_v14 = vadd.f32 0.5, %v4308_v56 }
0x28af   :  { %v4310_v55 = vmax.f32 %v4309_v14, 0.0 }
0x28b1   :  { %v4311_v43 = vmin.f32 %v4310_v55, 1.0 }
0x28b3   :  { %v4314_v21 = vmul.f32 %v4311_v43, %v4224_v0 }
0x291f   :  { %v4317_v1 = vpop.permute.xlu0 %4316 }
0x2920   :  { %v4319_v32 = vmul.f32 %v4317_v1, %v4311_v43 }
0x2922   :  { %4321 = vrot.lane.b32.xlu1 %v4319_v32, %s5991_s12  ;;  %v3927_v32 = vadd.f32 %v7688_v16, %v7637_v8 }
0x2994   :  { %v4322_v41 = vpop.permute.xlu1 %4321 }
0x2995   :  { %v4324_v19 = vadd.f32 %v4322_v41, %v4314_v21 }
0x2997   :  { %v4902_v37 = vclamps-f32 %v4324_v19, 1.0 }
0x2999   :  { %4328 = vrot.lane.b32.xlu0 %v4902_v37, %s5990_s9 }
0x2a0b   :  { %v4329_v15 = vpop.permute.xlu0 %4328 }
0x2a0c   :  { %v4331_v20 = vmul.f32 %v4329_v15, %v4311_v43 }
0x2a0e   :  { %4333 = vrot.lane.b32.xlu1 %v4331_v20, %s5991_s12 }
0x2a80   :  { %v4334_v53 = vpop.permute.xlu1 %4333 }
0x2a81   :  { %5663 = vmatmul.mubr.msk.f32.vlgmr.msra.gmra.mxu0 %vm201_vm2, %v4334_v53 }
0x2a82   :  { %5677 = vmatpush3.msra.mxu0 %v7536_v52  ;;  %5684 = vmatprep.mubr.msk.f32.mxu0 %vm5989_vm1, %v7817_v33 }
0x2a83   :  { %5678 = vmatprep.subr.mxu0 %v7817_v33 }
0x2a84   :  { %5679 = vmatpush3.msra.mxu0 %v7542_v12 }
0x2a85   :  { %5680 = vmatprep.subr.mxu0 %v7817_v33 }
0x2a86   :  { %5681 = vmatpush3.msra.mxu0 %v7556_v42 }
0x2a87   :  { %5682 = vmatprep.subr.mxu0 %v7817_v33 }
0x2a88   :  { %5683 = vmatpush3.msra.mxu0 %v7563_v51 }
0x2b41   :  { %v4403_v30 = vpop.f32.mrf.mxu0 }
0x2b42   :  { %v4407_v34 = vadd.f32 %v4403_v30, %v3912_v40 }
0x2b43   :  { %v5664_v17 = vpop.f32.mrf.mxu0 }
0x2b44   :  { %v4904_v18 = vclamps-f32 %v4407_v34, 1.0  ;;  %v4408_v29 = vmul.f32 0.16666667, %v4407_v34 }
0x2b46   :  { %4416 = vrot.lane.b32.xlu0 %v4904_v18, %s5990_s9  ;;  %v4409_v13 = vadd.f32 0.5, %v4408_v29 }
0x2b48   :  { %v4410_v27 = vmax.f32 %v4409_v13, 0.0 }
0x2b4a   :  { %v4411_v28 = vmin.f32 %v4410_v27, 1.0 }
0x2b4c   :  { %v4414_v2 = vmul.f32 %v4411_v28, %v4324_v19 }
0x2bb8   :  { %v4417_v38 = vpop.permute.xlu0 %4416 }
0x2bb9   :  { %v4419_v46 = vmul.f32 %v4417_v38, %v4411_v28 }
0x2bbb   :  { %4421 = vrot.lane.b32.xlu1 %v4419_v46, %s5991_s12 }
0x2c2d   :  { %v4422_v48 = vpop.permute.xlu1 %4421 }
0x2c2e   :  { %v4424_v47 = vadd.f32 %v4422_v48, %v4414_v2 }
0x2c30   :  { %v4905_v57 = vclamps-f32 %v4424_v47, 1.0 }
0x2c32   :  { %4428 = vrot.lane.b32.xlu0 %v4905_v57, %s5990_s9 }
0x2ca4   :  { %v4429_v24 = vpop.permute.xlu0 %4428 }
0x2ca5   :  { %v4431_v50 = vmul.f32 %v4429_v24, %v4411_v28 }
0x2ca7   :  { %4433 = vrot.lane.b32.xlu1 %v4431_v50, %s5991_s12 }
0x2d19   :  { %v4434_v54 = vpop.permute.xlu1 %4433 }
0x2d1a   :  { %5674 = vmatmul.mubr.msk.f32.vlgmr.msra.gmra.mxu1 %vm201_vm2, %v4434_v54 }
0x2d1b   :  { %5688 = vmatpush3.msra.mxu1 %v7536_v52  ;;  %5695 = vmatprep.mubr.msk.f32.mxu1 %vm5989_vm1, %v7817_v33  ;;  %vm4737_vm1 = vcmask 523520  }
0x2d1c   :  { %5689 = vmatprep.subr.mxu1 %v7817_v33 }
0x2d1d   :  { %5690 = vmatpush3.msra.mxu1 %v7542_v12 }
0x2d1e   :  { %5691 = vmatprep.subr.mxu1 %v7817_v33 }
0x2d1f   :  { %5692 = vmatpush3.msra.mxu1 %v7556_v42 }
0x2d20   :  { %5693 = vmatprep.subr.mxu1 %v7817_v33 }
0x2d21   :  { %5694 = vmatpush3.msra.mxu1 %v7563_v51 }
0x2dda   :  { %v4503_v5 = vpop.f32.mrf.mxu1 }
0x2ddb   :  { %v4507_v52 = vadd.f32 %v4503_v5, %v3917_v39 }
0x2ddc   :  { %v5675_v44 = vpop.f32.mrf.mxu1 }
0x2ddd   :  { %v4907_v61 = vclamps-f32 %v4507_v52, 1.0  ;;  %v4508_v23 = vmul.f32 0.16666667, %v4507_v52 }
0x2ddf   :  { %4516 = vrot.lane.b32.xlu0 %v4907_v61, %s5990_s9  ;;  %v4509_v10 = vadd.f32 0.5, %v4508_v23 }
0x2de1   :  { %v4510_v12 = vmax.f32 %v4509_v10, 0.0 }
0x2de3   :  { %v4511_v26 = vmin.f32 %v4510_v12, 1.0 }
0x2de5   :  { %v4514_v33 = vmul.f32 %v4511_v26, %v4424_v47 }
0x2e51   :  { %v4517_v4 = vpop.permute.xlu0 %4516 }
0x2e52   :  { %v4519_v58 = vmul.f32 %v4517_v4, %v4511_v26 }
0x2e54   :  { %4521 = vrot.lane.b32.xlu1 %v4519_v58, %s5991_s12 }
0x2ec6   :  { %v4522_v42 = vpop.permute.xlu1 %4521 }
0x2ec7   :  { %v4524_v51 = vadd.f32 %v4522_v42, %v4514_v33 }
0x2ec9   :  { %v4908_v49 = vclamps-f32 %v4524_v51, 1.0 }
0x2ecb   :  { %4528 = vrot.lane.b32.xlu0 %v4908_v49, %s5990_s9 }
0x2f3d   :  { %v4529_v59 = vpop.permute.xlu0 %4528 }
0x2f3e   :  { %v4531_v36 = vmul.f32 %v4529_v59, %v4511_v26 }
0x2f40   :  { %4533 = vrot.lane.b32.xlu1 %v4531_v36, %s5991_s12 }
0x2fb2   :  { %v4534_v35 = vpop.permute.xlu1 %4533 }
0x2fb3   :  { %5685 = vmatmul.mubr.msk.f32.vlgmr.msra.gmra.mxu0 %vm201_vm2, %v4534_v35 }
0x3073   :  { %v4603_v22 = vpop.f32.mrf.mxu0 }
0x3074   :  { %v4607_v0 = vadd.f32 %v4603_v22, %v3922_v9 }
0x3075   :  { %v5686_v11 = vpop.f32.mrf.mxu0 }
0x3076   :  { %v4910_v45 = vclamps-f32 %v4607_v0, 1.0  ;;  %v4608_v6 = vmul.f32 0.16666667, %v4607_v0 }
0x3078   :  { %4616 = vrot.lane.b32.xlu0 %v4910_v45, %s5990_s9  ;;  %v4609_v62 = vadd.f32 0.5, %v4608_v6 }
0x307a   :  { %v4610_v7 = vmax.f32 %v4609_v62, 0.0 }
0x307c   :  { %v4611_v63 = vmin.f32 %v4610_v7, 1.0 }
0x307e   :  { %v4614_v31 = vmul.f32 %v4611_v63, %v4524_v51 }
0x30ea   :  { %v4617_v3 = vpop.permute.xlu0 %4616 }
0x30eb   :  { %v4619_v25 = vmul.f32 %v4617_v3, %v4611_v63 }
0x30ed   :  { %4621 = vrot.lane.b32.xlu1 %v4619_v25, %s5991_s12 }
0x315f   :  { %v4622_v56 = vpop.permute.xlu1 %4621 }
0x3160   :  { %v4624_v14 = vadd.f32 %v4622_v56, %v4614_v31 }
0x3162   :  { %v4911_v55 = vclamps-f32 %v4624_v14, 1.0 }
0x3164   :  { %4628 = vrot.lane.b32.xlu0 %v4911_v55, %s5990_s9 }
0x31d6   :  { %v4629_v60 = vpop.permute.xlu0 %4628 }
0x31d7   :  { %v4631_v43 = vmul.f32 %v4629_v60, %v4611_v63 }
0x31d9   :  { %4633 = vrot.lane.b32.xlu1 %v4631_v43, %s5991_s12 }
0x324b   :  { %v4634_v1 = vpop.permute.xlu1 %4633 }
0x324c   :  { %5696 = vmatmul.mubr.msk.f32.vlgmr.msra.gmra.mxu1 %vm201_vm2, %v4634_v1 }
0x330c   :  { %v4703_v21 = vpop.f32.mrf.mxu1 }
0x330d   :  { %v4707_v41 = vadd.f32 %v4703_v21, %v3927_v32 }
0x330e   :  { %v5697_v19 = vpop.f32.mrf.mxu1 }
0x330f   :  { %v4913_v37 = vclamps-f32 %v4707_v41, 1.0  ;;  %v4708_v15 = vmul.f32 0.16666667, %v4707_v41 }
0x3311   :  { %4716 = vrot.lane.b32.xlu0 %v4913_v37, %s5990_s9  ;;  %v4709_v20 = vadd.f32 0.5, %v4708_v15 }
0x3313   :  { %v4710_v53 = vmax.f32 %v4709_v20, 0.0 }
0x3315   :  { %v4711_v40 = vmin.f32 %v4710_v53, 1.0 }
0x3317   :  { %v4714_v17 = vmul.f32 %v4711_v40, %v4624_v14 }
0x3383   :  { %v4717_v30 = vpop.permute.xlu0 %4716 }
0x3384   :  { %v4719_v34 = vmul.f32 %v4717_v30, %v4711_v40 }
0x3386   :  { %4721 = vrot.lane.b32.xlu1 %v4719_v34, %s5991_s12 }
0x33f8   :  { %v4722_v18 = vpop.permute.xlu1 %4721 }
0x33f9   :  { %v4724_v29 = vadd.f32 %v4722_v18, %v4714_v17 }
0x33fb   :  { %v4914_v13 = vclamps-f32 %v4724_v29, 1.0 }
0x33fd   :  { %4728 = vrot.lane.b32.xlu0 %v4914_v13, %s5990_s9 }
0x346f   :  { %v4729_v8 = vpop.permute.xlu0 %4728 }
0x3470   :  { %v4731_v16 = vmul.f32 %v4729_v8, %v4711_v40 }
0x3472   :  { %4734 = vrot.lane.b32.xlu1 %v4731_v16, %s5990_s9 }
0x34e4   :  { %v4735_v27 = vpop.permute.xlu1 %4734 }
0x34e5   :  { %4738 = vst.msk [vmem:[#allocation4] sm:$0xff] %vm4737_vm1, %v4735_v27 }
0x34e6   :  { %5977 = shalt.err (!%p5974_p4)
}
0x34e7   :  { %4748 = dma.vmem_to_hbm [thread:$0]  %s4746_s11, 128, %s7786_s5, [#allocation5]  }
0x34e8   :  { %5986 = dma.done.wait [#allocation5], 128  }
0x34e9   :  { %5987 = vsyncadd [#allocation5], 4294967168 }
0x34ea   :  { %4752 = vsyncpa [#allocation5], 1 }

</bundles_post_ra>
